<compile_context>
chip_gen: v5e
topology: v5e:2x2
jax: 0.10.0
libtpu: 0.0.40
codegen_flags: <defaults>
</compile_context>

<pallas_src>
import numpy as np
import jax
import jax.numpy as jnp
from jax.experimental import pallas as pl
from jax.experimental.pallas import tpu as pltpu

N_WINDOW = 5
N_HIDDEN = 16


def _leaky(x, slope):
    return jnp.where(x >= 0, x, slope * x)


def _round_up(x, m):
    return ((x + m - 1) // m) * m


# ---------------------------------------------------------------------------
# Host-side parameter packing (float64 fusions, cast to f32): one (R, 128) slab.
# ---------------------------------------------------------------------------
def pack_params(params, feats):
    F = feats
    n = N_WINDOW * F
    VH = F * F
    f64 = np.float64
    g = lambda k: np.asarray(params[k], f64)

    # fused attention affine (identity LeakyReLU(True) folded):  logits = data@AW + AB
    AW = g("aw1") @ g("aw2") @ g("aw3")                                    # (n, 5)
    AB = g("ab1") @ g("aw2") @ g("aw3") + g("ab2") @ g("aw3") + g("ab3")   # (1, 5)

    # GAT per-head constants
    gfc = g("gfc").reshape(F)
    gal = g("gal").reshape(F)
    gar = g("gar").reshape(F)
    gbias = g("gbias").reshape(F)
    cl, cr = gfc * gal, gfc * gar
    eyeF = np.eye(F, dtype=f64)

    # fused fcn affine:  y_v = feat_v @ (fw1@fw2) + (fb1@fw2 + fb2)
    FW = g("fw1") @ g("fw2")                                               # (F, 5)
    b12 = (g("fb1") @ g("fw2") + g("fb2")).reshape(N_WINDOW)               # (5,)

    # feature-major (transposed) constant matrices
    ATTN = np.concatenate([AW.T, AB.T], axis=1)                            # (5, n+1)
    W12t = np.kron(eyeF, FW.T)                                             # (n, VH): rows v*5+w
    E5t = np.repeat(np.eye(N_WINDOW, dtype=f64), F, axis=0)                # (n, 5)
    B12c = np.tile(b12, F).reshape(n, 1)                                   # (n, 1)
    ROWS_N = np.concatenate([W12t, E5t, B12c], axis=1)                     # (n, VH+5+1)
    SSt = np.tile(eyeF, (1, N_WINDOW))                                     # (F, n)
    CRt = np.kron(eyeF, cr.reshape(F, 1))                                  # (VH, F): row v*F+h
    clc = np.tile(cl, F).reshape(VH, 1)
    gfcc = np.tile(gfc, F).reshape(VH, 1)
    gbc = np.tile(gbias, F).reshape(VH, 1)
    SELF = 1.0 + np.kron(eyeF, np.ones((F, 1), f64))                       # (VH, F): 2 where v==u
    GAT = np.concatenate([CRt, clc, gfcc, gbc, SELF], axis=1)              # (VH, 2F+3)

    width = _round_up(max(n + 1, VH + N_WINDOW + 1, n, 2 * F + 3), 128)

    segs, off = [], {}
    row = 0

    def add(name, a):
        nonlocal row
        r, c = a.shape
        rp = _round_up(r, 8)                 # 8-sublane aligned segments
        seg = np.zeros((rp, width), f64)
        seg[:r, :c] = a
        segs.append(seg)
        off[name] = row
        row += rp

    add("attn", ATTN)
    add("rows_n", ROWS_N)
    add("ss", SSt)
    add("gat", GAT)

    packed = jnp.asarray(np.concatenate(segs, axis=0).astype(np.float32))  # (120, 128) for feats=8
    return packed, off


# ---------------------------------------------------------------------------
# Kernel: one lane-dense tile of TB windows per grid step (batch on the lane axis).
# ---------------------------------------------------------------------------
def make_gdn_kernel(feats, off):
    F = feats
    n = N_WINDOW * F
    VH = F * F

    def _recip(x):
        # EUP approximate reciprocal + 2 Newton steps: <=1 ulp regardless of the
        # quality of the hardware approximation -> preserves 2e-5 parity.
        r = pl.reciprocal(x, approx=True)
        r = r * (2.0 - x * r)
        r = r * (2.0 - x * r)
        return r

    def kernel(d_ref, p_ref, o_ref):
        f32 = jnp.float32
        Dt = d_ref[...]                                              # (n, TB): row = w*F+f, batch lane-dense

        # ---- attention: fused affine + softmax over the 5 windows (sublane axis) ----
        a0 = off["attn"]
        AW8 = p_ref[a0:a0 + 8, 0:n]                                  # (8, n), rows 5..7 are zero pad
        ABt = p_ref[a0:a0 + N_WINDOW, n:n + 1]                       # (5, 1)
        logits = jnp.dot(AW8, Dt, preferred_element_type=f32)[0:N_WINDOW, :] + ABt   # (5, TB)
        logits = logits - jnp.max(logits, axis=0, keepdims=True)
        ex = jnp.exp(logits)
        att = ex * _recip(jnp.sum(ex, axis=0, keepdims=True))        # (5, TB)

        # ---- data_r[f,b] = sum_w att[w,b] * D[w*F+f, b] ----
        r0 = off["rows_n"]
        E5t = p_ref[r0:r0 + n, VH:VH + N_WINDOW]                     # (n, 5): replicate att over feats
        s0 = off["ss"]
        SSt = p_ref[s0:s0 + F, 0:n]                                  # (F, n): sum over windows
        att_rep = jnp.dot(E5t, att, preferred_element_type=f32)      # (n, TB)
        data_r = jnp.dot(SSt, att_rep * Dt, preferred_element_type=f32)   # (F, TB)

        # ---- GATConv(1,1,heads=F), complete graph + duplicated self loop.
        #      Sublane index packs (dst node v, head h) as v*F + h; batch stays lane-dense. ----
        g0 = off["gat"]
        CRt = p_ref[g0:g0 + VH, 0:F]                                 # (VH, F)
        clc = p_ref[g0:g0 + VH, F:F + 1]                             # (VH, 1)  cl[h] = fc*attn_l
        gfcc = p_ref[g0:g0 + VH, F + 1:F + 2]                        # (VH, 1)  fc[h]
        gbc = p_ref[g0:g0 + VH, F + 2:F + 3]                         # (VH, 1)  per-head bias
        SELFm = p_ref[g0:g0 + VH, F + 3:2 * F + 3]                   # (VH, F): 2 where v==u else 1
        er = jnp.dot(CRt, data_r, preferred_element_type=f32)        # er[v*F+h,b] = data_r[v,b]*cr[h]

        # exact max over source nodes u (leaky_relu is monotone):
        dr_max = jnp.max(data_r, axis=0, keepdims=True)              # (1, TB)
        dr_min = jnp.min(data_r, axis=0, keepdims=True)
        m = _leaky(jnp.maximum(dr_max * clc, dr_min * clc) + er, 0.2)

        den = jnp.zeros_like(er)
        num = jnp.zeros_like(er)
        for u in range(F):          # 8 static VPU/EUP passes over (VH, TB); self loop folded via mask
            dcol = data_r[u:u + 1, :]                                # (1, TB)
            w_u = jnp.exp(_leaky(dcol * clc + er, 0.2) - m)          # w_u <= 1
            wm = w_u * SELFm[:, u:u + 1]
            den = den + wm
            num = num + wm * (dcol * gfcc)
        feat = num * _recip(den) + gbc                               # (VH, TB), den >= 1

        # ---- fcn: fused per-node affine + stable sigmoid; rows already in torch
        #      x.view(-1) order (v*5 + w) -> one unmasked lane-dense store. ----
        W12 = p_ref[r0:r0 + n, 0:VH]                                 # (n, VH) = kron(I_F, (fw1@fw2)^T)
        b12 = p_ref[r0:r0 + n, VH + N_WINDOW:VH + N_WINDOW + 1]      # (n, 1)
        y = jnp.dot(W12, feat, preferred_element_type=f32) + b12     # (n, TB)
        t = jnp.exp(-jnp.abs(y))                                     # <= 1, overflow-safe
        r = _recip(1.0 + t)                                          # operand in [1, 2]
        o_ref[...] = jnp.where(y >= 0, r, t * r)

    return kernel


# ---------------------------------------------------------------------------
# Wrappers
# ---------------------------------------------------------------------------
def gdn_forward_tmajor(dT, packed, off, feats, *, tile):
    """Core pallas call.  dT: (n_window*feats, B_pad) feature-major (batch on the
    lane axis), B_pad % tile == 0 and tile % 128 == 0 (or B_pad == tile).
    No host-side copies are made here."""
    n, B_pad = dT.shape
    assert n == N_WINDOW * feats and B_pad % tile == 0
    R, PW = packed.shape
    return pl.pallas_call(
        make_gdn_kernel(feats, off),
        out_shape=jax.ShapeDtypeStruct((n, B_pad), jnp.float32),
        grid=(B_pad // tile,),
        in_specs=[pl.BlockSpec((n, tile), lambda i: (0, i)),
                  pl.BlockSpec((R, PW), lambda i: (0, 0))],   # param slab stays VMEM-resident
        out_specs=pl.BlockSpec((n, tile), lambda i: (0, i)),
        compiler_params=pltpu.CompilerParams(dimension_semantics=("parallel",)),
    )(dT, packed)


def gdn_forward_batched(data_batch, packed, off, feats, *, block=512):
    """Row-major convenience wrapper: (B, n_window*feats) -> (B, n_window*feats);
    row b is identical to torch GDN.forward(data_b).view(-1).  Performs a single
    transpose+pad relayout to the lane-dense feature-major layout; callers that
    already hold feature-major, tile-padded data should use gdn_forward_tmajor."""
    B, n = data_batch.shape
    assert n == N_WINDOW * feats
    B_ceil = _round_up(B, 128)
    TB = min(_round_up(block, 128), B_ceil)      # lane-dense tile (multiple of 128)
    if TB == B_ceil and B_ceil >= 256:           # keep >= 2 grid blocks for v7x megacore
        TB = _round_up(B_ceil // 2, 128)
    B_pad = _round_up(B, TB)
    dT = jnp.pad(data_batch.astype(jnp.float32).T, ((0, 0), (0, B_pad - B)))
    outT = gdn_forward_tmajor(dT, packed, off, feats, tile=TB)
    return outT[:, :B].T


def gdn_forward(data, params, feats):
    """Single-window forward, identical to torch GDN.forward(data).view(-1)."""
    packed, off = pack_params(params, feats)
    return gdn_forward_batched(data.reshape(1, -1), packed, off, feats).reshape(-1)


# ---------------------------------------------------------------------------
# Pure-JAX reference (unfused, same math as the torch module).
# ---------------------------------------------------------------------------
def gdn_ref(data, params, feats):
    d = data.reshape(1, -1)
    h = _leaky(d @ params["aw1"] + params["ab1"], 1.0)
    h = _leaky(h @ params["aw2"] + params["ab2"], 1.0)
    att = jax.nn.softmax(h @ params["aw3"] + params["ab3"], axis=-1)          # (1, 5)
    D2 = data.reshape(N_WINDOW, feats)
    data_r = D2.T @ att.reshape(N_WINDOW, 1)                                  # (F, 1)
    fs = data_r @ params["gfc"].T                                             # (node, head)
    el = fs * params["gal"]
    er = fs * params["gar"]
    e = _leaky(el[:, None, :] + er[None, :, :], 0.2)                          # (U, V, H)
    m = e.max(axis=0)
    w = jnp.exp(e - m[None])
    w_self = jnp.exp(_leaky(el + er, 0.2) - m)                                # duplicated self-loop
    den = w.sum(axis=0) + w_self
    num = (w * fs[:, None, :]).sum(axis=0) + w_self * fs
    feat_r = num / den + params["gbias"]
    y = _leaky(feat_r @ params["fw1"] + params["fb1"], 1.0)
    y = jax.nn.sigmoid(y @ params["fw2"] + params["fb2"])
    return y.reshape(-1)


if __name__ == "__main__":
    feats = 8
    n = N_WINDOW * feats

    key = jax.random.PRNGKey(0)
    ks = jax.random.split(key, 16)

    def w(k, shape, scale):
        return (scale * jax.random.normal(k, shape)).astype(jnp.float32)

    params = {
        # attention: Linear(n,16) -> Linear(16,16) -> Linear(16,5)  (stored (in,out))
        "aw1": w(ks[0], (n, N_HIDDEN), 0.15), "ab1": w(ks[1], (1, N_HIDDEN), 0.05),
        "aw2": w(ks[2], (N_HIDDEN, N_HIDDEN), 0.20), "ab2": w(ks[3], (1, N_HIDDEN), 0.05),
        "aw3": w(ks[4], (N_HIDDEN, N_WINDOW), 0.20), "ab3": w(ks[5], (1, N_WINDOW), 0.05),
        # GATConv(1, 1, num_heads=feats): fc weight (heads*out, in) = (feats, 1), attn_l/r, bias
        "gfc": w(ks[6], (feats, 1), 0.50),
        "gal": w(ks[7], (1, feats), 0.50),
        "gar": w(ks[8], (1, feats), 0.50),
        "gbias": w(ks[9], (1, feats), 0.05),
        # fcn: Linear(feats,16) -> Linear(16,5)
        "fw1": w(ks[10], (feats, N_HIDDEN), 0.30), "fb1": w(ks[11], (1, N_HIDDEN), 0.05),
        "fw2": w(ks[12], (N_HIDDEN, N_WINDOW), 0.30), "fb2": w(ks[13], (1, N_WINDOW), 0.05),
    }

    packed, off = pack_params(params, feats)

    # --- single window: exact torch-module semantics ---
    data = jax.random.normal(ks[14], (n,), dtype=jnp.float32)
    out1 = jax.block_until_ready(
        gdn_forward_batched(data.reshape(1, -1), packed, off, feats).reshape(-1))
    ref1 = gdn_ref(data, params, feats)
    assert out1.shape == (n,)
    assert bool(jnp.allclose(out1, ref1, atol=2e-5, rtol=2e-5)), "single-window kernel != reference"

    # --- batched stream of windows: 2 lane-dense blocks, "parallel" grid axis ---
    B = 256
    data_b = jax.random.normal(ks[15], (B, n), dtype=jnp.float32)
    out_b = jax.block_until_ready(gdn_forward_batched(data_b, packed, off, feats))
    ref_b = jax.vmap(lambda d: gdn_ref(d, params, feats))(data_b)
    assert out_b.shape == (B, n)
    assert bool(jnp.allclose(out_b, ref_b, atol=2e-5, rtol=2e-5)), "batched kernel != reference"

    print("KERNEL_OK")
</pallas_src>

<mosaic_0001>
module attributes {stable_mosaic.version = 11 : i64} {
  func.func @kernel(%arg0: i32, %arg1: memref<40x128xf32, #tpu.memory_space<vmem>>, %arg2: memref<120x128xf32, #tpu.memory_space<vmem>>, %arg3: memref<40x128xf32, #tpu.memory_space<vmem>>) attributes {dimension_semantics = [#tpu.dimension_semantics<parallel>], iteration_bounds = array<i64: 1>, scalar_prefetch = 0 : i64, scratch_operands = 0 : i64, tpu.core_type = #tpu.core_type<tc>, window_params = [{transform_indices = @transform_0, window_bounds = array<i64: 40, 128>}, {pipeline_mode = #tpu.pipeline_mode<synchronous>, transform_indices = @transform_1, window_bounds = array<i64: 120, 128>}, {transform_indices = @transform_2, window_bounds = array<i64: 40, 128>}]} {
    %c0 = arith.constant 0 : index
    %c0_0 = arith.constant 0 : index
    %0 = vector.load %arg1[%c0, %c0_0] : memref<40x128xf32, #tpu.memory_space<vmem>>, vector<40x128xf32>
    %c0_1 = arith.constant 0 : index
    %c0_2 = arith.constant 0 : index
    %1 = vector.load %arg2[%c0_1, %c0_2] : memref<120x128xf32, #tpu.memory_space<vmem>>, vector<8x40xf32>
    %c0_3 = arith.constant 0 : index
    %c40 = arith.constant 40 : index
    %2 = vector.load %arg2[%c0_3, %c40] : memref<120x128xf32, #tpu.memory_space<vmem>>, vector<5x1xf32>
    %cst = arith.constant dense<0.000000e+00> : vector<8x128xf32>
    %3 = tpu.matmul %1, %0, %cst {dimension_numbers = #tpu.dot_dimension_numbers<[1], [0], [0], [1], [0, 0, 1, 1], [], []>} : vector<8x40xf32>, vector<40x128xf32>, vector<8x128xf32> -> vector<8x128xf32>
    %4 = vector.extract_strided_slice %3 {offsets = [0, 0], sizes = [5, 128], strides = [1, 1]} : vector<8x128xf32> to vector<5x128xf32>
    %5 = vector.broadcast %2 : vector<5x1xf32> to vector<5x128xf32>
    %6 = arith.addf %4, %5 : vector<5x128xf32>
    %cst_4 = arith.constant dense<0xFF800000> : vector<128xf32>
    %7 = vector.multi_reduction <maximumf>, %6, %cst_4 [0] : vector<5x128xf32> to vector<128xf32>
    %8 = vector.shape_cast %7 : vector<128xf32> to vector<1x128xf32>
    %9 = vector.broadcast %8 : vector<1x128xf32> to vector<5x128xf32>
    %10 = arith.subf %6, %9 : vector<5x128xf32>
    %11 = math.exp %10 : vector<5x128xf32>
    %cst_5 = arith.constant dense<0.000000e+00> : vector<128xf32>
    %12 = vector.multi_reduction <add>, %11, %cst_5 [0] : vector<5x128xf32> to vector<128xf32>
    %13 = vector.shape_cast %12 : vector<128xf32> to vector<1x128xf32>
    %14 = tpu.reciprocal %13 {approx = true} : vector<1x128xf32> -> vector<1x128xf32>
    %15 = arith.mulf %13, %14 : vector<1x128xf32>
    %cst_6 = arith.constant 2.000000e+00 : f32
    %16 = vector.broadcast %cst_6 : f32 to vector<1x128xf32>
    %17 = arith.subf %16, %15 : vector<1x128xf32>
    %18 = arith.mulf %14, %17 : vector<1x128xf32>
    %19 = arith.mulf %13, %18 : vector<1x128xf32>
    %cst_7 = arith.constant 2.000000e+00 : f32
    %20 = vector.broadcast %cst_7 : f32 to vector<1x128xf32>
    %21 = arith.subf %20, %19 : vector<1x128xf32>
    %22 = arith.mulf %18, %21 : vector<1x128xf32>
    %23 = vector.broadcast %22 : vector<1x128xf32> to vector<5x128xf32>
    %24 = arith.mulf %11, %23 : vector<5x128xf32>
    %c8 = arith.constant 8 : index
    %c64 = arith.constant 64 : index
    %25 = vector.load %arg2[%c8, %c64] : memref<120x128xf32, #tpu.memory_space<vmem>>, vector<40x5xf32>
    %c48 = arith.constant 48 : index
    %c0_8 = arith.constant 0 : index
    %26 = vector.load %arg2[%c48, %c0_8] : memref<120x128xf32, #tpu.memory_space<vmem>>, vector<8x40xf32>
    %cst_9 = arith.constant dense<0.000000e+00> : vector<40x128xf32>
    %27 = tpu.matmul %25, %24, %cst_9 {dimension_numbers = #tpu.dot_dimension_numbers<[1], [0], [0], [1], [0, 0, 1, 1], [], []>} : vector<40x5xf32>, vector<5x128xf32>, vector<40x128xf32> -> vector<40x128xf32>
    %28 = arith.mulf %27, %0 : vector<40x128xf32>
    %cst_10 = arith.constant dense<0.000000e+00> : vector<8x128xf32>
    %29 = tpu.matmul %26, %28, %cst_10 {dimension_numbers = #tpu.dot_dimension_numbers<[1], [0], [0], [1], [0, 0, 1, 1], [], []>} : vector<8x40xf32>, vector<40x128xf32>, vector<8x128xf32> -> vector<8x128xf32>
    %c56 = arith.constant 56 : index
    %c0_11 = arith.constant 0 : index
    %30 = vector.load %arg2[%c56, %c0_11] : memref<120x128xf32, #tpu.memory_space<vmem>>, vector<64x8xf32>
    %c56_12 = arith.constant 56 : index
    %c8_13 = arith.constant 8 : index
    %31 = vector.load %arg2[%c56_12, %c8_13] : memref<120x128xf32, #tpu.memory_space<vmem>>, vector<64x1xf32>
    %c56_14 = arith.constant 56 : index
    %c9 = arith.constant 9 : index
    %32 = vector.load %arg2[%c56_14, %c9] : memref<120x128xf32, #tpu.memory_space<vmem>>, vector<64x1xf32>
    %c56_15 = arith.constant 56 : index
    %c10 = arith.constant 10 : index
    %33 = vector.load %arg2[%c56_15, %c10] : memref<120x128xf32, #tpu.memory_space<vmem>>, vector<64x1xf32>
    %c56_16 = arith.constant 56 : index
    %c11 = arith.constant 11 : index
    %34 = vector.load %arg2[%c56_16, %c11] : memref<120x128xf32, #tpu.memory_space<vmem>>, vector<64x8xf32>
    %cst_17 = arith.constant dense<0.000000e+00> : vector<64x128xf32>
    %35 = tpu.matmul %30, %29, %cst_17 {dimension_numbers = #tpu.dot_dimension_numbers<[1], [0], [0], [1], [0, 0, 1, 1], [], []>} : vector<64x8xf32>, vector<8x128xf32>, vector<64x128xf32> -> vector<64x128xf32>
    %cst_18 = arith.constant dense<0xFF800000> : vector<128xf32>
    %36 = vector.multi_reduction <maximumf>, %29, %cst_18 [0] : vector<8x128xf32> to vector<128xf32>
    %37 = vector.shape_cast %36 : vector<128xf32> to vector<1x128xf32>
    %cst_19 = arith.constant dense<0x7F800000> : vector<128xf32>
    %38 = vector.multi_reduction <minimumf>, %29, %cst_19 [0] : vector<8x128xf32> to vector<128xf32>
    %39 = vector.shape_cast %38 : vector<128xf32> to vector<1x128xf32>
    %40 = vector.broadcast %37 : vector<1x128xf32> to vector<64x128xf32>
    %41 = vector.broadcast %31 : vector<64x1xf32> to vector<64x128xf32>
    %42 = arith.mulf %40, %41 : vector<64x128xf32>
    %43 = vector.broadcast %39 : vector<1x128xf32> to vector<64x128xf32>
    %44 = vector.broadcast %31 : vector<64x1xf32> to vector<64x128xf32>
    %45 = arith.mulf %43, %44 : vector<64x128xf32>
    %46 = arith.maximumf %42, %45 : vector<64x128xf32>
    %47 = arith.addf %46, %35 : vector<64x128xf32>
    %cst_20 = arith.constant 0.000000e+00 : f32
    %48 = vector.broadcast %cst_20 : f32 to vector<64x128xf32>
    %49 = arith.cmpf oge, %47, %48 : vector<64x128xf32>
    %cst_21 = arith.constant 2.000000e-01 : f32
    %50 = vector.broadcast %cst_21 : f32 to vector<64x128xf32>
    %51 = arith.mulf %50, %47 : vector<64x128xf32>
    %52 = arith.select %49, %47, %51 : vector<64x128xi1>, vector<64x128xf32>
    %cst_22 = arith.constant 0.000000e+00 : f32
    %53 = vector.broadcast %cst_22 : f32 to vector<64x128xf32>
    %cst_23 = arith.constant 0.000000e+00 : f32
    %54 = vector.broadcast %cst_23 : f32 to vector<64x128xf32>
    %55 = vector.extract_strided_slice %29 {offsets = [0, 0], sizes = [1, 128], strides = [1, 1]} : vector<8x128xf32> to vector<1x128xf32>
    %56 = vector.broadcast %55 : vector<1x128xf32> to vector<64x128xf32>
    %57 = vector.broadcast %31 : vector<64x1xf32> to vector<64x128xf32>
    %58 = arith.mulf %56, %57 : vector<64x128xf32>
    %59 = arith.addf %58, %35 : vector<64x128xf32>
    %cst_24 = arith.constant 0.000000e+00 : f32
    %60 = vector.broadcast %cst_24 : f32 to vector<64x128xf32>
    %61 = arith.cmpf oge, %59, %60 : vector<64x128xf32>
    %cst_25 = arith.constant 2.000000e-01 : f32
    %62 = vector.broadcast %cst_25 : f32 to vector<64x128xf32>
    %63 = arith.mulf %62, %59 : vector<64x128xf32>
    %64 = arith.select %61, %59, %63 : vector<64x128xi1>, vector<64x128xf32>
    %65 = arith.subf %64, %52 : vector<64x128xf32>
    %66 = math.exp %65 : vector<64x128xf32>
    %67 = vector.extract_strided_slice %34 {offsets = [0, 0], sizes = [64, 1], strides = [1, 1]} : vector<64x8xf32> to vector<64x1xf32>
    %68 = vector.broadcast %67 : vector<64x1xf32> to vector<64x128xf32>
    %69 = arith.mulf %66, %68 : vector<64x128xf32>
    %70 = arith.addf %53, %69 : vector<64x128xf32>
    %71 = vector.broadcast %55 : vector<1x128xf32> to vector<64x128xf32>
    %72 = vector.broadcast %32 : vector<64x1xf32> to vector<64x128xf32>
    %73 = arith.mulf %71, %72 : vector<64x128xf32>
    %74 = arith.mulf %69, %73 : vector<64x128xf32>
    %75 = arith.addf %54, %74 : vector<64x128xf32>
    %76 = vector.extract_strided_slice %29 {offsets = [1, 0], sizes = [1, 128], strides = [1, 1]} : vector<8x128xf32> to vector<1x128xf32>
    %77 = vector.broadcast %76 : vector<1x128xf32> to vector<64x128xf32>
    %78 = vector.broadcast %31 : vector<64x1xf32> to vector<64x128xf32>
    %79 = arith.mulf %77, %78 : vector<64x128xf32>
    %80 = arith.addf %79, %35 : vector<64x128xf32>
    %cst_26 = arith.constant 0.000000e+00 : f32
    %81 = vector.broadcast %cst_26 : f32 to vector<64x128xf32>
    %82 = arith.cmpf oge, %80, %81 : vector<64x128xf32>
    %cst_27 = arith.constant 2.000000e-01 : f32
    %83 = vector.broadcast %cst_27 : f32 to vector<64x128xf32>
    %84 = arith.mulf %83, %80 : vector<64x128xf32>
    %85 = arith.select %82, %80, %84 : vector<64x128xi1>, vector<64x128xf32>
    %86 = arith.subf %85, %52 : vector<64x128xf32>
    %87 = math.exp %86 : vector<64x128xf32>
    %88 = vector.extract_strided_slice %34 {offsets = [0, 1], sizes = [64, 1], strides = [1, 1]} : vector<64x8xf32> to vector<64x1xf32>
    %89 = vector.broadcast %88 : vector<64x1xf32> to vector<64x128xf32>
    %90 = arith.mulf %87, %89 : vector<64x128xf32>
    %91 = arith.addf %70, %90 : vector<64x128xf32>
    %92 = vector.broadcast %76 : vector<1x128xf32> to vector<64x128xf32>
    %93 = vector.broadcast %32 : vector<64x1xf32> to vector<64x128xf32>
    %94 = arith.mulf %92, %93 : vector<64x128xf32>
    %95 = arith.mulf %90, %94 : vector<64x128xf32>
    %96 = arith.addf %75, %95 : vector<64x128xf32>
    %97 = vector.extract_strided_slice %29 {offsets = [2, 0], sizes = [1, 128], strides = [1, 1]} : vector<8x128xf32> to vector<1x128xf32>
    %98 = vector.broadcast %97 : vector<1x128xf32> to vector<64x128xf32>
    %99 = vector.broadcast %31 : vector<64x1xf32> to vector<64x128xf32>
    %100 = arith.mulf %98, %99 : vector<64x128xf32>
    %101 = arith.addf %100, %35 : vector<64x128xf32>
    %cst_28 = arith.constant 0.000000e+00 : f32
    %102 = vector.broadcast %cst_28 : f32 to vector<64x128xf32>
    %103 = arith.cmpf oge, %101, %102 : vector<64x128xf32>
    %cst_29 = arith.constant 2.000000e-01 : f32
    %104 = vector.broadcast %cst_29 : f32 to vector<64x128xf32>
    %105 = arith.mulf %104, %101 : vector<64x128xf32>
    %106 = arith.select %103, %101, %105 : vector<64x128xi1>, vector<64x128xf32>
    %107 = arith.subf %106, %52 : vector<64x128xf32>
    %108 = math.exp %107 : vector<64x128xf32>
    %109 = vector.extract_strided_slice %34 {offsets = [0, 2], sizes = [64, 1], strides = [1, 1]} : vector<64x8xf32> to vector<64x1xf32>
    %110 = vector.broadcast %109 : vector<64x1xf32> to vector<64x128xf32>
    %111 = arith.mulf %108, %110 : vector<64x128xf32>
    %112 = arith.addf %91, %111 : vector<64x128xf32>
    %113 = vector.broadcast %97 : vector<1x128xf32> to vector<64x128xf32>
    %114 = vector.broadcast %32 : vector<64x1xf32> to vector<64x128xf32>
    %115 = arith.mulf %113, %114 : vector<64x128xf32>
    %116 = arith.mulf %111, %115 : vector<64x128xf32>
    %117 = arith.addf %96, %116 : vector<64x128xf32>
    %118 = vector.extract_strided_slice %29 {offsets = [3, 0], sizes = [1, 128], strides = [1, 1]} : vector<8x128xf32> to vector<1x128xf32>
    %119 = vector.broadcast %118 : vector<1x128xf32> to vector<64x128xf32>
    %120 = vector.broadcast %31 : vector<64x1xf32> to vector<64x128xf32>
    %121 = arith.mulf %119, %120 : vector<64x128xf32>
    %122 = arith.addf %121, %35 : vector<64x128xf32>
    %cst_30 = arith.constant 0.000000e+00 : f32
    %123 = vector.broadcast %cst_30 : f32 to vector<64x128xf32>
    %124 = arith.cmpf oge, %122, %123 : vector<64x128xf32>
    %cst_31 = arith.constant 2.000000e-01 : f32
    %125 = vector.broadcast %cst_31 : f32 to vector<64x128xf32>
    %126 = arith.mulf %125, %122 : vector<64x128xf32>
    %127 = arith.select %124, %122, %126 : vector<64x128xi1>, vector<64x128xf32>
    %128 = arith.subf %127, %52 : vector<64x128xf32>
    %129 = math.exp %128 : vector<64x128xf32>
    %130 = vector.extract_strided_slice %34 {offsets = [0, 3], sizes = [64, 1], strides = [1, 1]} : vector<64x8xf32> to vector<64x1xf32>
    %131 = vector.broadcast %130 : vector<64x1xf32> to vector<64x128xf32>
    %132 = arith.mulf %129, %131 : vector<64x128xf32>
    %133 = arith.addf %112, %132 : vector<64x128xf32>
    %134 = vector.broadcast %118 : vector<1x128xf32> to vector<64x128xf32>
    %135 = vector.broadcast %32 : vector<64x1xf32> to vector<64x128xf32>
    %136 = arith.mulf %134, %135 : vector<64x128xf32>
    %137 = arith.mulf %132, %136 : vector<64x128xf32>
    %138 = arith.addf %117, %137 : vector<64x128xf32>
    %139 = vector.extract_strided_slice %29 {offsets = [4, 0], sizes = [1, 128], strides = [1, 1]} : vector<8x128xf32> to vector<1x128xf32>
    %140 = vector.broadcast %139 : vector<1x128xf32> to vector<64x128xf32>
    %141 = vector.broadcast %31 : vector<64x1xf32> to vector<64x128xf32>
    %142 = arith.mulf %140, %141 : vector<64x128xf32>
    %143 = arith.addf %142, %35 : vector<64x128xf32>
    %cst_32 = arith.constant 0.000000e+00 : f32
    %144 = vector.broadcast %cst_32 : f32 to vector<64x128xf32>
    %145 = arith.cmpf oge, %143, %144 : vector<64x128xf32>
    %cst_33 = arith.constant 2.000000e-01 : f32
    %146 = vector.broadcast %cst_33 : f32 to vector<64x128xf32>
    %147 = arith.mulf %146, %143 : vector<64x128xf32>
    %148 = arith.select %145, %143, %147 : vector<64x128xi1>, vector<64x128xf32>
    %149 = arith.subf %148, %52 : vector<64x128xf32>
    %150 = math.exp %149 : vector<64x128xf32>
    %151 = vector.extract_strided_slice %34 {offsets = [0, 4], sizes = [64, 1], strides = [1, 1]} : vector<64x8xf32> to vector<64x1xf32>
    %152 = vector.broadcast %151 : vector<64x1xf32> to vector<64x128xf32>
    %153 = arith.mulf %150, %152 : vector<64x128xf32>
    %154 = arith.addf %133, %153 : vector<64x128xf32>
    %155 = vector.broadcast %139 : vector<1x128xf32> to vector<64x128xf32>
    %156 = vector.broadcast %32 : vector<64x1xf32> to vector<64x128xf32>
    %157 = arith.mulf %155, %156 : vector<64x128xf32>
    %158 = arith.mulf %153, %157 : vector<64x128xf32>
    %159 = arith.addf %138, %158 : vector<64x128xf32>
    %160 = vector.extract_strided_slice %29 {offsets = [5, 0], sizes = [1, 128], strides = [1, 1]} : vector<8x128xf32> to vector<1x128xf32>
    %161 = vector.broadcast %160 : vector<1x128xf32> to vector<64x128xf32>
    %162 = vector.broadcast %31 : vector<64x1xf32> to vector<64x128xf32>
    %163 = arith.mulf %161, %162 : vector<64x128xf32>
    %164 = arith.addf %163, %35 : vector<64x128xf32>
    %cst_34 = arith.constant 0.000000e+00 : f32
    %165 = vector.broadcast %cst_34 : f32 to vector<64x128xf32>
    %166 = arith.cmpf oge, %164, %165 : vector<64x128xf32>
    %cst_35 = arith.constant 2.000000e-01 : f32
    %167 = vector.broadcast %cst_35 : f32 to vector<64x128xf32>
    %168 = arith.mulf %167, %164 : vector<64x128xf32>
    %169 = arith.select %166, %164, %168 : vector<64x128xi1>, vector<64x128xf32>
    %170 = arith.subf %169, %52 : vector<64x128xf32>
    %171 = math.exp %170 : vector<64x128xf32>
    %172 = vector.extract_strided_slice %34 {offsets = [0, 5], sizes = [64, 1], strides = [1, 1]} : vector<64x8xf32> to vector<64x1xf32>
    %173 = vector.broadcast %172 : vector<64x1xf32> to vector<64x128xf32>
    %174 = arith.mulf %171, %173 : vector<64x128xf32>
    %175 = arith.addf %154, %174 : vector<64x128xf32>
    %176 = vector.broadcast %160 : vector<1x128xf32> to vector<64x128xf32>
    %177 = vector.broadcast %32 : vector<64x1xf32> to vector<64x128xf32>
    %178 = arith.mulf %176, %177 : vector<64x128xf32>
    %179 = arith.mulf %174, %178 : vector<64x128xf32>
    %180 = arith.addf %159, %179 : vector<64x128xf32>
    %181 = vector.extract_strided_slice %29 {offsets = [6, 0], sizes = [1, 128], strides = [1, 1]} : vector<8x128xf32> to vector<1x128xf32>
    %182 = vector.broadcast %181 : vector<1x128xf32> to vector<64x128xf32>
    %183 = vector.broadcast %31 : vector<64x1xf32> to vector<64x128xf32>
    %184 = arith.mulf %182, %183 : vector<64x128xf32>
    %185 = arith.addf %184, %35 : vector<64x128xf32>
    %cst_36 = arith.constant 0.000000e+00 : f32
    %186 = vector.broadcast %cst_36 : f32 to vector<64x128xf32>
    %187 = arith.cmpf oge, %185, %186 : vector<64x128xf32>
    %cst_37 = arith.constant 2.000000e-01 : f32
    %188 = vector.broadcast %cst_37 : f32 to vector<64x128xf32>
    %189 = arith.mulf %188, %185 : vector<64x128xf32>
    %190 = arith.select %187, %185, %189 : vector<64x128xi1>, vector<64x128xf32>
    %191 = arith.subf %190, %52 : vector<64x128xf32>
    %192 = math.exp %191 : vector<64x128xf32>
    %193 = vector.extract_strided_slice %34 {offsets = [0, 6], sizes = [64, 1], strides = [1, 1]} : vector<64x8xf32> to vector<64x1xf32>
    %194 = vector.broadcast %193 : vector<64x1xf32> to vector<64x128xf32>
    %195 = arith.mulf %192, %194 : vector<64x128xf32>
    %196 = arith.addf %175, %195 : vector<64x128xf32>
    %197 = vector.broadcast %181 : vector<1x128xf32> to vector<64x128xf32>
    %198 = vector.broadcast %32 : vector<64x1xf32> to vector<64x128xf32>
    %199 = arith.mulf %197, %198 : vector<64x128xf32>
    %200 = arith.mulf %195, %199 : vector<64x128xf32>
    %201 = arith.addf %180, %200 : vector<64x128xf32>
    %202 = vector.extract_strided_slice %29 {offsets = [7, 0], sizes = [1, 128], strides = [1, 1]} : vector<8x128xf32> to vector<1x128xf32>
    %203 = vector.broadcast %202 : vector<1x128xf32> to vector<64x128xf32>
    %204 = vector.broadcast %31 : vector<64x1xf32> to vector<64x128xf32>
    %205 = arith.mulf %203, %204 : vector<64x128xf32>
    %206 = arith.addf %205, %35 : vector<64x128xf32>
    %cst_38 = arith.constant 0.000000e+00 : f32
    %207 = vector.broadcast %cst_38 : f32 to vector<64x128xf32>
    %208 = arith.cmpf oge, %206, %207 : vector<64x128xf32>
    %cst_39 = arith.constant 2.000000e-01 : f32
    %209 = vector.broadcast %cst_39 : f32 to vector<64x128xf32>
    %210 = arith.mulf %209, %206 : vector<64x128xf32>
    %211 = arith.select %208, %206, %210 : vector<64x128xi1>, vector<64x128xf32>
    %212 = arith.subf %211, %52 : vector<64x128xf32>
    %213 = math.exp %212 : vector<64x128xf32>
    %214 = vector.extract_strided_slice %34 {offsets = [0, 7], sizes = [64, 1], strides = [1, 1]} : vector<64x8xf32> to vector<64x1xf32>
    %215 = vector.broadcast %214 : vector<64x1xf32> to vector<64x128xf32>
    %216 = arith.mulf %213, %215 : vector<64x128xf32>
    %217 = arith.addf %196, %216 : vector<64x128xf32>
    %218 = vector.broadcast %202 : vector<1x128xf32> to vector<64x128xf32>
    %219 = vector.broadcast %32 : vector<64x1xf32> to vector<64x128xf32>
    %220 = arith.mulf %218, %219 : vector<64x128xf32>
    %221 = arith.mulf %216, %220 : vector<64x128xf32>
    %222 = arith.addf %201, %221 : vector<64x128xf32>
    %223 = tpu.reciprocal %217 {approx = true} : vector<64x128xf32> -> vector<64x128xf32>
    %224 = arith.mulf %217, %223 : vector<64x128xf32>
    %cst_40 = arith.constant 2.000000e+00 : f32
    %225 = vector.broadcast %cst_40 : f32 to vector<64x128xf32>
    %226 = arith.subf %225, %224 : vector<64x128xf32>
    %227 = arith.mulf %223, %226 : vector<64x128xf32>
    %228 = arith.mulf %217, %227 : vector<64x128xf32>
    %cst_41 = arith.constant 2.000000e+00 : f32
    %229 = vector.broadcast %cst_41 : f32 to vector<64x128xf32>
    %230 = arith.subf %229, %228 : vector<64x128xf32>
    %231 = arith.mulf %227, %230 : vector<64x128xf32>
    %232 = arith.mulf %222, %231 : vector<64x128xf32>
    %233 = vector.broadcast %33 : vector<64x1xf32> to vector<64x128xf32>
    %234 = arith.addf %232, %233 : vector<64x128xf32>
    %c8_42 = arith.constant 8 : index
    %c0_43 = arith.constant 0 : index
    %235 = vector.load %arg2[%c8_42, %c0_43] : memref<120x128xf32, #tpu.memory_space<vmem>>, vector<40x64xf32>
    %c8_44 = arith.constant 8 : index
    %c69 = arith.constant 69 : index
    %236 = vector.load %arg2[%c8_44, %c69] : memref<120x128xf32, #tpu.memory_space<vmem>>, vector<40x1xf32>
    %cst_45 = arith.constant dense<0.000000e+00> : vector<40x128xf32>
    %237 = tpu.matmul %235, %234, %cst_45 {dimension_numbers = #tpu.dot_dimension_numbers<[1], [0], [0], [1], [0, 0, 1, 1], [], []>} : vector<40x64xf32>, vector<64x128xf32>, vector<40x128xf32> -> vector<40x128xf32>
    %238 = vector.broadcast %236 : vector<40x1xf32> to vector<40x128xf32>
    %239 = arith.addf %237, %238 : vector<40x128xf32>
    %240 = math.absf %239 : vector<40x128xf32>
    %cst_46 = arith.constant 0.000000e+00 : f32
    %241 = vector.broadcast %cst_46 : f32 to vector<40x128xf32>
    %242 = arith.subf %241, %240 : vector<40x128xf32>
    %243 = math.exp %242 : vector<40x128xf32>
    %cst_47 = arith.constant 1.000000e+00 : f32
    %244 = vector.broadcast %cst_47 : f32 to vector<40x128xf32>
    %245 = arith.addf %244, %243 : vector<40x128xf32>
    %246 = tpu.reciprocal %245 {approx = true} : vector<40x128xf32> -> vector<40x128xf32>
    %247 = arith.mulf %245, %246 : vector<40x128xf32>
    %cst_48 = arith.constant 2.000000e+00 : f32
    %248 = vector.broadcast %cst_48 : f32 to vector<40x128xf32>
    %249 = arith.subf %248, %247 : vector<40x128xf32>
    %250 = arith.mulf %246, %249 : vector<40x128xf32>
    %251 = arith.mulf %245, %250 : vector<40x128xf32>
    %cst_49 = arith.constant 2.000000e+00 : f32
    %252 = vector.broadcast %cst_49 : f32 to vector<40x128xf32>
    %253 = arith.subf %252, %251 : vector<40x128xf32>
    %254 = arith.mulf %250, %253 : vector<40x128xf32>
    %cst_50 = arith.constant 0.000000e+00 : f32
    %255 = vector.broadcast %cst_50 : f32 to vector<40x128xf32>
    %256 = arith.cmpf oge, %239, %255 : vector<40x128xf32>
    %257 = arith.mulf %243, %254 : vector<40x128xf32>
    %258 = arith.select %256, %254, %257 : vector<40x128xi1>, vector<40x128xf32>
    %c0_51 = arith.constant 0 : index
    %c0_52 = arith.constant 0 : index
    %259 = vector.load %arg3[%c0_51, %c0_52] : memref<40x128xf32, #tpu.memory_space<vmem>>, vector<40x128xf32>
    tpu.vector_store %arg3[%c0_51, %c0_52], %258 {strides = array<i32>} : memref<40x128xf32, #tpu.memory_space<vmem>>, vector<40x128xf32>,
    return
  }
  func.func @transform_0(%arg0: i32) -> (i32, i32) {
    %c0_i32 = arith.constant 0 : i32
    %c0_i32_0 = arith.constant 0 : i32
    return %c0_i32, %arg0 : i32, i32
  }
  func.func @transform_1(%arg0: i32) -> (i32, i32) {
    %c0_i32 = arith.constant 0 : i32
    %c0_i32_0 = arith.constant 0 : i32
    %c0_i32_1 = arith.constant 0 : i32
    return %c0_i32, %c0_i32_0 : i32, i32
  }
  func.func @transform_2(%arg0: i32) -> (i32, i32) {
    %c0_i32 = arith.constant 0 : i32
    %c0_i32_0 = arith.constant 0 : i32
    return %c0_i32, %arg0 : i32, i32
  }
}

</mosaic_0001>

<bundles_post_ra>
// kernel: tpu_custom_call.1
= control target key start
LH: loop header
LB: loop body
LE: loop exit
PB: predicated region body
PF: predicated region fallthrough
CT: control target
= control target key end

     0   :  { %7 = vsyncpa [#allocation3], 0  ;;  %s3966_s0 = inlined_call_operand.hbm [shape: f32[40,128], index: 0, kind: input, shape index: {}]   ;;  %s3967_s1 = inlined_call_operand.hbm [shape: f32[120,128], index: 1, kind: input, shape index: {}]   ;;  %s3968_s2 = inlined_call_operand.hbm [shape: f32[40,128], index: 2, kind: output, shape index: {}]  }
   0x1   :  { %8 = vsyncpa [#allocation6], 0 }
   0x2   :  { %9 = vsyncpa [#allocation4], 0  ;;  %s14_s11 = sshll.u32 %s3966_s0, 4  ;;  %s2119_s12 = smov [#allocation2]   ;;  %s15_s11 = int_to_ptr.hbm [resolvable:$true] %s14_s11 }
   0x3   :  { %s16_s13 = sshll.u32 %s2119_s12, 4  ;;  %s27_s16 = sshll.u32 %s3967_s1, 4  ;;  %s17_s13 = int_to_ptr.vmem [resolvable:$true] %s16_s13  ;;  %s28_s16 = int_to_ptr.hbm [resolvable:$true] %s27_s16 }
   0x4   :  { %s2120_s17 = smov 128   ;;  %s2121_s18 = smov 8  }
   0x5   :  { %22 = dma.hbm_to_vmem [thread:$0]  %s15_s11, 640, %s17_s13, [#allocation3], %s2120_s17, %s2120_s17, %s2121_s18  }
   0x6   :  { %s2122_s19 = smov [#allocation5]  }
   0x7   :  { %s29_s20 = sshll.u32 %s2122_s19, 4  ;;  %s30_s20 = int_to_ptr.vmem [resolvable:$true] %s29_s20 }
   0x8   :  { %35 = dma.hbm_to_vmem [thread:$0]  %s28_s16, 1920, %s30_s20, [#allocation6], %s2120_s17, %s2120_s17, %s2121_s18  }
   0x9   :  { %2113 = dma.done.wait [#allocation3], 640  }
   0xa   :  { %2114 = vsyncadd [#allocation3], 4294966656 }
   0xb   :  { %2115 = dma.done.wait [#allocation6], 1920  }
   0xc   :  { %2116 = vsyncadd [#allocation6], 4294965376  ;;  %v2123_v0 = vmov 40   ;;  %v2165_v1 = vld [vmem:[#allocation2 + $0x20] sm:$0xff]  ;;  %v2167_v2 = vld [vmem:[#allocation2 + $0x18] sm:$0xff]  ;;  %s2124_s0 = smov 64  }
   0xd   :  { %1821 = vset.pattern.permute.xlu0 %v2123_v0  ;;  %66 = vmatpush.msra.mxu0 %v2165_v1  ;;  %v2170_v3 = vld [vmem:[#allocation2 + $0x10] sm:$0xff]  ;;  %v50_v4 = vld [vmem:[#allocation5] sm:$0x1f]  ;;  %v108_v5 = vld [vmem:[#allocation5 + $0x10] sm:$0xff]  ;;  %vm51_vm0 = vcmask 326656   ;;  %vm81_vm1 = vcmask 1044480  }
   0xe   :  { %77 = vperm.xlu0 %1821, %v50_v4   ;;  %v111_v6 = vld [vmem:[#allocation5 + $0x28] sm:$0xff]  ;;  %v2173_v7 = vld [vmem:[#allocation2 + $0x8] sm:$0xff]  ;;  %120 = vrot.lane.b32.xlu1 %v108_v5, %s2124_s0  ;;  %v2176_v8 = vld [vmem:[#allocation2] sm:$0xff]  ;;  %v2125_v40 = vmov 8   ;;  %vm128_vm2 = vcmask 39936   ;;  %v2126_v52 = vmov 11  }
   0xf   :  { %67 = vmatpush.msra.mxu0 %v2167_v2  ;;  %126 = vrot.lane.b32.xlu2 %v111_v6, %s2124_s0  ;;  %v49_v9 = vld [vmem:[#allocation5] sm:$0xff]  ;;  %v107_v10 = vld [vmem:[#allocation5 + $0x8] sm:$0xff]  ;;  %v109_v11 = vld [vmem:[#allocation5 + $0x18] sm:$0xff]  ;;  %v2127_v54 = vmov 9   ;;  %v2128_v56 = vmov 12   ;;  %v2129_v59 = vmov 13  }
  0x10   :  { %v110_v12 = vld [vmem:[#allocation5 + $0x20] sm:$0xff]  ;;  %1823 = vset.pattern.permute.xlu1 %v2125_v40  ;;  %1824 = vset.pattern.permute.xlu2 %v2125_v40  ;;  %v2186_v42 = vld [vmem:[#allocation5 + $0x48] sm:$0xff]  ;;  %v2191_v46 = vld [vmem:[#allocation5 + $0x50] sm:$0xff]  ;;  %v2130_v5 = vmov 14   ;;  %vm210_vm3 = vcmask 64512   ;;  %s2137_s1 = smov [#allocation7]  }
  0x11   :  { %68 = vmatpush.msra.mxu0 %v2170_v3  ;;  %v2183_v38 = vld [vmem:[#allocation5 + $0x40] sm:$0xff]  ;;  %v2196_v48 = vld [vmem:[#allocation5 + $0x58] sm:$0xff]  ;;  %v2199_v49 = vld [vmem:[#allocation5 + $0x68] sm:$0xff]  ;;  %s1755_s21 = sshll.u32 %s2137_s1, 4  ;;  %s1757_s24 = sshll.u32 %s3968_s2, 4  ;;  %s1756_s21 = int_to_ptr.vmem [resolvable:$true] %s1755_s21  ;;  %s1758_s24 = int_to_ptr.hbm [resolvable:$true] %s1757_s24 }
  0x12   :  { %v2203_v50 = vld [vmem:[#allocation5 + $0x70] sm:$0xff]  ;;  %v2220_v55 = vld [vmem:[#allocation5 + $0x38] sm:$0xff]  ;;  %v2225_v57 = vld [vmem:[#allocation5 + $0x60] sm:$0xff] }
  0x13   :  { %69 = vmatpush.msra.mxu0 %v2173_v7 }
  0x15   :  { %70 = vmatpush.msra.mxu0 %v2176_v8 }
  0x16   :  { %1771 = vmatmul.msk.f32.vlgmr.msra.gmra.mxu0 %vm51_vm0, %v49_v9  ;;  %118 = vrot.lane.b32.xlu0 %v107_v10, %s2124_s0  ;;  %v112_v10 = vld [vmem:[#allocation5 + $0x30] sm:$0xff] }
  0x17   :  { %122 = vrot.lane.b32.xlu1 %v109_v11, %s2124_s0  ;;  %124 = vrot.lane.b32.xlu2 %v110_v12, %s2124_s0 }
  0x18   :  { %1822 = vset.pattern.permute.xlu0 %v2125_v40 }
  0x1e   :  { %289 = vperm.xlu0 %1822, %v2220_v55  }
  0x1f   :  { %293 = vperm.xlu1 %1823, %v2183_v38   ;;  %297 = vperm.xlu2 %1824, %v2186_v42  }
  0x26   :  { %309 = vperm.xlu0 %1822, %v2225_v57  }
  0x27   :  { %301 = vperm.xlu1 %1823, %v2191_v46   ;;  %305 = vperm.xlu2 %1824, %v2196_v48  }
  0x2e   :  { %1825 = vset.pattern.permute.xlu0 %v2126_v52 }
  0x2f   :  { %313 = vperm.xlu1 %1823, %v2199_v49   ;;  %317 = vperm.xlu2 %1824, %v2203_v50  }
  0x30   :  { %442 = vperm.xlu0 %1825, %v2220_v55  }
  0x37   :  { %1826 = vset.pattern.permute.xlu1 %v2126_v52  ;;  %1827 = vset.pattern.permute.xlu2 %v2126_v52 }
  0x38   :  { %446 = vperm.xlu1 %1826, %v2183_v38   ;;  %450 = vperm.xlu2 %1827, %v2186_v42  }
  0x39   :  { %462 = vperm.xlu0 %1825, %v2225_v57  }
  0x40   :  { %454 = vperm.xlu1 %1826, %v2191_v46   ;;  %458 = vperm.xlu2 %1827, %v2196_v48  }
  0x41   :  { %1828 = vset.pattern.permute.xlu0 %v2127_v54 }
  0x42   :  { %490 = vperm.xlu0 %1828, %v2220_v55  }
  0x48   :  { %466 = vperm.xlu1 %1826, %v2199_v49   ;;  %470 = vperm.xlu2 %1827, %v2203_v50  }
  0x4a   :  { %510 = vperm.xlu0 %1828, %v2225_v57  }
  0x50   :  { %1829 = vset.pattern.permute.xlu1 %v2127_v54  ;;  %1830 = vset.pattern.permute.xlu2 %v2127_v54 }
  0x51   :  { %494 = vperm.xlu1 %1829, %v2183_v38   ;;  %498 = vperm.xlu2 %1830, %v2186_v42  }
  0x52   :  { %1831 = vset.pattern.permute.xlu0 %v2128_v56 }
  0x53   :  { %611 = vperm.xlu0 %1831, %v2220_v55  }
  0x59   :  { %502 = vperm.xlu1 %1829, %v2191_v46   ;;  %506 = vperm.xlu2 %1830, %v2196_v48  }
  0x5b   :  { %631 = vperm.xlu0 %1831, %v2225_v57  }
  0x61   :  { %514 = vperm.xlu1 %1829, %v2199_v49   ;;  %518 = vperm.xlu2 %1830, %v2203_v50  }
  0x63   :  { %1834 = vset.pattern.permute.xlu0 %v2129_v59 }
  0x64   :  { %748 = vperm.xlu0 %1834, %v2220_v55  }
  0x69   :  { %v127_v45 = vpop.permute.xlu2 %126  ;;  %1832 = vset.pattern.permute.xlu1 %v2128_v56  ;;  %1833 = vset.pattern.permute.xlu2 %v2128_v56 }
  0x6a   :  { %615 = vperm.xlu1 %1832, %v2183_v38   ;;  %619 = vperm.xlu2 %1833, %v2186_v42  }
  0x6c   :  { %768 = vperm.xlu0 %1834, %v2225_v57  }
  0x71   :  { %v125_v53 = vpop.permute.xlu2 %124 }
  0x72   :  { %623 = vperm.xlu1 %1832, %v2191_v46   ;;  %627 = vperm.xlu2 %1833, %v2196_v48  }
  0x74   :  { %1837 = vset.pattern.permute.xlu0 %v2130_v5 }
  0x75   :  { %885 = vperm.xlu0 %1837, %v2220_v55  }
  0x79   :  { %v2273_v12 = vpop.permute.xlu2 %297 }
  0x7a   :  { %635 = vperm.xlu1 %1832, %v2199_v49   ;;  %639 = vperm.xlu2 %1833, %v2203_v50  }
  0x7d   :  { %905 = vperm.xlu0 %1837, %v2225_v57  }
  0x80   :  { %v78_v13 = vpop.permute.xlu0 %77  ;;  %v121_v47 = vpop.permute.xlu1 %120 }
  0x82   :  { %1835 = vset.pattern.permute.xlu1 %v2129_v59  ;;  %1836 = vset.pattern.permute.xlu2 %v2129_v59 }
  0x83   :  { %752 = vperm.xlu1 %1835, %v2183_v38   ;;  %756 = vperm.xlu2 %1836, %v2186_v42  }
  0x88   :  { %v119_v43 = vpop.permute.xlu0 %118 }
  0x89   :  { %v123_v51 = vpop.permute.xlu1 %122 }
  0x8b   :  { %760 = vperm.xlu1 %1835, %v2191_v46   ;;  %764 = vperm.xlu2 %1836, %v2196_v48  }
  0x93   :  { %v72_v14 = vpop.f32.mrf.mxu0  ;;  %772 = vperm.xlu1 %1835, %v2199_v49   ;;  %776 = vperm.xlu2 %1836, %v2203_v50  }
  0x94   :  { %v80_v15 = vadd.f32 %v78_v13, %v72_v14  ;;  %v2134_v14 = vmov 18  }
  0x96   :  { %v82_v16 = vsel %vm81_vm1, %v80_v15, -inf }
  0x97   :  { %v83_v17 = vrot.slane %v82_v16, 4 }
  0x99   :  { %v84_v18 = vmax.f32 %v82_v16, %v83_v17 }
  0x9b   :  { %v85_v19 = vrot.slane %v84_v18, 2  ;;  %1838 = vset.pattern.permute.xlu1 %v2130_v5  ;;  %1839 = vset.pattern.permute.xlu2 %v2130_v5 }
  0x9c   :  { %889 = vperm.xlu1 %1838, %v2183_v38   ;;  %893 = vperm.xlu2 %1839, %v2186_v42  }
  0x9d   :  { %v86_v20 = vmax.f32 %v84_v18, %v85_v19 }
  0x9f   :  { %v87_v21 = vrot.slane %v86_v20, 1 }
  0xa1   :  { %v88_v22 = vmax.f32 %v86_v20, %v87_v21 }
  0xa3   :  { %v89_v23 = vsub.f32 %v80_v15, %v88_v22  ;;  %v2280_v15 = vpop.permute.xlu2 %305 }
  0xa4   :  { %897 = vperm.xlu1 %1838, %v2191_v46   ;;  %901 = vperm.xlu2 %1839, %v2196_v48  }
  0xa5   :  { %v90_v24 = vmul.f32 1.442695, %v89_v23 }
  0xa7   :  { %1868 = vpow2.f32 %v90_v24 }
  0xab   :  { %v2289_v17 = vpop.permute.xlu2 %317 }
  0xac   :  { %909 = vperm.xlu1 %1838, %v2199_v49   ;;  %913 = vperm.xlu2 %1839, %v2203_v50  }
  0xad   :  { %v1869_v25 = vpop.eup %1868 }
  0xae   :  { %v92_v26 = vsel %vm81_vm1, %v1869_v25, 0.0 }
  0xaf   :  { %v93_v27 = vrot.slane %v92_v26, 4 }
  0xb1   :  { %v94_v28 = vadd.f32 %v93_v27, %v92_v26 }
  0xb3   :  { %v95_v29 = vrot.slane %v94_v28, 2  ;;  %v2296_v19 = vpop.permute.xlu2 %450 }
  0xb5   :  { %v96_v30 = vadd.f32 %v95_v29, %v94_v28 }
  0xb7   :  { %v97_v31 = vrot.slane %v96_v30, 1 }
  0xb9   :  { %v98_v32 = vadd.f32 %v97_v31, %v96_v30 }
  0xbb   :  { %1870 = vrcp.f32 %v98_v32  ;;  %v2304_v21 = vpop.permute.xlu2 %458 }
  0xbc   :  { %3996 = vst [vmem:[#allocation14_spill] sm:$0xff] %v2304_v21 }
  0xc1   :  { %v1871_v33 = vpop.eup %1870 }
  0xc2   :  { %v100_v34 = vmul.f32 %v1871_v33, %v98_v32 }
  0xc3   :  { %v2311_v23 = vpop.permute.xlu2 %470 }
  0xc4   :  { %v101_v35 = vsub.f32 2.0, %v100_v34  ;;  %3997 = vst [vmem:[#allocation15_spill] sm:$0xff] %v2311_v23 }
  0xc6   :  { %v102_v36 = vmul.f32 %v1871_v33, %v101_v35 }
  0xc8   :  { %v103_v37 = vmul.f32 %v102_v36, %v98_v32  ;;  %v2135_v32 = vmov 10  }
  0xca   :  { %v104_v39 = vsub.f32 2.0, %v103_v37 }
  0xcc   :  { %v105_v41 = vmul.f32 %v104_v39, %v102_v36 }
  0xce   :  { %v106_v44 = vmul.f32 %v1869_v25, %v105_v41  ;;  %v2317_v25 = vpop.permute.xlu2 %498 }
  0xd0   :  { %1772 = vmatpush.msk.msra.mxu1 %vm81_vm1, %v106_v44  ;;  %1792 = vmatpush.msk.msra.mxu2 %vm81_vm1, %v106_v44 }
  0xd1   :  { %1773 = vmatmul.msk.f32.vlgmr.msra.gmra.mxu1 %vm128_vm2, %v119_v43  ;;  %1777 = vmatmul.msk.f32.vlgmr.msra.gmra.mxu2 %vm128_vm2, %v127_v45 }
  0xd6   :  { %v2323_v27 = vpop.permute.xlu2 %506 }
  0xd9   :  { %1774 = vmatmul.msk.f32.gmra.mxu1 %vm128_vm2, %v121_v47 }
  0xde   :  { %v2336_v30 = vpop.permute.xlu2 %518 }
  0xe1   :  { %1775 = vmatmul.msk.f32.gmra.mxu1 %vm128_vm2, %v123_v51 }
  0xe6   :  { %v2346_v33 = vpop.permute.xlu2 %619 }
  0xe9   :  { %1776 = vmatmul.msk.f32.gmra.mxu1 %vm128_vm2, %v125_v53 }
  0xee   :  { %v2356_v35 = vpop.permute.xlu2 %627 }
  0xef   :  { %4001 = vst [vmem:[#allocation19_spill] sm:$0xff] %v2356_v35 }
  0xf6   :  { %v2364_v37 = vpop.permute.xlu2 %639 }
  0xf7   :  { %4003 = vst [vmem:[#allocation21_spill] sm:$0xff] %v2364_v37 }
  0xfe   :  { %v2374_v40 = vpop.permute.xlu2 %756 }
 0x106   :  { %v2380_v44 = vpop.permute.xlu2 %764 }
 0x107   :  { %4006 = vst [vmem:[#allocation24_spill] sm:$0xff] %v2380_v44 }
 0x14e   :  { %v159_v58 = vpop.f32.mrf.mxu1 }
 0x14f   :  { %v174_v9 = vmul.f32 %v159_v58, %v2176_v8  ;;  %v2265_v8 = vpop.permute.xlu1 %293 }
 0x154   :  { %v171_v60 = vpop.f32.mrf.mxu2 }
 0x155   :  { %v178_v61 = vmul.f32 %v171_v60, %v2165_v1 }
 0x156   :  { %v162_v62 = vpop.f32.mrf.mxu1 }
 0x157   :  { %193 = vmatpush.msrb.mxu2 %v178_v61  ;;  %v175_v6 = vmul.f32 %v162_v62, %v2173_v7  ;;  %v2133_v7 = vmov 17   ;;  %v2270_v11 = vpop.permute.xlu1 %301 }
 0x15e   :  { %v165_v63 = vpop.f32.mrf.mxu1 }
 0x15f   :  { %v176_v1 = vmul.f32 %v165_v63, %v2170_v3  ;;  %v2132_v3 = vmov 16   ;;  %v2278_v13 = vpop.permute.xlu1 %313 }
 0x166   :  { %v168_v0 = vpop.f32.mrf.mxu1 }
 0x167   :  { %v177_v4 = vmul.f32 %v168_v0, %v2167_v2  ;;  %v2131_v2 = vmov 15   ;;  %v2285_v16 = vpop.permute.xlu1 %446 }
 0x168   :  { %1841 = vset.pattern.permute.xlu1 %v2131_v2  ;;  %1842 = vset.pattern.permute.xlu2 %v2131_v2  ;;  %3993 = vst [vmem:[#allocation11_spill] sm:$0xff] %v2285_v16 }
 0x169   :  { %194 = vmatpush.msrb.mxu2 %v177_v4  ;;  %1050 = vperm.xlu1 %1841, %v2203_v50  }
 0x16a   :  { %1046 = vperm.xlu2 %1842, %v2199_v49   ;;  %1840 = vset.pattern.permute.xlu0 %v2131_v2 }
 0x16b   :  { %195 = vmatpush.msrb.mxu2 %v176_v1  ;;  %1022 = vperm.xlu0 %1840, %v2220_v55  }
 0x16d   :  { %196 = vmatpush.msrb.mxu2 %v175_v6 }
 0x16f   :  { %197 = vmatpush.msrb.mxu2 %v174_v9  ;;  %v2292_v18 = vpop.permute.xlu1 %454 }
 0x170   :  { %1778 = vmatmul.msk.f32.vlgmr.msrb.gmra.mxu2 %vm51_vm0, %v112_v10  ;;  %3994 = vst [vmem:[#allocation12_spill] sm:$0xff] %v2292_v18 }
 0x171   :  { %1843 = vset.pattern.permute.xlu1 %v2132_v3 }
 0x172   :  { %1187 = vperm.xlu1 %1843, %v2203_v50   ;;  %1042 = vperm.xlu2 %1842, %v2225_v57  }
 0x173   :  { %1030 = vperm.xlu0 %1840, %v2186_v42  }
 0x177   :  { %v2299_v20 = vpop.permute.xlu1 %466 }
 0x178   :  { %3995 = vst [vmem:[#allocation13_spill] sm:$0xff] %v2299_v20 }
 0x17a   :  { %1844 = vset.pattern.permute.xlu1 %v2133_v7  ;;  %1038 = vperm.xlu2 %1842, %v2196_v48  }
 0x17b   :  { %1324 = vperm.xlu1 %1844, %v2203_v50   ;;  %1851 = vset.pattern.permute.xlu0 %v2132_v3 }
 0x17c   :  { %1183 = vperm.xlu0 %1851, %v2199_v49  }
 0x17f   :  { %v2306_v22 = vpop.permute.xlu1 %494 }
 0x182   :  { %1846 = vset.pattern.permute.xlu2 %v2133_v7 }
 0x183   :  { %1845 = vset.pattern.permute.xlu1 %v2132_v3  ;;  %1320 = vperm.xlu2 %1846, %v2199_v49  }
 0x184   :  { %1179 = vperm.xlu1 %1845, %v2225_v57   ;;  %1167 = vperm.xlu0 %1851, %v2186_v42  }
 0x187   :  { %v2313_v24 = vpop.permute.xlu1 %502 }
 0x18b   :  { %1848 = vset.pattern.permute.xlu2 %v2132_v3 }
 0x18c   :  { %1847 = vset.pattern.permute.xlu1 %v2131_v2  ;;  %1175 = vperm.xlu2 %1848, %v2196_v48  }
 0x18d   :  { %1034 = vperm.xlu1 %1847, %v2191_v46   ;;  %1856 = vset.pattern.permute.xlu0 %v2134_v14 }
 0x18e   :  { %1461 = vperm.xlu0 %1856, %v2203_v50  }
 0x18f   :  { %v2321_v26 = vpop.permute.xlu1 %514 }
 0x194   :  { %1850 = vset.pattern.permute.xlu2 %v2134_v14 }
 0x195   :  { %1849 = vset.pattern.permute.xlu1 %v2133_v7  ;;  %1457 = vperm.xlu2 %1850, %v2199_v49  }
 0x196   :  { %1316 = vperm.xlu1 %1849, %v2225_v57   ;;  %1445 = vperm.xlu0 %1856, %v2191_v46  }
 0x197   :  { %v2326_v28 = vpop.permute.xlu1 %615 }
 0x198   :  { %3998 = vst [vmem:[#allocation16_spill] sm:$0xff] %v2326_v28 }
 0x19d   :  { %1853 = vset.pattern.permute.xlu2 %v2133_v7 }
 0x19e   :  { %1852 = vset.pattern.permute.xlu1 %v2132_v3  ;;  %1312 = vperm.xlu2 %1853, %v2196_v48  }
 0x19f   :  { %1171 = vperm.xlu1 %1852, %v2191_v46   ;;  %1437 = vperm.xlu0 %1856, %v2183_v38   ;;  %v2338_v31 = vpop.permute.xlu1 %623 }
 0x1a0   :  { %3999 = vst [vmem:[#allocation17_spill] sm:$0xff] %v2338_v31 }
 0x1a6   :  { %1855 = vset.pattern.permute.xlu2 %v2131_v2 }
 0x1a7   :  { %1854 = vset.pattern.permute.xlu1 %v2134_v14  ;;  %1026 = vperm.xlu2 %1855, %v2183_v38   ;;  %v2349_v34 = vpop.permute.xlu1 %635 }
 0x1a8   :  { %1453 = vperm.xlu1 %1854, %v2225_v57   ;;  %1863 = vset.pattern.permute.xlu0 %v2135_v32  ;;  %4000 = vst [vmem:[#allocation18_spill] sm:$0xff] %v2349_v34 }
 0x1a9   :  { %1593 = vperm.xlu0 %1863, %v2199_v49  }
 0x1af   :  { %1858 = vset.pattern.permute.xlu2 %v2134_v14  ;;  %v2360_v36 = vpop.permute.xlu1 %752 }
 0x1b0   :  { %1857 = vset.pattern.permute.xlu1 %v2133_v7  ;;  %1449 = vperm.xlu2 %1858, %v2196_v48   ;;  %4002 = vst [vmem:[#allocation20_spill] sm:$0xff] %v2360_v36 }
 0x1b1   :  { %1308 = vperm.xlu1 %1857, %v2191_v46   ;;  %1573 = vperm.xlu0 %1863, %v2183_v38  }
 0x1b7   :  { %v2368_v39 = vpop.permute.xlu1 %760 }
 0x1b8   :  { %1860 = vset.pattern.permute.xlu2 %v2133_v7  ;;  %4004 = vst [vmem:[#allocation22_spill] sm:$0xff] %v2368_v39 }
 0x1b9   :  { %1859 = vset.pattern.permute.xlu1 %v2132_v3  ;;  %1304 = vperm.xlu2 %1860, %v2186_v42  }
 0x1ba   :  { %1163 = vperm.xlu1 %1859, %v2183_v38  }
 0x1bf   :  { %v2376_v41 = vpop.permute.xlu1 %772 }
 0x1c0   :  { %4005 = vst [vmem:[#allocation23_spill] sm:$0xff] %v2376_v41 }
 0x1c1   :  { %1300 = vperm.xlu2 %1860, %v2183_v38  }
 0x1c2   :  { %1159 = vperm.xlu1 %1859, %v2220_v55  }
 0x1c9   :  { %1296 = vperm.xlu2 %1860, %v2220_v55  }
 0x1ca   :  { %1861 = vset.pattern.permute.xlu1 %v2134_v14 }
 0x1cb   :  { %1441 = vperm.xlu1 %1861, %v2186_v42  }
 0x1d1   :  { %1862 = vset.pattern.permute.xlu2 %v2135_v32 }
 0x1d2   :  { %1597 = vperm.xlu2 %1862, %v2203_v50  }
 0x1d3   :  { %1433 = vperm.xlu1 %1861, %v2220_v55  }
 0x1da   :  { %1585 = vperm.xlu2 %1862, %v2196_v48  }
 0x1db   :  { %1864 = vset.pattern.permute.xlu1 %v2135_v32 }
 0x1dc   :  { %1589 = vperm.xlu1 %1864, %v2225_v57  }
 0x1e2   :  { %1577 = vperm.xlu2 %1862, %v2186_v42  }
 0x1e4   :  { %1581 = vperm.xlu1 %1864, %v2191_v46  }
 0x1ec   :  { %1569 = vperm.xlu1 %1864, %v2220_v55  }
 0x1f3   :  { %v2328_v29 = vpop.f32.mrf.mxu2 }
 0x1f4   :  { %250 = vmatpush.msrb.mxu1 %v2328_v29  ;;  %1793 = vmatpush.msra.mxu3 %v2328_v29  ;;  %v276_v59 = vrot.slane %v2328_v29, 4  ;;  %v2424_v10 = vperm.slane %v2328_v29, 0  ;;  %v2429_v14 = vperm.slane %v2328_v29, 1  ;;  %v2432_v32 = vperm.slane %v2328_v29, 2 }
 0x1f5   :  { %1779 = vmatmul.msk.f32.vlgmr.msrb.gmra.mxu1 %vm210_vm3, %v2220_v55  ;;  %1781 = vmatmul.msk.f32.vlgmr.msra.gmra.mxu3 %vm210_vm3, %v2186_v42  ;;  %v2382_v42 = vpop.permute.xlu1 %889 }
 0x1f6   :  { %4007 = vst [vmem:[#allocation25_spill] sm:$0xff] %v2382_v42  ;;  %v277_v61 = vmax.f32 %v2328_v29, %v276_v59  ;;  %v283_v62 = vmin.f32 %v2328_v29, %v276_v59  ;;  %v2435_v59 = vperm.slane %v2328_v29, 3  ;;  %v2515_v41 = vmul.f32 %v2424_v10, %v2265_v8 }
 0x1f7   :  { %v2527_v35 = vmul.f32 %v2429_v14, %v2265_v8  ;;  %v2531_v21 = vmul.f32 %v2432_v32, %v2265_v8  ;;  %v2583_v31 = vmul.f32 %v2432_v32, %v2270_v11 }
 0x1f8   :  { %v278_v0 = vrot.slane %v277_v61, 2  ;;  %v284_v4 = vrot.slane %v283_v62, 2  ;;  %v2549_v39 = vmul.f32 %v2435_v59, %v2265_v8  ;;  %v2587_v18 = vmul.f32 %v2435_v59, %v2270_v11 }
 0x1f9   :  { %4038 = vst [vmem:[#allocation56_spill] sm:$0xff] %v2583_v31 }
 0x1fa   :  { %v279_v5 = vmax.f32 %v277_v61, %v278_v0  ;;  %v285_v6 = vmin.f32 %v283_v62, %v284_v4  ;;  %v2438_v61 = vperm.slane %v2328_v29, 4  ;;  %v2441_v62 = vperm.slane %v2328_v29, 5  ;;  %4032 = vst [vmem:[#allocation50_spill] sm:$0xff] %v2549_v39 }
 0x1fb   :  { %v2444_v0 = vperm.slane %v2328_v29, 6  ;;  %v2447_v4 = vperm.slane %v2328_v29, 7  ;;  %4039 = vst [vmem:[#allocation57_spill] sm:$0xff] %v2587_v18 }
 0x1fc   :  { %v280_v3 = vrot.slane %v279_v5, 1  ;;  %v286_v7 = vrot.slane %v285_v6, 1  ;;  %v2655_v31 = vmul.f32 %v2438_v61, %v2270_v11 }
 0x1fd   :  { %1780 = vmatmul.msk.f32.gmra.mxu1 %vm210_vm3, %v2183_v38  ;;  %1782 = vmatmul.msk.f32.gmra.mxu3 %vm210_vm3, %v2191_v46  ;;  %v2370_v38 = vpop.permute.xlu0 %289  ;;  %v2386_v46 = vpop.permute.xlu2 %776  ;;  %4025 = vst [vmem:[#allocation43_spill] sm:$0xff] %v2447_v4  ;;  %v2503_v42 = vmul.f32 %v2444_v0, %v2273_v12  ;;  %v2511_v44 = vmul.f32 %v2447_v4, %v2317_v25 }
 0x1fe   :  { %4009 = vst [vmem:[#allocation27_spill] sm:$0xff] %v2386_v46  ;;  %v2388_v47 = vpop.permute.xlu1 %897  ;;  %v2465_v37 = vmul.f32 %v2424_v10, %v2370_v38  ;;  %v2469_v29 = vmul.f32 %v2429_v14, %v2370_v38  ;;  %v2473_v23 = vmul.f32 %v2432_v32, %v2370_v38  ;;  %v2663_v39 = vmul.f32 %v2444_v0, %v2270_v11 }
 0x1ff   :  { %4010 = vst [vmem:[#allocation28_spill] sm:$0xff] %v2388_v47 }
 0x200   :  { %4030 = vst [vmem:[#allocation48_spill] sm:$0xff] %v2511_v44 }
 0x201   :  { %4052 = vst [vmem:[#allocation70_spill] sm:$0xff] %v2655_v31 }
 0x202   :  { %4054 = vst [vmem:[#allocation72_spill] sm:$0xff] %v2663_v39 }
 0x205   :  { %1783 = vmatmul.msk.f32.gmra.mxu3 %vm210_vm3, %v2196_v48  ;;  %v2378_v43 = vpop.permute.xlu0 %309 }
 0x20d   :  { %1784 = vmatmul.msk.f32.gmra.mxu3 %vm210_vm3, %v2225_v57  ;;  %v2384_v45 = vpop.permute.xlu0 %442 }
 0x20e   :  { %4008 = vst [vmem:[#allocation26_spill] sm:$0xff] %v2384_v45 }
 0x215   :  { %1785 = vmatmul.msk.f32.gmra.mxu3 %vm210_vm3, %v2199_v49  ;;  %v2390_v48 = vpop.permute.xlu0 %462  ;;  %v2392_v49 = vpop.permute.xlu2 %893 }
 0x216   :  { %4011 = vst [vmem:[#allocation29_spill] sm:$0xff] %v2390_v48 }
 0x21d   :  { %1786 = vmatmul.msk.f32.gmra.mxu3 %vm210_vm3, %v2203_v50  ;;  %v2394_v50 = vpop.permute.xlu1 %909  ;;  %v2396_v51 = vpop.permute.xlu0 %490 }
 0x21e   :  { %4012 = vst [vmem:[#allocation30_spill] sm:$0xff] %v2394_v50  ;;  %v2398_v52 = vpop.permute.xlu2 %901  ;;  %v2507_v50 = vmul.f32 %v2447_v4, %v2273_v12  ;;  %v2599_v48 = vmul.f32 %v2429_v14, %v2396_v51  ;;  %v2603_v45 = vmul.f32 %v2432_v32, %v2396_v51 }
 0x21f   :  { %4013 = vst [vmem:[#allocation31_spill] sm:$0xff] %v2396_v51 }
 0x220   :  { %4014 = vst [vmem:[#allocation32_spill] sm:$0xff] %v2398_v52 }
 0x221   :  { %4042 = vst [vmem:[#allocation60_spill] sm:$0xff] %v2599_v48  ;;  %v2641_v48 = vmul.f32 %v2444_v0, %v2370_v38 }
 0x222   :  { %4043 = vst [vmem:[#allocation61_spill] sm:$0xff] %v2603_v45 }
 0x225   :  { %v2400_v53 = vpop.permute.xlu1 %1050  ;;  %v2402_v54 = vpop.permute.xlu0 %510 }
 0x226   :  { %4015 = vst [vmem:[#allocation33_spill] sm:$0xff] %v2400_v53  ;;  %v2404_v55 = vpop.permute.xlu2 %913  ;;  %v2455_v53 = vmax.f32 %v279_v5, %v280_v3  ;;  %v2461_v46 = vmul.f32 %v2429_v14, %v2402_v54  ;;  %v2477_v5 = vmul.f32 %v2424_v10, %v2273_v12  ;;  %v2485_v3 = vmul.f32 %v2432_v32, %v2273_v12 }
 0x227   :  { %4016 = vst [vmem:[#allocation34_spill] sm:$0xff] %v2404_v55  ;;  %v2457_v55 = vmin.f32 %v285_v6, %v286_v7  ;;  %v2481_v6 = vmul.f32 %v2429_v14, %v2273_v12  ;;  %v2489_v7 = vmul.f32 %v2435_v59, %v2273_v12 }
 0x228   :  { %4028 = vst [vmem:[#allocation46_spill] sm:$0xff] %v2461_v46  ;;  %v2519_v34 = vmul.f32 %v2370_v38, %v2455_v53  ;;  %v322_v28 = vmul.f32 %v2273_v12, %v2455_v53  ;;  %v2565_v46 = vmul.f32 %v2441_v62, %v2265_v8  ;;  %v2629_v18 = vmul.f32 %v2280_v15, %v2455_v53 }
 0x229   :  { %v2523_v20 = vmul.f32 %v2370_v38, %v2457_v55  ;;  %v330_v16 = vmul.f32 %v2273_v12, %v2457_v55  ;;  %v2545_v47 = vmul.f32 %v2265_v8, %v2457_v55  ;;  %v2633_v45 = vmul.f32 %v2280_v15, %v2457_v55 }
 0x22a   :  { %4035 = vst [vmem:[#allocation53_spill] sm:$0xff] %v2565_v46  ;;  %v2649_v46 = vmul.f32 %v2447_v4, %v2370_v38 }
 0x22b   :  { %4046 = vst [vmem:[#allocation64_spill] sm:$0xff] %v2629_v18  ;;  %v2741_v18 = vmul.f32 %v2435_v59, %v2402_v54 }
 0x22c   :  { %4047 = vst [vmem:[#allocation65_spill] sm:$0xff] %v2633_v45  ;;  %v2737_v45 = vmul.f32 %v2432_v32, %v2402_v54 }
 0x22d   :  { %v2406_v56 = vpop.permute.xlu1 %1187  ;;  %v2408_v57 = vpop.permute.xlu0 %611  ;;  %4050 = vst [vmem:[#allocation68_spill] sm:$0xff] %v2649_v46 }
 0x22e   :  { %4017 = vst [vmem:[#allocation35_spill] sm:$0xff] %v2406_v56  ;;  %v2410_v58 = vpop.permute.xlu2 %1046 }
 0x22f   :  { %4018 = vst [vmem:[#allocation36_spill] sm:$0xff] %v2408_v57  ;;  %v2621_v57 = vmul.f32 %v2438_v61, %v2396_v51 }
 0x230   :  { %4019 = vst [vmem:[#allocation37_spill] sm:$0xff] %v2410_v58  ;;  %v2497_v58 = vmul.f32 %v2441_v62, %v2273_v12 }
 0x231   :  { %4045 = vst [vmem:[#allocation63_spill] sm:$0xff] %v2621_v57  ;;  %v2645_v57 = vmul.f32 %v2444_v0, %v2396_v51 }
 0x232   :  { %4072 = vst [vmem:[#allocation90_spill] sm:$0xff] %v2737_v45  ;;  %v2758_v45 = vmul.f32 %v2444_v0, %v2378_v43 }
 0x233   :  { %4049 = vst [vmem:[#allocation67_spill] sm:$0xff] %v2645_v57  ;;  %v2675_v57 = vmul.f32 %v2424_v10, %v2280_v15 }
 0x234   :  { %4073 = vst [vmem:[#allocation91_spill] sm:$0xff] %v2741_v18  ;;  %v2762_v18 = vmul.f32 %v2444_v0, %v2402_v54 }
 0x235   :  { %v2413_v60 = vpop.permute.xlu1 %1324  ;;  %v2417_v63 = vpop.permute.xlu0 %631  ;;  %4057 = vst [vmem:[#allocation75_spill] sm:$0xff] %v2675_v57  ;;  %v2695_v57 = vmul.f32 %v2438_v61, %v2280_v15 }
 0x236   :  { %4020 = vst [vmem:[#allocation38_spill] sm:$0xff] %v2413_v60  ;;  %v2419_v1 = vpop.permute.xlu2 %1042  ;;  %v2451_v60 = vmul.f32 %v2402_v54, %v2424_v10 }
 0x237   :  { %4021 = vst [vmem:[#allocation39_spill] sm:$0xff] %v2417_v63  ;;  %v2577_v63 = vmul.f32 %v2429_v14, %v2270_v11 }
 0x238   :  { %4022 = vst [vmem:[#allocation40_spill] sm:$0xff] %v2419_v1  ;;  %v2557_v1 = vmul.f32 %v2270_v11, %v2455_v53 }
 0x239   :  { %4026 = vst [vmem:[#allocation44_spill] sm:$0xff] %v2451_v60  ;;  %v2573_v60 = vmul.f32 %v2424_v10, %v2270_v11 }
 0x23a   :  { %4037 = vst [vmem:[#allocation55_spill] sm:$0xff] %v2577_v63 }
 0x23b   :  { %4062 = vst [vmem:[#allocation80_spill] sm:$0xff] %v2695_v57  ;;  %v2717_v57 = vmul.f32 %v2429_v14, %v2378_v43 }
 0x23c   :  { %4077 = vst [vmem:[#allocation95_spill] sm:$0xff] %v2758_v45  ;;  %v2814_v45 = vmul.f32 %v2441_v62, %v2278_v13 }
 0x23d   :  { %v2421_v9 = vpop.permute.xlu1 %1179  ;;  %v2426_v2 = vpop.permute.xlu0 %748  ;;  %4067 = vst [vmem:[#allocation85_spill] sm:$0xff] %v2717_v57  ;;  %v2822_v57 = vmul.f32 %v2429_v14, %v2313_v24 }
 0x23e   :  { %4023 = vst [vmem:[#allocation41_spill] sm:$0xff] %v2421_v9  ;;  %v2453_v56 = vpop.permute.xlu2 %1038  ;;  %v2553_v9 = vmul.f32 %v2438_v61, %v2265_v8 }
 0x23f   :  { %4024 = vst [vmem:[#allocation42_spill] sm:$0xff] %v2426_v2  ;;  %v2591_v2 = vmul.f32 %v2396_v51, %v2424_v10 }
 0x240   :  { %4027 = vst [vmem:[#allocation45_spill] sm:$0xff] %v2453_v56  ;;  %v2493_v56 = vmul.f32 %v2438_v61, %v2273_v12  ;;  %v2561_v12 = vmul.f32 %v2270_v11, %v2457_v55 }
 0x241   :  { %4033 = vst [vmem:[#allocation51_spill] sm:$0xff] %v2553_v9 }
 0x242   :  { %4034 = vst [vmem:[#allocation52_spill] sm:$0xff] %v2561_v12  ;;  %v2852_v12 = vmul.f32 %v2289_v17, %v2455_v53 }
 0x243   :  { %4040 = vst [vmem:[#allocation58_spill] sm:$0xff] %v2591_v2  ;;  %v2609_v2 = vmul.f32 %v2435_v59, %v2370_v38 }
 0x244   :  { %4078 = vst [vmem:[#allocation96_spill] sm:$0xff] %v2762_v18  ;;  %v2784_v18 = vmul.f32 %v2432_v32, %v2278_v13 }
 0x245   :  { %v2499_v52 = vpop.permute.xlu1 %1034  ;;  %v2533_v36 = vpop.permute.xlu0 %768  ;;  %4087 = vst [vmem:[#allocation105_spill] sm:$0xff] %v2814_v45  ;;  %v2832_v45 = vmul.f32 %v2435_v59, %v2313_v24 }
 0x246   :  { %4029 = vst [vmem:[#allocation47_spill] sm:$0xff] %v2499_v52  ;;  %v2541_v52 = vmul.f32 %v2265_v8, %v2455_v53  ;;  %v2593_v44 = vpop.permute.xlu2 %1320 }
 0x247   :  { %4031 = vst [vmem:[#allocation49_spill] sm:$0xff] %v2533_v36  ;;  %v2569_v36 = vmul.f32 %v2444_v0, %v2265_v8 }
 0x248   :  { %4041 = vst [vmem:[#allocation59_spill] sm:$0xff] %v2593_v44  ;;  %v2625_v44 = vmul.f32 %v2441_v62, %v2370_v38 }
 0x249   :  { %4036 = vst [vmem:[#allocation54_spill] sm:$0xff] %v2569_v36  ;;  %v338_v36 = vmax.f32 %v322_v28, %v330_v16  ;;  %v2613_v16 = vmul.f32 %v2435_v59, %v2396_v51  ;;  %v2617_v28 = vmul.f32 %v2438_v61, %v2370_v38  ;;  %v2671_v38 = vmul.f32 %v2447_v4, %v2313_v24 }
 0x24a   :  { %4083 = vst [vmem:[#allocation101_spill] sm:$0xff] %v2784_v18  ;;  %v2808_v18 = vmul.f32 %v2278_v13, %v2457_v55 }
 0x24b   :  { %4044 = vst [vmem:[#allocation62_spill] sm:$0xff] %v2613_v16  ;;  %v2637_v16 = vmul.f32 %v2441_v62, %v2396_v51  ;;  %v2667_v51 = vmul.f32 %v2447_v4, %v2270_v11 }
 0x24c   :  { %4056 = vst [vmem:[#allocation74_spill] sm:$0xff] %v2671_v38  ;;  %v2691_v38 = vmul.f32 %v2435_v59, %v2280_v15 }
 0x24d   :  { %4048 = vst [vmem:[#allocation66_spill] sm:$0xff] %v2637_v16  ;;  %v2651_v9 = vpop.permute.xlu1 %1316  ;;  %v2659_v16 = vmul.f32 %v2441_v62, %v2270_v11  ;;  %v2685_v39 = vpop.permute.xlu0 %885  ;;  %v2709_v11 = vmul.f32 %v2447_v4, %v2306_v22 }
 0x24e   :  { %4051 = vst [vmem:[#allocation69_spill] sm:$0xff] %v2651_v9  ;;  %v2679_v9 = vmul.f32 %v2429_v14, %v2280_v15 }
 0x24f   :  { %4053 = vst [vmem:[#allocation71_spill] sm:$0xff] %v2659_v16  ;;  %v2683_v16 = vmul.f32 %v2432_v32, %v2280_v15 }
 0x250   :  { %4055 = vst [vmem:[#allocation73_spill] sm:$0xff] %v2667_v51 }
 0x251   :  { %4058 = vst [vmem:[#allocation76_spill] sm:$0xff] %v2679_v9  ;;  %v2699_v9 = vmul.f32 %v2441_v62, %v2280_v15 }
 0x252   :  { %4059 = vst [vmem:[#allocation77_spill] sm:$0xff] %v2683_v16  ;;  %v2705_v16 = vmul.f32 %v2447_v4, %v2265_v8  ;;  %v2725_v8 = vmul.f32 %v2435_v59, %v2378_v43 }
 0x253   :  { %4060 = vst [vmem:[#allocation78_spill] sm:$0xff] %v2685_v39 }
 0x254   :  { %4061 = vst [vmem:[#allocation79_spill] sm:$0xff] %v2691_v38  ;;  %v2713_v38 = vmul.f32 %v2424_v10, %v2378_v43 }
 0x255   :  { %4063 = vst [vmem:[#allocation81_spill] sm:$0xff] %v2699_v9  ;;  %v2721_v9 = vmul.f32 %v2432_v32, %v2378_v43 }
 0x256   :  { %4064 = vst [vmem:[#allocation82_spill] sm:$0xff] %v2705_v16  ;;  %v2729_v16 = vmul.f32 %v2438_v61, %v2378_v43 }
 0x257   :  { %4065 = vst [vmem:[#allocation83_spill] sm:$0xff] %v2709_v11  ;;  %v2733_v11 = vmul.f32 %v2441_v62, %v2378_v43 }
 0x258   :  { %4066 = vst [vmem:[#allocation84_spill] sm:$0xff] %v2713_v38  ;;  %v2824_v38 = vpop.permute.xlu0 %905 }
 0x259   :  { %4068 = vst [vmem:[#allocation86_spill] sm:$0xff] %v2721_v9  ;;  %v2745_v9 = vmul.f32 %v2438_v61, %v2402_v54 }
 0x25a   :  { %4069 = vst [vmem:[#allocation87_spill] sm:$0xff] %v2725_v8  ;;  %v2749_v8 = vmul.f32 %v2441_v62, %v2402_v54 }
 0x25b   :  { %4070 = vst [vmem:[#allocation88_spill] sm:$0xff] %v2729_v16  ;;  %v2751_v16 = vpop.permute.xlu2 %1175 }
 0x25c   :  { %4071 = vst [vmem:[#allocation89_spill] sm:$0xff] %v2733_v11 }
 0x25d   :  { %4074 = vst [vmem:[#allocation92_spill] sm:$0xff] %v2745_v9 }
 0x25e   :  { %4075 = vst [vmem:[#allocation93_spill] sm:$0xff] %v2749_v8  ;;  %v2768_v8 = vmul.f32 %v2447_v4, %v2378_v43 }
 0x25f   :  { %4076 = vst [vmem:[#allocation94_spill] sm:$0xff] %v2751_v16  ;;  %v2780_v16 = vmul.f32 %v2429_v14, %v2278_v13 }
 0x260   :  { %4079 = vst [vmem:[#allocation97_spill] sm:$0xff] %v2768_v8 }
 0x261   :  { %4082 = vst [vmem:[#allocation100_spill] sm:$0xff] %v2780_v16  ;;  %v2804_v16 = vmul.f32 %v2278_v13, %v2455_v53 }
 0x262   :  { %4089 = vst [vmem:[#allocation107_spill] sm:$0xff] %v2822_v57  ;;  %v2860_v57 = vmul.f32 %v2444_v0, %v2313_v24 }
 0x263   :  { %4090 = vst [vmem:[#allocation108_spill] sm:$0xff] %v2824_v38  ;;  %v2864_v38 = vmul.f32 %v2424_v10, %v2289_v17 }
 0x264   :  { %4092 = vst [vmem:[#allocation110_spill] sm:$0xff] %v2832_v45 }
 0x265   :  { %4095 = vst [vmem:[#allocation113_spill] sm:$0xff] %v2860_v57  ;;  %v2893_v57 = vmul.f32 %v2444_v0, %v2289_v17 }
 0x267   :  { %4101 = vst [vmem:[#allocation119_spill] sm:$0xff] %v2893_v57  ;;  %v2912_v57 = vmul.f32 %v2432_v32, %v2323_v27 }
 0x269   :  { %4105 = vst [vmem:[#allocation123_spill] sm:$0xff] %v2912_v57  ;;  %v2934_v57 = vmul.f32 %v2444_v0, %v2323_v27 }
 0x26b   :  { %4110 = vst [vmem:[#allocation128_spill] sm:$0xff] %v2934_v57 }
 0x278   :  { %v2701_v51 = vpop.f32.mrf.mxu3 }
 0x279   :  { %v346_v11 = vadd.f32 %v338_v36, %v2701_v51  ;;  %v387_v31 = vadd.f32 %v2477_v5, %v2701_v51  ;;  %v556_v9 = vadd.f32 %v2481_v6, %v2701_v51  ;;  %v2772_v36 = vmul.f32 %v2447_v4, %v2402_v54 }
 0x27a   :  { %v2776_v5 = vmul.f32 %v2424_v10, %v2278_v13  ;;  %v2788_v6 = vmul.f32 %v2435_v59, %v2278_v13  ;;  %v2792_v54 = vmul.f32 %v2438_v61, %v2278_v13  ;;  %v693_v46 = vadd.f32 %v2485_v3, %v2701_v51 }
 0x27b   :  { %4080 = vst [vmem:[#allocation98_spill] sm:$0xff] %v2772_v36  ;;  %v2796_v36 = vmul.f32 %v2378_v43, %v2455_v53  ;;  %v403_v8 = vmul.f32 0.2, %v387_v31  ;;  %v572_v39 = vmul.f32 0.2, %v556_v9  ;;  %vm354_vm4 = vcmp.ge.f32.partialorder %v346_v11, 0.0 }
 0x27c   :  { %4081 = vst [vmem:[#allocation99_spill] sm:$0xff] %v2776_v5  ;;  %v2800_v5 = vmul.f32 %v2378_v43, %v2457_v55  ;;  %v2818_v43 = vmul.f32 %v2313_v24, %v2424_v10  ;;  %vm395_vm5 = vcmp.ge.f32.partialorder %v387_v31, 0.0  ;;  %vm564_vm6 = vcmp.ge.f32.partialorder %v556_v9, 0.0 }
 0x27d   :  { %4084 = vst [vmem:[#allocation102_spill] sm:$0xff] %v2788_v6  ;;  %v2810_v6 = vpop.permute.xlu1 %1171  ;;  %v411_v45 = vsel %vm395_vm5, %v387_v31, %v403_v8  ;;  %v2856_v3 = vmul.f32 %v2289_v17, %v2457_v55  ;;  %v2868_v31 = vmul.f32 %v2429_v14, %v2289_v17  ;;  %v2874_v53 = vmul.f32 %v2432_v32, %v2289_v17 }
 0x27e   :  { %4085 = vst [vmem:[#allocation103_spill] sm:$0xff] %v2792_v54  ;;  %v362_v54 = vmul.f32 0.2, %v346_v11  ;;  %v2886_v55 = vmul.f32 %v2441_v62, %v2289_v17  ;;  %vm701_vm7 = vcmp.ge.f32.partialorder %v693_v46, 0.0 }
 0x27f   :  { %4086 = vst [vmem:[#allocation104_spill] sm:$0xff] %v2810_v6  ;;  %v2828_v6 = vmul.f32 %v2432_v32, %v2313_v24 }
 0x280   :  { %4088 = vst [vmem:[#allocation106_spill] sm:$0xff] %v2818_v43  ;;  %v2836_v43 = vmul.f32 %v2438_v61, %v2313_v24  ;;  %v2848_v63 = vsel %vm354_vm4, %v346_v11, %v362_v54  ;;  %v2870_v11 = vpop.permute.xlu2 %1457  ;;  %v709_v54 = vmul.f32 0.2, %v693_v46 }
 0x281   :  { %4091 = vst [vmem:[#allocation109_spill] sm:$0xff] %v2828_v6  ;;  %v2846_v6 = vmul.f32 %v2441_v62, %v2313_v24  ;;  %v2882_v24 = vmul.f32 %v2438_v61, %v2289_v17  ;;  %v419_v8 = vsub.f32 %v411_v45, %v2848_v63  ;;  %v2908_v45 = vmul.f32 %v2429_v14, %v2323_v27 }
 0x282   :  { %4093 = vst [vmem:[#allocation111_spill] sm:$0xff] %v2836_v43  ;;  %v580_v43 = vsel %vm564_vm6, %v556_v9, %v572_v39  ;;  %v2878_v39 = vmul.f32 %v2435_v59, %v2289_v17  ;;  %v830_v9 = vadd.f32 %v2489_v7, %v2701_v51  ;;  %v2904_v7 = vmul.f32 %v2323_v27, %v2424_v10 }
 0x283   :  { %4094 = vst [vmem:[#allocation112_spill] sm:$0xff] %v2846_v6  ;;  %v588_v6 = vsub.f32 %v580_v43, %v2848_v63  ;;  %v2916_v43 = vmul.f32 %v2435_v59, %v2323_v27 }
 0x284   :  { %4096 = vst [vmem:[#allocation114_spill] sm:$0xff] %v2870_v11  ;;  %vm838_vm8 = vcmp.ge.f32.partialorder %v830_v9, 0.0 }
 0x285   :  { %4097 = vst [vmem:[#allocation115_spill] sm:$0xff] %v2874_v53  ;;  %v2918_v11 = vpop.permute.xlu1 %1453  ;;  %v2938_v53 = vpop.permute.xlu0 %1022 }
 0x286   :  { %4098 = vst [vmem:[#allocation116_spill] sm:$0xff] %v2878_v39  ;;  %v967_v39 = vadd.f32 %v2493_v56, %v2701_v51  ;;  %v2958_v56 = vmul.f32 %v2432_v32, %v2321_v26 }
 0x287   :  { %4099 = vst [vmem:[#allocation117_spill] sm:$0xff] %v2882_v24  ;;  %v2900_v24 = vmul.f32 %v2447_v4, %v2289_v17  ;;  %v2922_v17 = vmul.f32 %v2438_v61, %v2323_v27 }
 0x288   :  { %4100 = vst [vmem:[#allocation118_spill] sm:$0xff] %v2886_v55  ;;  %v846_v55 = vmul.f32 0.2, %v830_v9  ;;  %vm975_vm9 = vcmp.ge.f32.partialorder %v967_v39, 0.0 }
 0x289   :  { %4102 = vst [vmem:[#allocation120_spill] sm:$0xff] %v2900_v24  ;;  %v429_v24 = vmul.f32 1.442695, %v419_v8  ;;  %v2950_v8 = vmul.f32 %v2321_v26, %v2424_v10 }
 0x28a   :  { %4103 = vst [vmem:[#allocation121_spill] sm:$0xff] %v2904_v7  ;;  %v2926_v7 = vmul.f32 %v2441_v62, %v2323_v27  ;;  %v854_v57 = vsel %vm838_vm8, %v830_v9, %v846_v55  ;;  %v2995_v55 = vmul.f32 %v2317_v25, %v2424_v10  ;;  %v3003_v9 = vmul.f32 %v2432_v32, %v2317_v25 }
 0x28b   :  { %4104 = vst [vmem:[#allocation122_spill] sm:$0xff] %v2908_v45  ;;  %v2930_v45 = vmul.f32 %v2444_v0, %v2280_v15  ;;  %1872 = vpow2.f32 %v429_v24  ;;  %v2991_v24 = vmul.f32 %v2447_v4, %v2321_v26 }
 0x28c   :  { %4106 = vst [vmem:[#allocation124_spill] sm:$0xff] %v2916_v43  ;;  %v717_v43 = vsel %vm701_vm7, %v693_v46, %v709_v54  ;;  %v2954_v46 = vmul.f32 %v2429_v14, %v2321_v26  ;;  %v2971_v54 = vmul.f32 %v2441_v62, %v2321_v26 }
 0x28d   :  { %4107 = vst [vmem:[#allocation125_spill] sm:$0xff] %v2922_v17  ;;  %v598_v17 = vmul.f32 1.442695, %v588_v6  ;;  %v725_v6 = vsub.f32 %v717_v43, %v2848_v63  ;;  %v2983_v43 = vmul.f32 %v2444_v0, %v2321_v26 }
 0x28e   :  { %4108 = vst [vmem:[#allocation126_spill] sm:$0xff] %v2926_v7  ;;  %v2942_v7 = vmul.f32 %v2447_v4, %v2280_v15  ;;  %v2962_v15 = vmul.f32 %v2435_v59, %v2321_v26 }
 0x28f   :  { %4109 = vst [vmem:[#allocation127_spill] sm:$0xff] %v2930_v45  ;;  %v2946_v45 = vmul.f32 %v2447_v4, %v2323_v27  ;;  %v2967_v27 = vmul.f32 %v2438_v61, %v2321_v26  ;;  %1874 = vpow2.f32 %v598_v17  ;;  %v735_v17 = vmul.f32 1.442695, %v725_v6 }
 0x290   :  { %4112 = vst [vmem:[#allocation130_spill] sm:$0xff] %v2950_v8  ;;  %v3012_v26 = vmul.f32 %v2438_v61, %v2317_v25  ;;  %v3020_v6 = vmul.f32 %v2441_v62, %v2317_v25 }
 0x291   :  { %4111 = vst [vmem:[#allocation129_spill] sm:$0xff] %v2946_v45  ;;  %v2975_v45 = vmul.f32 %v2444_v0, %v2278_v13  ;;  %1876 = vpow2.f32 %v735_v17  ;;  %v4137_v17 = vmax.f32 %v2519_v34, %v2523_v20  ;;  %v3087_v20 = vmul.f32 %v2435_v59, %v2336_v30 }
 0x292   :  { %4113 = vst [vmem:[#allocation131_spill] sm:$0xff] %v2954_v46  ;;  %v2979_v46 = vpop.permute.xlu2 %1312 }
 0x293   :  { %4114 = vst [vmem:[#allocation132_spill] sm:$0xff] %v2958_v56  ;;  %v983_v56 = vmul.f32 0.2, %v967_v39 }
 0x294   :  { %4115 = vst [vmem:[#allocation133_spill] sm:$0xff] %v2962_v15  ;;  %v1104_v15 = vadd.f32 %v2497_v58, %v2701_v51  ;;  %v2999_v58 = vmul.f32 %v2429_v14, %v2317_v25 }
 0x295   :  { %4116 = vst [vmem:[#allocation134_spill] sm:$0xff] %v2967_v27  ;;  %v991_v27 = vsel %vm975_vm9, %v967_v39, %v983_v56  ;;  %v3034_v39 = vmul.f32 %v2429_v14, %v2306_v22  ;;  %v3038_v56 = vmul.f32 %v2432_v32, %v2306_v22 }
 0x296   :  { %4117 = vst [vmem:[#allocation135_spill] sm:$0xff] %v2971_v54  ;;  %v2987_v54 = vmul.f32 %v2447_v4, %v2278_v13  ;;  %v862_v13 = vsub.f32 %v854_v57, %v2848_v63  ;;  %v3022_v57 = vpop.permute.xlu1 %1308  ;;  %vm1112_vm10 = vcmp.ge.f32.partialorder %v1104_v15, 0.0  ;;  %v999_v8 = vsub.f32 %v991_v27, %v2848_v63 }
 0x297   :  { %4118 = vst [vmem:[#allocation136_spill] sm:$0xff] %v2979_v46 }
 0x298   :  { %4119 = vst [vmem:[#allocation137_spill] sm:$0xff] %v2983_v43  ;;  %v3008_v43 = vmul.f32 %v2435_v59, %v2317_v25 }
 0x299   :  { %4120 = vst [vmem:[#allocation138_spill] sm:$0xff] %v2987_v54  ;;  %v3063_v54 = vmul.f32 %v2336_v30, %v2424_v10 }
 0x29a   :  { %4121 = vst [vmem:[#allocation139_spill] sm:$0xff] %v2991_v24  ;;  %v3014_v24 = vpop.f32.mrf.mxu1  ;;  %v3089_v34 = vpop.permute.xlu2 %1026 }
 0x29b   :  { %4122 = vst [vmem:[#allocation140_spill] sm:$0xff] %v2995_v55  ;;  %v1120_v55 = vmul.f32 0.2, %v1104_v15  ;;  %v385_v27 = vadd.f32 %v2465_v37, %v3014_v24  ;;  %v1009_v37 = vmul.f32 1.442695, %v999_v8  ;;  %v3104_v8 = vmul.f32 %v2444_v0, %v2336_v30 }
 0x29c   :  { %4123 = vst [vmem:[#allocation141_spill] sm:$0xff] %v2999_v58  ;;  %v1241_v58 = vadd.f32 %v2503_v42, %v2701_v51  ;;  %v1873_v42 = vpop.eup %1872 }
 0x29d   :  { %4124 = vst [vmem:[#allocation142_spill] sm:$0xff] %v3003_v9  ;;  %v1875_v9 = vpop.eup %1874  ;;  %vm393_vm14 = vcmp.ge.f32.partialorder %v385_v27, 0.0 }
 0x29e   :  { %4125 = vst [vmem:[#allocation143_spill] sm:$0xff] %v3008_v43  ;;  %v3026_v43 = vmul.f32 %v2444_v0, %v2317_v25  ;;  %v3046_v25 = vmul.f32 %v2438_v61, %v2306_v22  ;;  %v1257_v46 = vmul.f32 0.2, %v1241_v58  ;;  %vm1249_vm11 = vcmp.ge.f32.partialorder %v1241_v58, 0.0 }
 0x29f   :  { %4126 = vst [vmem:[#allocation144_spill] sm:$0xff] %v3012_v26  ;;  %v3030_v26 = vmul.f32 %v2306_v22, %v2424_v10 }
 0x2a0   :  { %4127 = vst [vmem:[#allocation145_spill] sm:$0xff] %v3020_v6  ;;  %v3042_v6 = vmul.f32 %v2435_v59, %v2306_v22  ;;  %v1877_v59 = vpop.eup %1876 }
 0x2a1   :  { %4128 = vst [vmem:[#allocation146_spill] sm:$0xff] %v3026_v43  ;;  %v3050_v43 = vmul.f32 %v2441_v62, %v2306_v22 }
 0x2a2   :  { %4129 = vst [vmem:[#allocation147_spill] sm:$0xff] %v3030_v26  ;;  %v3052_v26 = vpop.permute.xlu0 %1030 }
 0x2a3   :  { %4130 = vst [vmem:[#allocation148_spill] sm:$0xff] %v3034_v39  ;;  %v872_v39 = vmul.f32 1.442695, %v862_v13  ;;  %v344_v13 = vadd.f32 %v4137_v17, %v3014_v24 }
 0x2a4   :  { %4131 = vst [vmem:[#allocation149_spill] sm:$0xff] %v3038_v56  ;;  %v3057_v56 = vmul.f32 %v2444_v0, %v2306_v22  ;;  %v3073_v22 = vmul.f32 %v2429_v14, %v2336_v30  ;;  %v1265_v14 = vsel %vm1249_vm11, %v1241_v58, %v1257_v46  ;;  %v3110_v46 = vpop.f32.mrf.mxu1  ;;  %v3117_v0 = vmul.f32 %v2447_v4, %v2336_v30 }
 0x2a5   :  { %4132 = vst [vmem:[#allocation150_spill] sm:$0xff] %v3042_v6  ;;  %v1128_v6 = vsel %vm1112_vm10, %v1104_v15, %v1120_v55  ;;  %v3076_v15 = vmul.f32 %v1873_v42, %v2296_v19  ;;  %1878 = vpow2.f32 %v872_v39  ;;  %v3094_v19 = vmul.f32 %v2438_v61, %v2336_v30 }
 0x2a6   :  { %4133 = vst [vmem:[#allocation151_spill] sm:$0xff] %v3046_v25  ;;  %v1378_v25 = vadd.f32 %v2507_v50, %v2701_v51  ;;  %v3079_v50 = vmul.f32 %v1875_v9, %v2346_v33  ;;  %v3083_v51 = vmul.f32 %v2432_v32, %v2336_v30  ;;  %v1136_v10 = vsub.f32 %v1128_v6, %v2848_v63 }
 0x2a7   :  { %4134 = vst [vmem:[#allocation152_spill] sm:$0xff] %v3050_v43  ;;  %v554_v33 = vadd.f32 %v2469_v29, %v3014_v24  ;;  %v3100_v55 = vmul.f32 %v2441_v62, %v2336_v30  ;;  %v360_v9 = vmul.f32 0.2, %v344_v13  ;;  %v401_v39 = vmul.f32 0.2, %v385_v27  ;;  %v3112_v62 = vpop.permute.xlu1 %1163 }
 0x2a8   :  { %4135 = vst [vmem:[#allocation153_spill] sm:$0xff] %v3057_v56  ;;  %v1394_v32 = vmul.f32 0.2, %v1378_v25  ;;  %vm1386_vm12 = vcmp.ge.f32.partialorder %v1378_v25, 0.0  ;;  %v691_v61 = vadd.f32 %v2473_v23, %v3014_v24  ;;  %v652_v29 = vadd.f32 %v3079_v50, %v3076_v15 }
 0x2a9   :  { %4136 = vst [vmem:[#allocation154_spill] sm:$0xff] %v3063_v54  ;;  %vm352_vm13 = vcmp.ge.f32.partialorder %v344_v13, 0.0  ;;  %1880 = vpow2.f32 %v1009_v37  ;;  %v1146_v58 = vmul.f32 1.442695, %v1136_v10  ;;  %v1273_v6 = vsub.f32 %v1265_v14, %v2848_v63 }
 0x2aa   :  { %4138 = vst [vmem:[#allocation155_spill] sm:$0xff] %v3073_v22  ;;  %v3120_v42 = vmul.f32 %v1877_v59, %v2374_v40  ;;  %v1402_v23 = vsel %vm1386_vm12, %v1378_v25, %v1394_v32  ;;  %v570_v17 = vmul.f32 0.2, %v554_v33  ;;  %v828_v56 = vadd.f32 %v2609_v2, %v3014_v24 }
 0x2ab   :  { %4139 = vst [vmem:[#allocation156_spill] sm:$0xff] %v3076_v15  ;;  %v1879_v43 = vpop.eup %1878  ;;  %v4151_v37 = vmax.f32 %v2541_v52, %v2545_v47  ;;  %v3130_v14 = vsel %vm352_vm13, %v344_v13, %v360_v9  ;;  %v409_v30 = vsel %vm393_vm14, %v385_v27, %v401_v39  ;;  %vm562_vm15 = vcmp.ge.f32.partialorder %v554_v33, 0.0  ;;  %v3147_v13 = vpop.f32.mrf.mxu3 }
 0x2ac   :  { %4140 = vst [vmem:[#allocation157_spill] sm:$0xff] %v3079_v50  ;;  %v3124_v50 = vpop.permute.xlu0 %1183  ;;  %v789_v40 = vadd.f32 %v3120_v42, %v652_v29  ;;  %v707_v59 = vmul.f32 0.2, %v691_v61  ;;  %v965_v25 = vadd.f32 %v2617_v28, %v3014_v24  ;;  %v3137_v2 = vadd.f32 %v2625_v44, %v3014_v24  ;;  %v3150_v44 = vpop.permute.xlu2 %1449 }
 0x2ad   :  { %4141 = vst [vmem:[#allocation158_spill] sm:$0xff] %v3083_v51  ;;  %v345_v10 = vadd.f32 %v4151_v37, %v3110_v46  ;;  %1882 = vpow2.f32 %v1146_v58  ;;  %v1283_v32 = vmul.f32 1.442695, %v1273_v6  ;;  %v1410_v4 = vsub.f32 %v1402_v23, %v2848_v63 }
 0x2ae   :  { %4142 = vst [vmem:[#allocation159_spill] sm:$0xff] %v3087_v20  ;;  %vm699_vm0 = vcmp.ge.f32.partialorder %v691_v61, 0.0  ;;  %v3141_v47 = vmul.f32 %v1879_v43, %v2392_v49  ;;  %v3145_v52 = vadd.f32 %v2515_v41, %v3110_v46  ;;  %v417_v28 = vsub.f32 %v409_v30, %v3130_v14 }
 0x2af   :  { %4143 = vst [vmem:[#allocation160_spill] sm:$0xff] %v3089_v34  ;;  %v578_v27 = vsel %vm562_vm15, %v554_v33, %v570_v17  ;;  %v1881_v9 = vpop.eup %1880  ;;  %v361_v39 = vmul.f32 0.2, %v345_v10  ;;  %vm836_vm1 = vcmp.ge.f32.partialorder %v828_v56, 0.0  ;;  %v844_v29 = vmul.f32 0.2, %v828_v56  ;;  %v3168_v37 = vpop.permute.xlu1 %1159 }
 0x2b0   :  { %4144 = vst [vmem:[#allocation161_spill] sm:$0xff] %v3094_v19  ;;  %v3154_v63 = vadd.f32 %v2641_v48, %v3014_v24  ;;  %v926_v49 = vadd.f32 %v3141_v47, %v789_v40  ;;  %vm353_vm2 = vcmp.ge.f32.partialorder %v345_v10, 0.0  ;;  %v3159_v41 = vadd.f32 %v2527_v35, %v3110_v46 }
 0x2b1   :  { %4145 = vst [vmem:[#allocation162_spill] sm:$0xff] %v3100_v55  ;;  %v715_v43 = vsel %vm699_vm0, %v691_v61, %v707_v59  ;;  %1884 = vpow2.f32 %v1283_v32  ;;  %v1420_v33 = vmul.f32 1.442695, %v1410_v4  ;;  %v586_v58 = vsub.f32 %v578_v27, %v3130_v14 }
 0x2b2   :  { %4146 = vst [vmem:[#allocation163_spill] sm:$0xff] %v3104_v8  ;;  %vm973_vm3 = vcmp.ge.f32.partialorder %v965_v25, 0.0  ;;  %v3163_v6 = vmul.f32 %v1881_v9, %v3052_v26  ;;  %vm394_vm4 = vcmp.ge.f32.partialorder %v3145_v52, 0.0  ;;  %v388_v48 = vadd.f32 %v2573_v60, %v3147_v13  ;;  %v4155_v60 = vld [vmem:[#allocation52_spill] sm:$0xff] }
 0x2b3   :  { %4147 = vst [vmem:[#allocation164_spill] sm:$0xff] %v3112_v62  ;;  %v425_v23 = vmul.f32 1.442695, %v417_v28  ;;  %v1883_v17 = vpop.eup %1882  ;;  %v3170_v35 = vsel %vm353_vm2, %v345_v10, %v361_v39  ;;  %v402_v61 = vmul.f32 0.2, %v3145_v52  ;;  %v3175_v4 = vadd.f32 %v2531_v21, %v3110_v46  ;;  %v4157_v21 = vld [vmem:[#allocation55_spill] sm:$0xff] }
 0x2b4   :  { %4148 = vst [vmem:[#allocation165_spill] sm:$0xff] %v3117_v0  ;;  %v723_v26 = vsub.f32 %v715_v43, %v3130_v14  ;;  %v1063_v30 = vadd.f32 %v3163_v6, %v926_v49  ;;  %vm563_vm5 = vcmp.ge.f32.partialorder %v3159_v41, 0.0  ;;  %v4156_v40 = vmax.f32 %v2557_v1, %v4155_v60  ;;  %v1168_v28 = vpop.permute.xlu0 %1167  ;;  %v4159_v49 = vld [vmem:[#allocation50_spill] sm:$0xff] }
 0x2b5   :  { %4149 = vst [vmem:[#allocation166_spill] sm:$0xff] %v3120_v42  ;;  %v852_v10 = vsel %vm836_vm1, %v828_v56, %v844_v29  ;;  %v981_v32 = vmul.f32 0.2, %v965_v25  ;;  %1886 = vpow2.f32 %v1420_v33  ;;  %v571_v27 = vmul.f32 0.2, %v3159_v41 }
 0x2b6   :  { %4150 = vst [vmem:[#allocation167_spill] sm:$0xff] %v3124_v50  ;;  %v347_v59 = vadd.f32 %v4156_v40, %v3147_v13  ;;  %v557_v9 = vadd.f32 %v4157_v21, %v3147_v13  ;;  %v594_v39 = vmul.f32 1.442695, %v586_v58  ;;  %v3188_v43 = vmul.f32 %v1883_v17, %v1168_v28  ;;  %v4160_v17 = vld [vmem:[#allocation68_spill] sm:$0xff]  ;;  %v3201_v21 = vpop.f32.mrf.mxu3  ;;  %v4200_v50 = vld [vmem:[#allocation49_spill] sm:$0xff] }
 0x2b7   :  { %4152 = vst [vmem:[#allocation168_spill] sm:$0xff] %v3141_v47  ;;  %v3192_v0 = vadd.f32 %v4159_v49, %v3110_v46  ;;  %1888 = vpow2.f32 %v425_v23  ;;  %v1885_v1 = vpop.eup %1884  ;;  %v731_v60 = vmul.f32 1.442695, %v723_v26  ;;  %v860_v56 = vsub.f32 %v852_v10, %v3130_v14  ;;  %v1305_v49 = vpop.permute.xlu2 %1304 }
 0x2b8   :  { %4153 = vst [vmem:[#allocation169_spill] sm:$0xff] %v3150_v44  ;;  %vm1110_vm6 = vcmp.ge.f32.partialorder %v3137_v2, 0.0  ;;  %v1118_v29 = vmul.f32 0.2, %v3137_v2  ;;  %v1200_v33 = vadd.f32 %v3188_v43, %v1063_v30  ;;  %v989_v58 = vsel %vm973_vm3, %v965_v25, %v981_v32  ;;  %v1442_v47 = vpop.permute.xlu1 %1441 }
 0x2b9   :  { %4154 = vst [vmem:[#allocation170_spill] sm:$0xff] %v3163_v6  ;;  %v404_v6 = vmul.f32 0.2, %v388_v48  ;;  %v1376_v40 = vadd.f32 %v4160_v17, %v3014_v24  ;;  %v363_v28 = vmul.f32 0.2, %v347_v59  ;;  %1890 = vpow2.f32 %v594_v39 }
 0x2ba   :  { %4158 = vst [vmem:[#allocation52_spill] sm:$0xff] %v3188_v43  ;;  %v573_v23 = vmul.f32 0.2, %v557_v9  ;;  %vm355_vm7 = vcmp.ge.f32.partialorder %v347_v59, 0.0  ;;  %vm396_vm8 = vcmp.ge.f32.partialorder %v388_v48, 0.0  ;;  %v3203_v26 = vmul.f32 %v1885_v1, %v1305_v49 }
 0x2bb   :  { %vm1247_vm9 = vcmp.ge.f32.partialorder %v3154_v63, 0.0  ;;  %v1255_v10 = vmul.f32 0.2, %v3154_v63  ;;  %vm565_vm10 = vcmp.ge.f32.partialorder %v557_v9, 0.0  ;;  %v1887_v30 = vpop.eup %1886  ;;  %1892 = vpow2.f32 %v731_v60  ;;  %v4162_v60 = vld [vmem:[#allocation56_spill] sm:$0xff] }
 0x2bc   :  { %4161 = vst [vmem:[#allocation55_spill] sm:$0xff] %v3203_v26  ;;  %v868_v25 = vmul.f32 1.442695, %v860_v56  ;;  %v997_v24 = vsub.f32 %v989_v58, %v3130_v14  ;;  %v1126_v32 = vsel %vm1110_vm6, %v3137_v2, %v1118_v29  ;;  %v1337_v39 = vadd.f32 %v3203_v26, %v1200_v33  ;;  %v4169_v26 = vld [vmem:[#allocation48_spill] sm:$0xff] }
 0x2bd   :  { %v1889_v17 = vpop.eup %1888  ;;  %v1392_v43 = vmul.f32 0.2, %v1376_v40  ;;  %v3212_v1 = vsel %vm355_vm7, %v347_v59, %v363_v28  ;;  %v412_v49 = vsel %vm396_vm8, %v388_v48, %v404_v6  ;;  %v3217_v42 = vsel %vm394_vm4, %v3145_v52, %v402_v61 }
 0x2be   :  { %v694_v56 = vadd.f32 %v4162_v60, %v3147_v13  ;;  %vm1384_vm11 = vcmp.ge.f32.partialorder %v1376_v40, 0.0  ;;  %v581_v58 = vsel %vm565_vm10, %v557_v9, %v573_v23  ;;  %v1466_v15 = vmul.f32 %v1887_v30, %v1442_v47 }
 0x2bf   :  { %v3222_v2 = vmul.f32 0.2, %v3175_v4  ;;  %v1134_v29 = vsub.f32 %v1126_v32, %v3130_v14  ;;  %v1263_v6 = vsel %vm1247_vm9, %v3154_v63, %v1255_v10  ;;  %v1891_v48 = vpop.eup %1890  ;;  %v3231_v52 = vsel %vm563_vm5, %v3159_v41, %v571_v27  ;;  %v4164_v63 = vld [vmem:[#allocation51_spill] sm:$0xff]  ;;  %v4165_v41 = vld [vmem:[#allocation53_spill] sm:$0xff] }
 0x2c0   :  { %1894 = vpow2.f32 %v868_v25  ;;  %v1005_v61 = vmul.f32 1.442695, %v997_v24  ;;  %v420_v59 = vsub.f32 %v412_v49, %v3212_v1  ;;  %v3234_v47 = vadd.f32 %v1466_v15, %v1337_v39  ;;  %v4166_v24 = vld [vmem:[#allocation26_spill] sm:$0xff]  ;;  %v4167_v39 = vld [vmem:[#allocation36_spill] sm:$0xff] }
 0x2c1   :  { %v3237_v9 = vmul.f32 0.2, %v3192_v0  ;;  %v1400_v33 = vsel %vm1384_vm11, %v1376_v40, %v1392_v43  ;;  %v589_v28 = vsub.f32 %v581_v58, %v3212_v1  ;;  %v1893_v23 = vpop.eup %1892  ;;  %v3242_v10 = vadd.f32 %v4164_v63, %v3110_v46  ;;  %v3251_v43 = vpop.f32.mrf.mxu3  ;;  %v4168_v40 = vld [vmem:[#allocation54_spill] sm:$0xff] }
 0x2c2   :  { %4163 = vst [vmem:[#allocation50_spill] sm:$0xff] %v3234_v47  ;;  %v3246_v27 = vadd.f32 %v4165_v41, %v3110_v46  ;;  %v1271_v30 = vsub.f32 %v1263_v6, %v3130_v14  ;;  %v710_v25 = vmul.f32 0.2, %v694_v56  ;;  %v473_v32 = vmul.f32 %v1889_v17, %v4166_v24  ;;  %v4171_v17 = vld [vmem:[#allocation57_spill] sm:$0xff]  ;;  %v4172_v24 = vld [vmem:[#allocation42_spill] sm:$0xff] }
 0x2c3   :  { %v642_v49 = vmul.f32 %v1891_v48, %v4167_v39  ;;  %v1142_v60 = vmul.f32 1.442695, %v1134_v29  ;;  %vm702_vm12 = vcmp.ge.f32.partialorder %v694_v56, 0.0  ;;  %v3255_v58 = vadd.f32 %v4168_v40, %v3110_v46 }
 0x2c4   :  { %1896 = vpow2.f32 %v1005_v61  ;;  %v1408_v63 = vsub.f32 %v1400_v33, %v3130_v14  ;;  %v431_v41 = vmul.f32 1.442695, %v420_v59  ;;  %v3259_v8 = vmul.f32 %v4169_v26, %v1466_v15  ;;  %v4174_v59 = vld [vmem:[#allocation58_spill] sm:$0xff]  ;;  %v4175_v26 = vld [vmem:[#allocation84_spill] sm:$0xff] }
 0x2c5   :  { %1898 = vrcp.f32 %v3234_v47  ;;  %v831_v6 = vadd.f32 %v4171_v17, %v3147_v13  ;;  %v600_v29 = vmul.f32 1.442695, %v589_v28  ;;  %v779_v39 = vmul.f32 %v1893_v23, %v4172_v24  ;;  %v4176_v17 = vld [vmem:[#allocation60_spill] sm:$0xff] }
 0x2c6   :  { %4170 = vst [vmem:[#allocation68_spill] sm:$0xff] %v3259_v8  ;;  %v1895_v48 = vpop.eup %1894  ;;  %v1279_v55 = vmul.f32 1.442695, %v1271_v30  ;;  %v718_v19 = vsel %vm702_vm12, %v694_v56, %v710_v25  ;;  %v4173_v61 = vmax.f32 %v2796_v36, %v2800_v5  ;;  %v3270_v33 = vmul.f32 %v4174_v59, %v473_v32  ;;  %v4177_v56 = vld [vmem:[#allocation85_spill] sm:$0xff]  ;;  %v4178_v30 = vld [vmem:[#allocation78_spill] sm:$0xff] }
 0x2c7   :  { %v650_v15 = vadd.f32 %v642_v49, %v473_v32  ;;  %1900 = vpow2.f32 %v1142_v60  ;;  %v390_v40 = vadd.f32 %v4175_v26, %v3251_v43  ;;  %v3275_v28 = vmul.f32 %v4176_v17, %v642_v49  ;;  %v4179_v60 = vld [vmem:[#allocation61_spill] sm:$0xff] }
 0x2c8   :  { %v349_v14 = vadd.f32 %v4173_v61, %v3251_v43  ;;  %v1416_v8 = vmul.f32 1.442695, %v1408_v63  ;;  %1902 = vpow2.f32 %v431_v41  ;;  %v559_v23 = vadd.f32 %v4177_v56, %v3251_v43  ;;  %v4182_v41 = vld [vmem:[#allocation70_spill] sm:$0xff] }
 0x2c9   :  { %v3280_v25 = vmul.f32 %v1895_v48, %v4178_v30  ;;  %1904 = vpow2.f32 %v600_v29  ;;  %v726_v36 = vsub.f32 %v718_v19, %v3212_v1  ;;  %v847_v5 = vmul.f32 0.2, %v831_v6  ;;  %v4184_v30 = vld [vmem:[#allocation86_spill] sm:$0xff] }
 0x2ca   :  { %v3283_v32 = vpop.eup %1896  ;;  %v3286_v24 = vmul.f32 %v4179_v60, %v779_v39  ;;  %1906 = vpow2.f32 %v1279_v55  ;;  %vm839_vm13 = vcmp.ge.f32.partialorder %v831_v6, 0.0  ;;  %v365_v49 = vmul.f32 0.2, %v349_v14  ;;  %v4183_v55 = vld [vmem:[#allocation71_spill] sm:$0xff] }
 0x2cb   :  { %v3288_v63 = vpop.eup %1898  ;;  %v968_v61 = vadd.f32 %v4182_v41, %v3147_v13  ;;  %vm357_vm14 = vcmp.ge.f32.partialorder %v349_v14, 0.0  ;;  %vm398_vm15 = vcmp.ge.f32.partialorder %v390_v40, 0.0  ;;  %v406_v48 = vmul.f32 0.2, %v390_v40 }
 0x2cc   :  { %4180 = vst [vmem:[#allocation56_spill] sm:$0xff] %v3286_v24  ;;  %v3292_v29 = vadd.f32 %v779_v39, %v650_v15  ;;  %1908 = vpow2.f32 %v1416_v8  ;;  %vm567_vm0 = vcmp.ge.f32.partialorder %v559_v23, 0.0  ;;  %v575_v19 = vmul.f32 0.2, %v559_v23  ;;  %v4185_v8 = vld [vmem:[#allocation87_spill] sm:$0xff] }
 0x2cd   :  { %4181 = vst [vmem:[#allocation51_spill] sm:$0xff] %v3288_v63  ;;  %v3294_v59 = vpop.eup %1900  ;;  %v737_v26 = vmul.f32 1.442695, %v726_v36  ;;  %v855_v17 = vsel %vm839_vm13, %v831_v6, %v847_v5  ;;  %v3298_v56 = vadd.f32 %v4183_v55, %v3147_v13  ;;  %v696_v60 = vadd.f32 %v4184_v30, %v3251_v43  ;;  %v4186_v36 = vld [vmem:[#allocation72_spill] sm:$0xff]  ;;  %v4190_v30 = vld [vmem:[#allocation89_spill] sm:$0xff] }
 0x2ce   :  { %v1903_v41 = vpop.eup %1902  ;;  %v3302_v24 = vsel %vm357_vm14, %v349_v14, %v365_v49  ;;  %v414_v63 = vsel %vm398_vm15, %v390_v40, %v406_v48  ;;  %v583_v39 = vsel %vm567_vm0, %v559_v23, %v575_v19  ;;  %v833_v15 = vadd.f32 %v4185_v8, %v3251_v43  ;;  %v4187_v5 = vld [vmem:[#allocation88_spill] sm:$0xff] }
 0x2cf   :  { %v1905_v47 = vpop.eup %1904  ;;  %vm976_vm1 = vcmp.ge.f32.partialorder %v968_v61, 0.0  ;;  %v3308_v6 = vadd.f32 %v4186_v36, %v3147_v13  ;;  %vm704_vm2 = vcmp.ge.f32.partialorder %v696_v60, 0.0  ;;  %v970_v55 = vadd.f32 %v4187_v5, %v3251_v43  ;;  %v4188_v48 = vld [vmem:[#allocation12_spill] sm:$0xff]  ;;  %v4192_v5 = vld [vmem:[#allocation17_spill] sm:$0xff] }
 0x2d0   :  { %v3312_v20 = vpop.eup %1906  ;;  %v863_v14 = vsub.f32 %v855_v17, %v3212_v1  ;;  %v984_v49 = vmul.f32 0.2, %v968_v61  ;;  %v712_v40 = vmul.f32 0.2, %v696_v60  ;;  %v849_v23 = vmul.f32 0.2, %v833_v15 }
 0x2d1   :  { %v3316_v19 = vmul.f32 %v1903_v41, %v4188_v48  ;;  %v1107_v8 = vadd.f32 %v4190_v30, %v3251_v43  ;;  %v422_v36 = vsub.f32 %v414_v63, %v3302_v24  ;;  %v591_v51 = vsub.f32 %v583_v39, %v3302_v24 }
 0x2d2   :  { %v3322_v22 = vpop.eup %1908  ;;  %v3325_v54 = vmul.f32 %v1905_v47, %v4192_v5  ;;  %1910 = vpow2.f32 %v737_v26  ;;  %vm1113_vm3 = vcmp.ge.f32.partialorder %v3298_v56, 0.0  ;;  %v720_v17 = vsel %vm704_vm2, %v696_v60, %v712_v40 }
 0x2d3   :  { %4189 = vst [vmem:[#allocation53_spill] sm:$0xff] %v3316_v19  ;;  %vm841_vm4 = vcmp.ge.f32.partialorder %v833_v15, 0.0  ;;  %v435_v44 = vmul.f32 1.442695, %v422_v36  ;;  %v604_v41 = vmul.f32 1.442695, %v591_v51  ;;  %v728_v48 = vsub.f32 %v720_v17, %v3302_v24 }
 0x2d4   :  { %4191 = vst [vmem:[#allocation26_spill] sm:$0xff] %v3322_v22  ;;  %vm978_vm5 = vcmp.ge.f32.partialorder %v970_v55, 0.0  ;;  %v857_v30 = vsel %vm841_vm4, %v833_v15, %v849_v23  ;;  %v986_v62 = vmul.f32 0.2, %v970_v55  ;;  %vm1115_vm6 = vcmp.ge.f32.partialorder %v1107_v8, 0.0 }
 0x2d5   :  { %4193 = vst [vmem:[#allocation36_spill] sm:$0xff] %v3325_v54  ;;  %v1123_v63 = vmul.f32 0.2, %v1107_v8  ;;  %v992_v39 = vsel %vm976_vm1, %v968_v61, %v984_v49  ;;  %1912 = vpow2.f32 %v435_v44  ;;  %v741_v22 = vmul.f32 1.442695, %v728_v48  ;;  %v4194_v44 = vld [vmem:[#allocation95_spill] sm:$0xff] }
 0x2d6   :  { %v865_v47 = vsub.f32 %v857_v30, %v3302_v24  ;;  %v874_v26 = vmul.f32 1.442695, %v863_v14  ;;  %1914 = vpow2.f32 %v604_v41  ;;  %v994_v5 = vsel %vm978_vm5, %v970_v55, %v986_v62  ;;  %v4195_v49 = vld [vmem:[#allocation97_spill] sm:$0xff] }
 0x2d7   :  { %v1131_v60 = vsel %vm1115_vm6, %v1107_v8, %v1123_v63  ;;  %1916 = vpow2.f32 %v741_v22  ;;  %v1002_v51 = vsub.f32 %v994_v5, %v3302_v24  ;;  %v1000_v23 = vsub.f32 %v992_v39, %v3212_v1 }
 0x2d8   :  { %v878_v40 = vmul.f32 1.442695, %v865_v47  ;;  %v1139_v36 = vsub.f32 %v1131_v60, %v3302_v24  ;;  %v1911_v15 = vpop.eup %1910  ;;  %v1121_v17 = vmul.f32 0.2, %v3298_v56  ;;  %v1244_v61 = vadd.f32 %v4194_v44, %v3251_v43  ;;  %v4197_v47 = vld [vmem:[#allocation29_spill] sm:$0xff] }
 0x2d9   :  { %v1381_v14 = vadd.f32 %v4195_v49, %v3251_v43  ;;  %vm1250_vm7 = vcmp.ge.f32.partialorder %v3308_v6, 0.0  ;;  %v1015_v22 = vmul.f32 1.442695, %v1002_v51  ;;  %v653_v41 = vadd.f32 %v3325_v54, %v3316_v19  ;;  %v4196_v43 = vld [vmem:[#allocation73_spill] sm:$0xff]  ;;  %v4198_v51 = vld [vmem:[#allocation39_spill] sm:$0xff]  ;;  %v4199_v54 = vld [vmem:[#allocation44_spill] sm:$0xff] }
 0x2da   :  { %1918 = vpow2.f32 %v878_v40  ;;  %v1152_v62 = vmul.f32 1.442695, %v1139_v36  ;;  %vm1252_vm8 = vcmp.ge.f32.partialorder %v1244_v61, 0.0  ;;  %v1260_v55 = vmul.f32 0.2, %v1244_v61 }
 0x2db   :  { %1920 = vpow2.f32 %v874_v26  ;;  %vm1389_vm9 = vcmp.ge.f32.partialorder %v1381_v14, 0.0  ;;  %v1913_v8 = vpop.eup %1912  ;;  %v1258_v48 = vmul.f32 0.2, %v3308_v6  ;;  %v1397_v30 = vmul.f32 0.2, %v1381_v14 }
 0x2dc   :  { %1922 = vpow2.f32 %v1015_v22  ;;  %v1915_v63 = vpop.eup %1914  ;;  %v1379_v39 = vadd.f32 %v4196_v43, %v3147_v13  ;;  %v478_v5 = vmul.f32 %v1913_v8, %v4197_v47  ;;  %v1268_v60 = vsel %vm1252_vm8, %v1244_v61, %v1260_v55  ;;  %v4201_v55 = vld [vmem:[#allocation46_spill] sm:$0xff] }
 0x2dd   :  { %1924 = vpow2.f32 %v1152_v62  ;;  %v1917_v26 = vpop.eup %1916  ;;  %v1129_v40 = vsel %vm1113_vm3, %v3298_v56, %v1121_v17  ;;  %v647_v36 = vmul.f32 %v1915_v63, %v4198_v51  ;;  %v1276_v44 = vsub.f32 %v1268_v60, %v3302_v24 }
 0x2de   :  { %v1405_v49 = vsel %vm1389_vm9, %v1381_v14, %v1397_v30  ;;  %v1011_v22 = vmul.f32 1.442695, %v1000_v23  ;;  %v534_v19 = vmul.f32 %v4199_v54, %v478_v5  ;;  %v784_v34 = vmul.f32 %v1917_v26, %v4200_v50  ;;  %v4202_v23 = vld [vmem:[#allocation108_spill] sm:$0xff] }
 0x2df   :  { %v1413_v13 = vsub.f32 %v1405_v49, %v3302_v24  ;;  %v1266_v61 = vsel %vm1250_vm7, %v3308_v6, %v1258_v48  ;;  %v655_v62 = vadd.f32 %v647_v36, %v478_v5  ;;  %v671_v56 = vmul.f32 %v4201_v55, %v647_v36  ;;  %v4203_v24 = vld [vmem:[#allocation90_spill] sm:$0xff]  ;;  %v3361_v49 = vpop.permute.xlu2 %1300  ;;  %v4204_v48 = vld [vmem:[#allocation40_spill] sm:$0xff] }
 0x2e0   :  { %v1919_v8 = vpop.eup %1918  ;;  %v1289_v17 = vmul.f32 1.442695, %v1276_v44  ;;  %v1137_v43 = vsub.f32 %v1129_v40, %v3212_v1  ;;  %v1395_v14 = vmul.f32 0.2, %v1379_v39  ;;  %v808_v26 = vmul.f32 %v4203_v24, %v784_v34  ;;  %v4205_v44 = vld [vmem:[#allocation91_spill] sm:$0xff]  ;;  %v4207_v55 = vld [vmem:[#allocation92_spill] sm:$0xff] }
 0x2e1   :  { %v1921_v63 = vpop.eup %1920  ;;  %v921_v30 = vmul.f32 %v1919_v8, %v4202_v23  ;;  %v1426_v54 = vmul.f32 1.442695, %v1413_v13  ;;  %v679_v50 = vadd.f32 %v671_v56, %v534_v19  ;;  %v792_v60 = vadd.f32 %v784_v34, %v655_v62  ;;  %v4206_v19 = vld [vmem:[#allocation41_spill] sm:$0xff]  ;;  %v4208_v56 = vld [vmem:[#allocation22_spill] sm:$0xff] }
 0x2e2   :  { %v1923_v47 = vpop.eup %1922  ;;  %1926 = vpow2.f32 %v1289_v17  ;;  %v1274_v6 = vsub.f32 %v1266_v61, %v3212_v1  ;;  %vm1387_vm10 = vcmp.ge.f32.partialorder %v1379_v39, 0.0  ;;  %vm700_vm11 = vcmp.ge.f32.partialorder %v3175_v4, 0.0  ;;  %v4210_v24 = vld [vmem:[#allocation65_spill] sm:$0xff] }
 0x2e3   :  { %v1925_v51 = vpop.eup %1924  ;;  %v1058_v5 = vmul.f32 %v1923_v47, %v4204_v48  ;;  %1928 = vpow2.f32 %v1426_v54  ;;  %v816_v40 = vadd.f32 %v808_v26, %v679_v50  ;;  %v929_v36 = vadd.f32 %v921_v30, %v792_v60  ;;  %v4209_v60 = vld [vmem:[#allocation64_spill] sm:$0xff] }
 0x2e4   :  { %v945_v13 = vmul.f32 %v4205_v44, %v921_v30  ;;  %v1195_v8 = vmul.f32 %v1925_v51, %v4206_v19  ;;  %v3370_v34 = vadd.f32 %v3275_v28, %v3270_v33  ;;  %1930 = vpow2.f32 %v1011_v22  ;;  %v4212_v28 = vld [vmem:[#allocation75_spill] sm:$0xff] }
 0x2e5   :  { %v1148_v62 = vmul.f32 1.442695, %v1137_v43  ;;  %v1082_v61 = vmul.f32 %v4207_v55, %v1058_v5  ;;  %v3374_v17 = vmul.f32 %v1911_v15, %v4208_v56  ;;  %v1403_v23 = vsel %vm1387_vm10, %v1379_v39, %v1395_v14  ;;  %v4213_v39 = vld [vmem:[#allocation93_spill] sm:$0xff] }
 0x2e6   :  { %v953_v54 = vadd.f32 %v945_v13, %v816_v40  ;;  %v1066_v47 = vadd.f32 %v1058_v5, %v929_v36  ;;  %v924_v50 = vadd.f32 %v3280_v25, %v3292_v29  ;;  %v1285_v30 = vmul.f32 1.442695, %v1274_v6  ;;  %v4214_v40 = vld [vmem:[#allocation69_spill] sm:$0xff]  ;;  %v4215_v13 = vld [vmem:[#allocation28_spill] sm:$0xff] }
 0x2e7   :  { %v4211_v26 = vmax.f32 %v4209_v60, %v4210_v24  ;;  %v389_v22 = vadd.f32 %v4212_v28, %v3201_v21  ;;  %v790_v51 = vadd.f32 %v3374_v17, %v653_v41  ;;  %v1219_v14 = vmul.f32 %v4213_v39, %v1195_v8 }
 0x2e8   :  { %v1927_v43 = vpop.eup %1926  ;;  %v1090_v15 = vadd.f32 %v1082_v61, %v953_v54  ;;  %v1203_v48 = vadd.f32 %v1195_v8, %v1066_v47  ;;  %v3388_v29 = vmul.f32 %v3283_v32, %v2938_v53  ;;  %1932 = vpow2.f32 %v1148_v62  ;;  %v4216_v32 = vld [vmem:[#allocation96_spill] sm:$0xff]  ;;  %v4217_v47 = vld [vmem:[#allocation98_spill] sm:$0xff] }
 0x2e9   :  { %v348_v33 = vadd.f32 %v4211_v26, %v3201_v21  ;;  %v1929_v5 = vpop.eup %1928  ;;  %v1411_v6 = vsub.f32 %v1403_v23, %v3212_v1  ;;  %v1332_v36 = vmul.f32 %v1927_v43, %v4214_v40  ;;  %v3394_v44 = vmul.f32 %v3294_v59, %v3168_v37  ;;  %v1297_v37 = vpop.permute.xlu2 %1296 }
 0x2ea   :  { %v3397_v41 = vmul.f32 %v1921_v63, %v4215_v13  ;;  %v1227_v19 = vadd.f32 %v1219_v14, %v1090_v15  ;;  %v1469_v8 = vmul.f32 %v1929_v5, %v2918_v11  ;;  %v1931_v55 = vpop.eup %1930  ;;  %v1061_v61 = vadd.f32 %v3388_v29, %v924_v50  ;;  %v4218_v11 = vld [vmem:[#allocation47_spill] sm:$0xff]  ;;  %v4219_v50 = vld [vmem:[#allocation76_spill] sm:$0xff] }
 0x2eb   :  { %vm356_vm12 = vcmp.ge.f32.partialorder %v348_v33, 0.0  ;;  %v1340_v53 = vadd.f32 %v1332_v36, %v1203_v48  ;;  %v1356_v62 = vmul.f32 %v4216_v32, %v1332_v36  ;;  %1934 = vpow2.f32 %v1285_v30  ;;  %v3423_v48 = vpop.permute.xlu0 %1461  ;;  %v4221_v5 = vld [vmem:[#allocation104_spill] sm:$0xff] }
 0x2ec   :  { %v927_v1 = vadd.f32 %v3397_v41, %v790_v51  ;;  %v364_v56 = vmul.f32 0.2, %v348_v33  ;;  %v405_v23 = vmul.f32 0.2, %v389_v22  ;;  %v1422_v59 = vmul.f32 1.442695, %v1411_v6 }
 0x2ed   :  { %v1364_v54 = vadd.f32 %v1356_v62, %v1227_v19  ;;  %v3403_v63 = vadd.f32 %v1469_v8, %v1340_v53  ;;  %v1493_v60 = vmul.f32 %v4217_v47, %v1469_v8  ;;  %v3407_v24 = vmul.f32 %v1931_v55, %v4218_v11  ;;  %v4222_v62 = vld [vmem:[#allocation77_spill] sm:$0xff]  ;;  %v4224_v11 = vld [vmem:[#allocation80_spill] sm:$0xff] }
 0x2ee   :  { %v558_v26 = vadd.f32 %v4219_v50, %v3201_v21  ;;  %v418_v28 = vsub.f32 %v3217_v42, %v3170_v35  ;;  %v587_v30 = vsub.f32 %v3231_v52, %v3170_v35  ;;  %v1933_v43 = vpop.eup %1932  ;;  %v716_v51 = vsel %vm700_vm11, %v3175_v4, %v3222_v2 }
 0x2ef   :  { %vm837_vm13 = vcmp.ge.f32.partialorder %v3192_v0, 0.0  ;;  %v3420_v15 = vadd.f32 %v1493_v60, %v1364_v54  ;;  %1936 = vrcp.f32 %v3403_v63  ;;  %v3426_v39 = vmul.f32 %v3312_v20, %v1297_v37 }
 0x2f0   :  { %v1064_v42 = vadd.f32 %v3407_v24, %v927_v1  ;;  %vm397_vm14 = vcmp.ge.f32.partialorder %v389_v22, 0.0  ;;  %v982_v52 = vmul.f32 0.2, %v3242_v10  ;;  %v3431_v14 = vadd.f32 %v3394_v44, %v1061_v61  ;;  %v3460_v1 = vpop.f32.mrf.mxu3 }
 0x2f1   :  { %4220 = vst [vmem:[#allocation54_spill] sm:$0xff] %v3426_v39  ;;  %1938 = vpow2.f32 %v1422_v59  ;;  %v3434_v4 = vsel %vm356_vm12, %v348_v33, %v364_v56  ;;  %vm974_vm15 = vcmp.ge.f32.partialorder %v3242_v10, 0.0  ;;  %v1935_v2 = vpop.eup %1934  ;;  %v3438_v6 = vmul.f32 %v1933_v43, %v4221_v5 }
 0x2f2   :  { %v427_v20 = vmul.f32 1.442695, %v418_v28  ;;  %v724_v40 = vsub.f32 %v716_v51, %v3170_v35  ;;  %v853_v36 = vsel %vm837_vm13, %v3192_v0, %v3237_v9  ;;  %v3445_v13 = vsel %vm397_vm14, %v389_v22, %v405_v23 }
 0x2f3   :  { %vm566_vm0 = vcmp.ge.f32.partialorder %v558_v26, 0.0  ;;  %v596_v19 = vmul.f32 1.442695, %v587_v30  ;;  %v1119_v33 = vmul.f32 0.2, %v3246_v27  ;;  %v1201_v8 = vadd.f32 %v3438_v6, %v1064_v42 }
 0x2f4   :  { %v574_v55 = vmul.f32 0.2, %v558_v26  ;;  %v990_v61 = vsel %vm974_vm15, %v3242_v10, %v982_v52  ;;  %vm1111_vm1 = vcmp.ge.f32.partialorder %v3246_v27, 0.0  ;;  %v3452_v32 = vmul.f32 %v1935_v2, %v3022_v57  ;;  %v4223_v57 = vld [vmem:[#allocation79_spill] sm:$0xff]  ;;  %v1446_v2 = vpop.permute.xlu0 %1445 }
 0x2f5   :  { %v1937_v53 = vpop.eup %1936  ;;  %v3456_v0 = vadd.f32 %v4222_v62, %v3201_v21  ;;  %v861_v9 = vsub.f32 %v853_v36, %v3170_v35  ;;  %v1256_v22 = vmul.f32 0.2, %v3255_v58  ;;  %1940 = vpow2.f32 %v427_v20 }
 0x2f6   :  { %v733_v56 = vmul.f32 1.442695, %v724_v40  ;;  %vm1248_vm2 = vcmp.ge.f32.partialorder %v3255_v58, 0.0  ;;  %v1517_v10 = vmul.f32 %v1937_v53, %v3403_v63  ;;  %v3466_v37 = vadd.f32 %v4223_v57, %v3201_v21  ;;  %v4231_v57 = vld [vmem:[#allocation11_spill] sm:$0xff] }
 0x2f7   :  { %v1939_v23 = vpop.eup %1938  ;;  %1942 = vpow2.f32 %v596_v19  ;;  %v998_v59 = vsub.f32 %v990_v61, %v3170_v35  ;;  %v1127_v54 = vsel %vm1111_vm1, %v3246_v27, %v1119_v33  ;;  %v1338_v47 = vadd.f32 %v3452_v32, %v1201_v8  ;;  %v4226_v27 = vld [vmem:[#allocation99_spill] sm:$0xff]  ;;  %v4229_v33 = vld [vmem:[#allocation81_spill] sm:$0xff] }
 0x2f8   :  { %v3472_v60 = vsel %vm566_vm0, %v558_v26, %v574_v55  ;;  %v3476_v50 = vadd.f32 %v4224_v11, %v3201_v21  ;;  %v1525_v28 = vsub.f32 2.0, %v1517_v10  ;;  %v870_v30 = vmul.f32 1.442695, %v861_v9 }
 0x2f9   :  { %v1264_v43 = vsel %vm1248_vm2, %v3255_v58, %v1256_v22  ;;  %v4225_v51 = vmax.f32 %v2804_v16, %v2808_v18  ;;  %v391_v52 = vadd.f32 %v4226_v27, %v3460_v1  ;;  %v711_v26 = vmul.f32 0.2, %v3456_v0  ;;  %v4228_v18 = vld [vmem:[#allocation82_spill] sm:$0xff] }
 0x2fa   :  { %1944 = vpow2.f32 %v733_v56  ;;  %v1135_v5 = vsub.f32 %v1127_v54, %v3170_v35  ;;  %v1533_v20 = vmul.f32 %v1937_v53, %v1525_v28  ;;  %v3487_v40 = vmul.f32 %v1939_v23, %v1446_v2  ;;  %v4230_v53 = vld [vmem:[#allocation100_spill] sm:$0xff]  ;;  %v3509_v54 = vpop.f32.mrf.mxu3 }
 0x2fb   :  { %v350_v42 = vadd.f32 %v4225_v51, %v3460_v1  ;;  %vm703_vm3 = vcmp.ge.f32.partialorder %v3456_v0, 0.0  ;;  %v3491_v58 = vmul.f32 0.2, %v3466_v37  ;;  %v1007_v36 = vmul.f32 1.442695, %v998_v59  ;;  %v1941_v19 = vpop.eup %1940  ;;  %v4232_v28 = vld [vmem:[#allocation16_spill] sm:$0xff] }
 0x2fc   :  { %4227 = vst [vmem:[#allocation48_spill] sm:$0xff] %v3487_v40  ;;  %v1377_v16 = vadd.f32 %v4228_v18, %v3110_v46  ;;  %v3497_v8 = vadd.f32 %v4229_v33, %v3201_v21  ;;  %v1272_v55 = vsub.f32 %v1264_v43, %v3170_v35  ;;  %v1541_v61 = vmul.f32 %v1533_v20, %v3403_v63 }
 0x2fd   :  { %v560_v62 = vadd.f32 %v4230_v53, %v3460_v1  ;;  %v1943_v9 = vpop.eup %1942  ;;  %v3504_v22 = vadd.f32 %v3487_v40, %v1338_v47  ;;  %1946 = vpow2.f32 %v870_v30  ;;  %v366_v56 = vmul.f32 0.2, %v350_v42 }
 0x2fe   :  { %v407_v10 = vmul.f32 0.2, %v391_v52  ;;  %v1144_v46 = vmul.f32 1.442695, %v1135_v5  ;;  %v1549_v23 = vsub.f32 2.0, %v1541_v61  ;;  %vm358_vm4 = vcmp.ge.f32.partialorder %v350_v42, 0.0 }
 0x2ff   :  { %vm399_vm5 = vcmp.ge.f32.partialorder %v391_v52, 0.0  ;;  %v3507_v59 = vmul.f32 %v1941_v19, %v4231_v57  ;;  %1948 = vpow2.f32 %v1007_v36  ;;  %vm1385_vm6 = vcmp.ge.f32.partialorder %v1377_v16, 0.0  ;;  %v4233_v5 = vld [vmem:[#allocation101_spill] sm:$0xff]  ;;  %v4235_v19 = vld [vmem:[#allocation102_spill] sm:$0xff] }
 0x300   :  { %v1393_v63 = vmul.f32 0.2, %v1377_v16  ;;  %v1945_v11 = vpop.eup %1944  ;;  %v3512_v43 = vmul.f32 %v1943_v9, %v4232_v28  ;;  %v1281_v47 = vmul.f32 1.442695, %v1272_v55  ;;  %v1557_v30 = vmul.f32 %v1549_v23, %v1533_v20 }
 0x301   :  { %v576_v51 = vmul.f32 0.2, %v560_v62  ;;  %v3514_v27 = vsel %vm358_vm4, %v350_v42, %v366_v56  ;;  %v415_v2 = vsel %vm399_vm5, %v391_v52, %v407_v10  ;;  %vm568_vm7 = vcmp.ge.f32.partialorder %v560_v62, 0.0  ;;  %v4237_v52 = vld [vmem:[#allocation20_spill] sm:$0xff] }
 0x302   :  { %v697_v18 = vadd.f32 %v4233_v5, %v3460_v1  ;;  %v3519_v36 = vmul.f32 %v1557_v30, %v3420_v15  ;;  %v834_v33 = vadd.f32 %v4235_v19, %v3460_v1  ;;  %v4236_v61 = vmax.f32 %v2852_v12, %v2856_v3  ;;  %v4239_v5 = vld [vmem:[#allocation105_spill] sm:$0xff] }
 0x303   :  { %v421_v42 = vsub.f32 %v3445_v13, %v3434_v4  ;;  %v3529_v20 = vpop.eup %1946  ;;  %v3532_v53 = vmul.f32 %v1945_v11, %v4237_v52  ;;  %1950 = vpow2.f32 %v1144_v46  ;;  %v3535_v15 = vsel %vm1385_vm6, %v1377_v16, %v1393_v63 }
 0x304   :  { %4234 = vst [vmem:[#allocation57_spill] sm:$0xff] %v3519_v36  ;;  %v351_v55 = vadd.f32 %v4236_v61, %v3509_v54  ;;  %v590_v9 = vsub.f32 %v3472_v60, %v3434_v4  ;;  %v3541_v56 = vadd.f32 %v3512_v43, %v3507_v59  ;;  %1952 = vpow2.f32 %v1281_v47  ;;  %v4272_v36 = vld [vmem:[#allocation106_spill] sm:$0xff] }
 0x305   :  { %v584_v12 = vsel %vm568_vm7, %v560_v62, %v576_v51  ;;  %v392_v3 = vadd.f32 %v2864_v38, %v3509_v54  ;;  %v3545_v13 = vpop.eup %1948  ;;  %vm705_vm8 = vcmp.ge.f32.partialorder %v697_v18, 0.0  ;;  %v713_v10 = vmul.f32 0.2, %v697_v18  ;;  %v4238_v62 = vld [vmem:[#allocation103_spill] sm:$0xff] }
 0x306   :  { %v561_v16 = vadd.f32 %v2868_v31, %v3509_v54  ;;  %v423_v46 = vsub.f32 %v415_v2, %v3514_v27  ;;  %v850_v23 = vmul.f32 0.2, %v834_v33  ;;  %v367_v60 = vmul.f32 0.2, %v351_v55 }
 0x307   :  { %v433_v57 = vmul.f32 1.442695, %v421_v42  ;;  %v719_v63 = vsel %vm703_vm3, %v3456_v0, %v711_v26  ;;  %v971_v11 = vadd.f32 %v4238_v62, %v3460_v1  ;;  %v602_v38 = vmul.f32 1.442695, %v590_v9  ;;  %v4240_v42 = vld [vmem:[#allocation115_spill] sm:$0xff] }
 0x308   :  { %vm840_vm9 = vcmp.ge.f32.partialorder %v3466_v37, 0.0  ;;  %v985_v28 = vmul.f32 0.2, %v3476_v50  ;;  %vm359_vm10 = vcmp.ge.f32.partialorder %v351_v55, 0.0  ;;  %v408_v47 = vmul.f32 0.2, %v392_v3 }
 0x309   :  { %vm977_vm11 = vcmp.ge.f32.partialorder %v3476_v50, 0.0  ;;  %v437_v31 = vmul.f32 1.442695, %v423_v46  ;;  %v3558_v30 = vpop.eup %1950  ;;  %vm400_vm12 = vcmp.ge.f32.partialorder %v392_v3, 0.0  ;;  %v577_v51 = vmul.f32 0.2, %v561_v16 }
 0x30a   :  { %v727_v2 = vsub.f32 %v719_v63, %v3434_v4  ;;  %v592_v0 = vsub.f32 %v584_v12, %v3514_v27  ;;  %v3562_v26 = vpop.eup %1952  ;;  %v1108_v19 = vadd.f32 %v4239_v5, %v3460_v1  ;;  %vm569_vm13 = vcmp.ge.f32.partialorder %v561_v16, 0.0 }
 0x30b   :  { %1954 = vpow2.f32 %v433_v57  ;;  %v856_v61 = vsel %vm840_vm9, %v3466_v37, %v3491_v58  ;;  %v3570_v52 = vadd.f32 %v4240_v42, %v3509_v54  ;;  %v993_v9 = vsel %vm977_vm11, %v3476_v50, %v985_v28 }
 0x30c   :  { %1956 = vpow2.f32 %v602_v38  ;;  %v606_v46 = vmul.f32 1.442695, %v592_v0  ;;  %v3574_v12 = vsel %vm359_vm10, %v351_v55, %v367_v60  ;;  %v3576_v63 = vsel %vm400_vm12, %v392_v3, %v408_v47 }
 0x30d   :  { %1958 = vpow2.f32 %v437_v31  ;;  %v721_v62 = vsel %vm705_vm8, %v697_v18, %v713_v10  ;;  %v3579_v57 = vsel %vm569_vm13, %v561_v16, %v577_v51  ;;  %v739_v5 = vmul.f32 1.442695, %v727_v2  ;;  %v4241_v16 = vld [vmem:[#allocation127_spill] sm:$0xff] }
 0x30e   :  { %v864_v37 = vsub.f32 %v856_v61, %v3434_v4  ;;  %1960 = vpow2.f32 %v606_v46  ;;  %v1001_v58 = vsub.f32 %v993_v9, %v3434_v4  ;;  %v1122_v38 = vmul.f32 0.2, %v3497_v8 }
 0x30f   :  { %v729_v50 = vsub.f32 %v721_v62, %v3514_v27  ;;  %vm842_vm14 = vcmp.ge.f32.partialorder %v834_v33, 0.0  ;;  %vm706_vm15 = vcmp.ge.f32.partialorder %v3570_v52, 0.0  ;;  %vm1114_vm0 = vcmp.ge.f32.partialorder %v3497_v8, 0.0 }
 0x310   :  { %v858_v18 = vsel %vm842_vm14, %v834_v33, %v850_v23  ;;  %v593_v10 = vsub.f32 %v3579_v57, %v3574_v12  ;;  %v1243_v60 = vadd.f32 %v4241_v16, %v3201_v21  ;;  %vm979_vm1 = vcmp.ge.f32.partialorder %v971_v11, 0.0 }
 0x311   :  { %v1955_v3 = vpop.eup %1954  ;;  %v743_v28 = vmul.f32 1.442695, %v729_v50  ;;  %v714_v31 = vmul.f32 0.2, %v3570_v52  ;;  %v1380_v51 = vadd.f32 %v2942_v7, %v3201_v21  ;;  %v866_v2 = vsub.f32 %v858_v18, %v3514_v27  ;;  %v4242_v50 = vld [vmem:[#allocation14_spill] sm:$0xff] }
 0x312   :  { %v1957_v47 = vpop.eup %1956  ;;  %v987_v0 = vmul.f32 0.2, %v971_v11  ;;  %1962 = vpow2.f32 %v739_v5  ;;  %v876_v33 = vmul.f32 1.442695, %v864_v37  ;;  %v1013_v23 = vmul.f32 1.442695, %v1001_v58 }
 0x313   :  { %v1959_v61 = vpop.eup %1958  ;;  %v1130_v42 = vsel %vm1114_vm0, %v3497_v8, %v1122_v38  ;;  %1964 = vpow2.f32 %v743_v28  ;;  %v880_v46 = vmul.f32 1.442695, %v866_v2  ;;  %vm1116_vm2 = vcmp.ge.f32.partialorder %v1108_v19, 0.0  ;;  %v4243_v58 = vld [vmem:[#allocation19_spill] sm:$0xff]  ;;  %v4244_v38 = vld [vmem:[#allocation13_spill] sm:$0xff] }
 0x314   :  { %v1961_v9 = vpop.eup %1960  ;;  %v995_v62 = vsel %vm979_vm1, %v971_v11, %v987_v0  ;;  %vm1251_vm3 = vcmp.ge.f32.partialorder %v1243_v60, 0.0  ;;  %v1259_v57 = vmul.f32 0.2, %v1243_v60  ;;  %v1124_v21 = vmul.f32 0.2, %v1108_v19  ;;  %v4245_v11 = vld [vmem:[#allocation18_spill] sm:$0xff] }
 0x315   :  { %v1003_v7 = vsub.f32 %v995_v62, %v3514_v27  ;;  %v3602_v18 = vmul.f32 %v1955_v3, %v4242_v50  ;;  %vm1388_vm4 = vcmp.ge.f32.partialorder %v1380_v51, 0.0  ;;  %v1396_v5 = vmul.f32 0.2, %v1380_v51 }
 0x316   :  { %v1245_v37 = vadd.f32 %v2975_v45, %v3460_v1  ;;  %v3607_v8 = vmul.f32 %v1957_v47, %v4243_v58  ;;  %v3610_v16 = vmul.f32 %v1959_v61, %v4244_v38  ;;  %v3613_v28 = vmul.f32 %v1961_v9, %v4245_v11  ;;  %v4246_v47 = vld [vmem:[#allocation138_spill] sm:$0xff]  ;;  %v4249_v11 = vld [vmem:[#allocation24_spill] sm:$0xff] }
 0x317   :  { %v1132_v2 = vsel %vm1116_vm2, %v1108_v19, %v1124_v21  ;;  %1966 = vpow2.f32 %v880_v46  ;;  %v1017_v0 = vmul.f32 1.442695, %v1003_v7  ;;  %v1138_v50 = vsub.f32 %v1130_v42, %v3434_v4 }
 0x318   :  { %v1140_v3 = vsub.f32 %v1132_v2, %v3514_v27  ;;  %vm1253_vm5 = vcmp.ge.f32.partialorder %v1245_v37, 0.0  ;;  %v1963_v62 = vpop.eup %1962  ;;  %1968 = vpow2.f32 %v876_v33  ;;  %v1261_v45 = vmul.f32 0.2, %v1245_v37 }
 0x319   :  { %v1382_v58 = vadd.f32 %v4246_v47, %v3460_v1  ;;  %v1965_v55 = vpop.eup %1964  ;;  %v722_v61 = vsel %vm706_vm15, %v3570_v52, %v714_v31  ;;  %1970 = vpow2.f32 %v1013_v23  ;;  %v1267_v19 = vsel %vm1251_vm3, %v1243_v60, %v1259_v57  ;;  %v4247_v31 = vld [vmem:[#allocation23_spill] sm:$0xff] }
 0x31a   :  { %v1404_v9 = vsel %vm1388_vm4, %v1380_v51, %v1396_v5  ;;  %v656_v46 = vadd.f32 %v3613_v28, %v3610_v16  ;;  %v1269_v33 = vsel %vm1253_vm5, %v1245_v37, %v1261_v45  ;;  %v654_v7 = vadd.f32 %v3607_v8, %v3602_v18 }
 0x31b   :  { %vm1390_vm6 = vcmp.ge.f32.partialorder %v1382_v58, 0.0  ;;  %v1398_v42 = vmul.f32 0.2, %v1382_v58  ;;  %1972 = vpow2.f32 %v1017_v0  ;;  %v1154_v1 = vmul.f32 1.442695, %v1140_v3 }
 0x31c   :  { %v1277_v21 = vsub.f32 %v1269_v33, %v3514_v27  ;;  %v1150_v38 = vmul.f32 1.442695, %v1138_v50  ;;  %v1275_v52 = vsub.f32 %v1267_v19, %v3434_v4  ;;  %v3631_v60 = vmul.f32 %v1965_v55, %v4247_v31  ;;  %v4250_v55 = vld [vmem:[#allocation116_spill] sm:$0xff]  ;;  %v4252_v33 = vld [vmem:[#allocation25_spill] sm:$0xff] }
 0x31d   :  { %v1406_v51 = vsel %vm1390_vm6, %v1382_v58, %v1398_v42  ;;  %v1967_v23 = vpop.eup %1966  ;;  %v1409_v57 = vsub.f32 %v3535_v15, %v3170_v35  ;;  %v4248_v5 = vsub.f32 %v3576_v63, %v3574_v12  ;;  %v3639_v2 = vmul.f32 %v1963_v62, %v4249_v11 }
 0x31e   :  { %v1412_v0 = vsub.f32 %v1404_v9, %v3434_v4  ;;  %v1969_v3 = vpop.eup %1968  ;;  %v608_v50 = vmul.f32 1.442695, %v593_v10  ;;  %v730_v45 = vsub.f32 %v722_v61, %v3574_v12  ;;  %v835_v47 = vadd.f32 %v4250_v55, %v3509_v54  ;;  %v4251_v10 = vld [vmem:[#allocation30_spill] sm:$0xff]  ;;  %v1434_v55 = vpop.permute.xlu1 %1433 }
 0x31f   :  { %v439_v37 = vmul.f32 1.442695, %v4248_v5  ;;  %v793_v58 = vadd.f32 %v3631_v60, %v656_v46  ;;  %v1971_v19 = vpop.eup %1970  ;;  %v791_v35 = vadd.f32 %v3639_v2, %v654_v7  ;;  %1974 = vpow2.f32 %v1154_v1  ;;  %v4253_v46 = vld [vmem:[#allocation32_spill] sm:$0xff] }
 0x320   :  { %v1291_v15 = vmul.f32 1.442695, %v1277_v21  ;;  %v1414_v63 = vsub.f32 %v1406_v51, %v3514_v27  ;;  %v788_v62 = vadd.f32 %v3532_v53, %v3541_v56  ;;  %1976 = vpow2.f32 %v1150_v38  ;;  %v4254_v21 = vld [vmem:[#allocation117_spill] sm:$0xff] }
 0x321   :  { %v1287_v4 = vmul.f32 1.442695, %v1275_v52  ;;  %v3651_v9 = vmul.f32 %v1967_v23, %v4251_v10  ;;  %v1973_v61 = vpop.eup %1972  ;;  %v3655_v42 = vmul.f32 %v3529_v20, %v4252_v33  ;;  %1978 = vpow2.f32 %v439_v37  ;;  %v4255_v23 = vld [vmem:[#allocation37_spill] sm:$0xff] }
 0x322   :  { %v3658_v7 = vmul.f32 %v1969_v3, %v4253_v46  ;;  %v1424_v1 = vmul.f32 1.442695, %v1412_v0  ;;  %1980 = vpow2.f32 %v608_v50  ;;  %v745_v27 = vmul.f32 1.442695, %v730_v45  ;;  %v4256_v3 = vld [vmem:[#allocation45_spill] sm:$0xff] }
 0x323   :  { %v972_v56 = vadd.f32 %v4254_v21, %v3509_v54  ;;  %v930_v38 = vadd.f32 %v3651_v9, %v793_v58  ;;  %v851_v52 = vmul.f32 0.2, %v835_v47  ;;  %1982 = vpow2.f32 %v1291_v15  ;;  %v4257_v58 = vld [vmem:[#allocation160_spill] sm:$0xff]  ;;  %v4259_v15 = vld [vmem:[#allocation118_spill] sm:$0xff] }
 0x324   :  { %v928_v31 = vadd.f32 %v3658_v7, %v791_v35  ;;  %v1428_v51 = vmul.f32 1.442695, %v1414_v63  ;;  %v925_v20 = vadd.f32 %v3655_v42, %v788_v62  ;;  %vm843_vm7 = vcmp.ge.f32.partialorder %v835_v47, 0.0 }
 0x325   :  { %1984 = vpow2.f32 %v1287_v4  ;;  %v3666_v5 = vmul.f32 %v1973_v61, %v4255_v23  ;;  %v1975_v37 = vpop.eup %1974  ;;  %v3670_v11 = vadd.f32 %v3426_v39, %v3431_v14  ;;  %v1418_v0 = vmul.f32 1.442695, %v1409_v57 }
 0x326   :  { %v3673_v50 = vmul.f32 %v1971_v19, %v4256_v3  ;;  %1986 = vpow2.f32 %v1424_v1  ;;  %v1977_v45 = vpop.eup %1976  ;;  %v3677_v35 = vmul.f32 %v3545_v13, %v4257_v58  ;;  %v1109_v63 = vadd.f32 %v4259_v15, %v3509_v54  ;;  %v4260_v13 = vld [vmem:[#allocation167_spill] sm:$0xff]  ;;  %v4261_v1 = vld [vmem:[#allocation26_spill] sm:$0xff] }
 0x327   :  { %1988 = vpow2.f32 %v745_v27  ;;  %v1067_v62 = vadd.f32 %v3666_v5, %v930_v38  ;;  %v1979_v4 = vpop.eup %1978  ;;  %v859_v14 = vsel %vm843_vm7, %v835_v47, %v851_v52  ;;  %v988_v10 = vmul.f32 0.2, %v972_v56  ;;  %v4263_v47 = vld [vmem:[#allocation119_spill] sm:$0xff]  ;;  %v4264_v38 = vld [vmem:[#allocation94_spill] sm:$0xff] }
 0x328   :  { %4258 = vst [vmem:[#allocation42_spill] sm:$0xff] %v3677_v35  ;;  %v1065_v57 = vadd.f32 %v3673_v50, %v928_v31  ;;  %1990 = vpow2.f32 %v1428_v51  ;;  %v1981_v19 = vpop.eup %1980  ;;  %v1062_v61 = vadd.f32 %v3677_v35, %v925_v20  ;;  %vm980_vm8 = vcmp.ge.f32.partialorder %v972_v56, 0.0  ;;  %v4266_v51 = vld [vmem:[#allocation164_spill] sm:$0xff]  ;;  %v4278_v35 = vld [vmem:[#allocation155_spill] sm:$0xff] }
 0x329   :  { %1992 = vrcp.f32 %v3504_v22  ;;  %v3686_v33 = vmul.f32 %v1975_v37, %v4260_v13  ;;  %v1983_v46 = vpop.eup %1982  ;;  %v3689_v27 = vmul.f32 %v4261_v1, %v1434_v55  ;;  %v1246_v21 = vadd.f32 %v4263_v47, %v3509_v54 }
 0x32a   :  { %1994 = vpow2.f32 %v1418_v0  ;;  %v3694_v52 = vmul.f32 %v1977_v45, %v4264_v38  ;;  %v3698_v23 = vmul.f32 %v3558_v30, %v4266_v51  ;;  %v3702_v20 = vmul.f32 %v3562_v26, %v3361_v49  ;;  %v4268_v45 = vld [vmem:[#allocation15_spill] sm:$0xff]  ;;  %v4270_v49 = vld [vmem:[#allocation21_spill] sm:$0xff] }
 0x32b   :  { %4262 = vst [vmem:[#allocation58_spill] sm:$0xff] %v3689_v27  ;;  %v1985_v31 = vpop.eup %1984  ;;  %v867_v37 = vsub.f32 %v859_v14, %v3574_v12  ;;  %v1204_v3 = vadd.f32 %v3686_v33, %v1067_v62  ;;  %v996_v55 = vsel %vm980_vm8, %v972_v56, %v988_v10  ;;  %v1125_v58 = vmul.f32 0.2, %v1109_v63  ;;  %v4269_v30 = vld [vmem:[#allocation59_spill] sm:$0xff]  ;;  %v4271_v14 = vld [vmem:[#allocation53_spill] sm:$0xff]  ;;  %v4273_v56 = vld [vmem:[#allocation120_spill] sm:$0xff] }
 0x32c   :  { %4265 = vst [vmem:[#allocation84_spill] sm:$0xff] %v3694_v52  ;;  %v1987_v0 = vpop.eup %1986  ;;  %v1202_v15 = vadd.f32 %v3694_v52, %v1065_v57  ;;  %v480_v13 = vmul.f32 %v1979_v4, %v4268_v45  ;;  %v1199_v47 = vadd.f32 %v3698_v23, %v1062_v61  ;;  %vm1117_vm9 = vcmp.ge.f32.partialorder %v1109_v63, 0.0  ;;  %v4274_v57 = vld [vmem:[#allocation136_spill] sm:$0xff]  ;;  %v4276_v61 = vld [vmem:[#allocation169_spill] sm:$0xff]  ;;  %v4280_v52 = vld [vmem:[#allocation27_spill] sm:$0xff] }
 0x32d   :  { %4267 = vst [vmem:[#allocation60_spill] sm:$0xff] %v3698_v23  ;;  %v1989_v1 = vpop.eup %1988  ;;  %v3710_v38 = vmul.f32 %v1983_v46, %v4269_v30  ;;  %v649_v26 = vmul.f32 %v1981_v19, %v4270_v49  ;;  %v532_v62 = vmul.f32 %v4272_v36, %v4271_v14  ;;  %v1262_v39 = vmul.f32 0.2, %v1246_v21  ;;  %v4277_v14 = vld [vmem:[#allocation154_spill] sm:$0xff] }
 0x32e   :  { %v1991_v51 = vpop.eup %1990  ;;  %v1383_v10 = vadd.f32 %v4273_v56, %v3509_v54  ;;  %v3718_v40 = vmul.f32 %v1985_v31, %v4274_v57  ;;  %v3723_v45 = vmul.f32 %v1987_v0, %v4276_v61  ;;  %v882_v30 = vmul.f32 1.442695, %v867_v37  ;;  %v4279_v56 = vld [vmem:[#allocation114_spill] sm:$0xff] }
 0x32f   :  { %v3720_v4 = vpop.eup %1992  ;;  %v1341_v46 = vadd.f32 %v3710_v38, %v1204_v3  ;;  %v1004_v19 = vsub.f32 %v996_v55, %v3574_v12  ;;  %v536_v23 = vmul.f32 %v4277_v14, %v480_v13  ;;  %v673_v54 = vmul.f32 %v4278_v35, %v649_v26  ;;  %v1438_v14 = vpop.permute.xlu0 %1437 }
 0x330   :  { %4275 = vst [vmem:[#allocation85_spill] sm:$0xff] %v3718_v40  ;;  %v1995_v49 = vpop.eup %1994  ;;  %v1339_v36 = vadd.f32 %v3718_v40, %v1202_v15  ;;  %v1133_v31 = vsel %vm1117_vm9, %v1109_v63, %v1125_v58  ;;  %v3732_v57 = vmul.f32 %v1991_v51, %v4279_v56  ;;  %v786_v0 = vmul.f32 %v1989_v1, %v4280_v52  ;;  %v4281_v63 = vld [vmem:[#allocation36_spill] sm:$0xff]  ;;  %v4282_v58 = vld [vmem:[#allocation107_spill] sm:$0xff] }
 0x331   :  { %1996 = vpow2.f32 %v882_v30  ;;  %v1019_v61 = vmul.f32 1.442695, %v1004_v19  ;;  %v657_v3 = vadd.f32 %v649_v26, %v480_v13  ;;  %v1141_v37 = vsub.f32 %v1133_v31, %v3574_v12 }
 0x332   :  { %vm1254_vm10 = vcmp.ge.f32.partialorder %v1246_v21, 0.0  ;;  %vm1391_vm11 = vcmp.ge.f32.partialorder %v1383_v10, 0.0  ;;  %v3737_v55 = vadd.f32 %v3732_v57, %v1341_v46  ;;  %v1399_v35 = vmul.f32 0.2, %v1383_v10 }
 0x333   :  { %1998 = vpow2.f32 %v1019_v61  ;;  %v1270_v15 = vsel %vm1254_vm10, %v1246_v21, %v1262_v39  ;;  %v669_v51 = vmul.f32 %v4282_v58, %v4281_v63  ;;  %v681_v56 = vadd.f32 %v673_v54, %v536_v23  ;;  %v4283_v21 = vld [vmem:[#allocation158_spill] sm:$0xff]  ;;  %v4290_v58 = vld [vmem:[#allocation51_spill] sm:$0xff] }
 0x334   :  { %v1156_v40 = vmul.f32 1.442695, %v1141_v37  ;;  %v1278_v52 = vsub.f32 %v1270_v15, %v3574_v12  ;;  %v3744_v13 = vadd.f32 %v3689_v27, %v3670_v11  ;;  %v1336_v1 = vadd.f32 %v3702_v20, %v1199_v47  ;;  %v4284_v23 = vld [vmem:[#allocation62_spill] sm:$0xff] }
 0x335   :  { %v3748_v26 = vadd.f32 %v3723_v45, %v1339_v36  ;;  %v1407_v46 = vsel %vm1391_vm11, %v1383_v10, %v1399_v35  ;;  %v794_v39 = vadd.f32 %v786_v0, %v657_v3  ;;  %v810_v30 = vmul.f32 %v4283_v21, %v786_v0  ;;  %v4285_v36 = vld [vmem:[#allocation34_spill] sm:$0xff]  ;;  %v4286_v0 = vld [vmem:[#allocation109_spill] sm:$0xff]  ;;  %v4287_v35 = vld [vmem:[#allocation159_spill] sm:$0xff] }
 0x336   :  { %2000 = vpow2.f32 %v1156_v40  ;;  %v1293_v19 = vmul.f32 1.442695, %v1278_v52  ;;  %v940_v54 = vmul.f32 %v4284_v23, %v3280_v25  ;;  %v3753_v61 = vmul.f32 %v1995_v49, %v1438_v14  ;;  %v4289_v63 = vld [vmem:[#allocation50_spill] sm:$0xff] }
 0x337   :  { %v1997_v31 = vpop.eup %1996  ;;  %2002 = vrcp.f32 %v3737_v55  ;;  %v1415_v11 = vsub.f32 %v1407_v46, %v3574_v12  ;;  %v677_v47 = vadd.f32 %v669_v51, %v532_v62  ;;  %v818_v37 = vadd.f32 %v810_v30, %v681_v56  ;;  %v4288_v62 = vld [vmem:[#allocation33_spill] sm:$0xff]  ;;  %v4291_v56 = vld [vmem:[#allocation130_spill] sm:$0xff] }
 0x338   :  { %v923_v15 = vmul.f32 %v1997_v31, %v4285_v36  ;;  %2004 = vpow2.f32 %v1293_v19  ;;  %v3760_v40 = vadd.f32 %v3753_v61, %v1336_v1  ;;  %v806_v25 = vmul.f32 %v4286_v0, %v3374_v17  ;;  %v4292_v1 = vld [vmem:[#allocation131_spill] sm:$0xff] }
 0x339   :  { %v1999_v10 = vpop.eup %1998  ;;  %2006 = vrcp.f32 %v3744_v13  ;;  %v1430_v49 = vmul.f32 1.442695, %v1415_v11  ;;  %v3769_v51 = vmul.f32 %v4290_v58, %v4289_v63  ;;  %v535_v52 = vmul.f32 %v4291_v56, %v3610_v16  ;;  %v4294_v11 = vld [vmem:[#allocation56_spill] sm:$0xff]  ;;  %v4295_v16 = vld [vmem:[#allocation35_spill] sm:$0xff] }
 0x33a   :  { %2008 = vrcp.f32 %v3748_v26  ;;  %v931_v3 = vadd.f32 %v923_v15, %v794_v39  ;;  %v947_v12 = vmul.f32 %v4287_v35, %v923_v15  ;;  %v1060_v14 = vmul.f32 %v1999_v10, %v4288_v62  ;;  %v4293_v39 = vld [vmem:[#allocation161_spill] sm:$0xff] }
 0x33b   :  { %v672_v46 = vmul.f32 %v4292_v1, %v3613_v28  ;;  %2010 = vpow2.f32 %v1430_v49  ;;  %v814_v21 = vadd.f32 %v806_v25, %v677_v47  ;;  %v811_v36 = vadd.f32 %v4294_v11, %v3370_v34  ;;  %v4296_v28 = vld [vmem:[#allocation110_spill] sm:$0xff]  ;;  %v4297_v47 = vld [vmem:[#allocation121_spill] sm:$0xff] }
 0x33c   :  { %v2001_v17 = vpop.eup %2000  ;;  %v955_v30 = vadd.f32 %v947_v12, %v818_v37  ;;  %v1068_v19 = vadd.f32 %v1060_v14, %v931_v3  ;;  %v1084_v31 = vmul.f32 %v4293_v39, %v1060_v14  ;;  %v1515_v15 = vmul.f32 %v3720_v4, %v3504_v22  ;;  %v4298_v25 = vld [vmem:[#allocation122_spill] sm:$0xff]  ;;  %v4307_v11 = vld [vmem:[#allocation141_spill] sm:$0xff] }
 0x33d   :  { %v2003_v23 = vpop.eup %2002  ;;  %2012 = vrcp.f32 %v3760_v40  ;;  %v1197_v10 = vmul.f32 %v2001_v17, %v4295_v16  ;;  %v943_v49 = vmul.f32 %v4296_v28, %v3397_v41  ;;  %v533_v37 = vmul.f32 %v4297_v47, %v3602_v18  ;;  %v4299_v14 = vld [vmem:[#allocation162_spill] sm:$0xff]  ;;  %v4301_v41 = vld [vmem:[#allocation63_spill] sm:$0xff]  ;;  %v4302_v18 = vld [vmem:[#allocation132_spill] sm:$0xff] }
 0x33e   :  { %v2005_v0 = vpop.eup %2004  ;;  %v670_v3 = vmul.f32 %v4298_v25, %v3607_v8  ;;  %v1092_v35 = vadd.f32 %v1084_v31, %v955_v30  ;;  %v680_v34 = vadd.f32 %v672_v46, %v535_v52  ;;  %v4300_v1 = vld [vmem:[#allocation38_spill] sm:$0xff]  ;;  %v1077_v16 = vmul.f32 %v4301_v41, %v3388_v29  ;;  %v4303_v46 = vld [vmem:[#allocation163_spill] sm:$0xff]  ;;  %v4304_v25 = vld [vmem:[#allocation156_spill] sm:$0xff] }
 0x33f   :  { %v3788_v12 = vpop.eup %2006  ;;  %v1205_v62 = vadd.f32 %v1197_v10, %v1068_v19  ;;  %v1221_v56 = vmul.f32 %v4299_v14, %v1197_v10  ;;  %v1334_v39 = vmul.f32 %v2005_v0, %v4300_v1  ;;  %v951_v28 = vadd.f32 %v943_v49, %v814_v21  ;;  %v4305_v0 = vld [vmem:[#allocation140_spill] sm:$0xff]  ;;  %v4306_v1 = vld [vmem:[#allocation157_spill] sm:$0xff] }
 0x340   :  { %v2009_v17 = vpop.eup %2008  ;;  %v809_v47 = vmul.f32 %v4302_v18, %v3631_v60  ;;  %v1518_v30 = vmul.f32 %v2003_v23, %v3737_v55  ;;  %v678_v10 = vadd.f32 %v670_v3, %v533_v37  ;;  %v531_v14 = vmul.f32 %v4305_v0, %v4304_v25  ;;  %v4309_v37 = vld [vmem:[#allocation123_spill] sm:$0xff]  ;;  %v4317_v25 = vld [vmem:[#allocation142_spill] sm:$0xff] }
 0x341   :  { %v2011_v8 = vpop.eup %2010  ;;  %v1229_v31 = vadd.f32 %v1221_v56, %v1092_v35  ;;  %v1342_v52 = vadd.f32 %v1334_v39, %v1205_v62  ;;  %v1358_v19 = vmul.f32 %v4303_v46, %v1334_v39  ;;  %v668_v27 = vmul.f32 %v4307_v11, %v4306_v1  ;;  %v4308_v35 = vld [vmem:[#allocation111_spill] sm:$0xff] }
 0x342   :  { %v3804_v29 = vmul.f32 %v2011_v8, %v3423_v48  ;;  %v948_v60 = vadd.f32 %v940_v54, %v811_v36  ;;  %v1523_v49 = vsub.f32 2.0, %v1515_v15  ;;  %v817_v41 = vadd.f32 %v809_v47, %v680_v34  ;;  %v4310_v48 = vld [vmem:[#allocation133_spill] sm:$0xff]  ;;  %v4311_v54 = vld [vmem:[#allocation147_spill] sm:$0xff]  ;;  %v4312_v15 = vld [vmem:[#allocation148_spill] sm:$0xff] }
 0x343   :  { %v3806_v21 = vpop.eup %2012  ;;  %v3808_v18 = vadd.f32 %v1358_v19, %v1229_v31  ;;  %v1080_v62 = vmul.f32 %v4308_v35, %v3407_v24  ;;  %v807_v3 = vmul.f32 %v4309_v37, %v3639_v2  ;;  %v1516_v56 = vmul.f32 %v2009_v17, %v3748_v26  ;;  %v4313_v2 = vld [vmem:[#allocation66_spill] sm:$0xff] }
 0x344   :  { %v3816_v39 = vadd.f32 %v3804_v29, %v1342_v52  ;;  %v946_v11 = vmul.f32 %v4310_v48, %v3651_v9  ;;  %v1526_v8 = vsub.f32 2.0, %v1518_v30  ;;  %v530_v36 = vmul.f32 %v4311_v54, %v3507_v59  ;;  %v4314_v59 = vld [vmem:[#allocation112_spill] sm:$0xff] }
 0x345   :  { %v667_v34 = vmul.f32 %v4312_v15, %v3512_v43  ;;  %v1088_v47 = vadd.f32 %v1080_v62, %v951_v28  ;;  %v815_v24 = vadd.f32 %v807_v3, %v678_v10  ;;  %v676_v31 = vadd.f32 %v668_v27, %v531_v14  ;;  %v4315_v43 = vld [vmem:[#allocation124_spill] sm:$0xff]  ;;  %v4316_v10 = vld [vmem:[#allocation166_spill] sm:$0xff] }
 0x346   :  { %2014 = vrcp.f32 %v3816_v39  ;;  %v3827_v46 = vmul.f32 %v4313_v2, %v3394_v44  ;;  %v1512_v52 = vmul.f32 %v3788_v12, %v3744_v13  ;;  %v1513_v9 = vmul.f32 %v3806_v21, %v3760_v40  ;;  %v4318_v44 = vld [vmem:[#allocation134_spill] sm:$0xff] }
 0x347   :  { %v954_v30 = vadd.f32 %v946_v11, %v817_v41  ;;  %v1217_v19 = vmul.f32 %v4314_v59, %v3438_v6  ;;  %v944_v28 = vmul.f32 %v4315_v43, %v3658_v7  ;;  %v1524_v27 = vsub.f32 2.0, %v1516_v56  ;;  %v4319_v56 = vld [vmem:[#allocation149_spill] sm:$0xff]  ;;  %v4327_v43 = vld [vmem:[#allocation126_spill] sm:$0xff] }
 0x348   :  { %v805_v0 = vmul.f32 %v4317_v25, %v4316_v10  ;;  %v3839_v14 = vadd.f32 %v1077_v16, %v948_v60  ;;  %v1083_v1 = vmul.f32 %v4318_v44, %v3666_v5  ;;  %v1534_v35 = vmul.f32 %v2003_v23, %v1526_v8  ;;  %v4320_v16 = vld [vmem:[#allocation113_spill] sm:$0xff]  ;;  %v4328_v10 = vld [vmem:[#allocation170_spill] sm:$0xff]  ;;  %v4329_v25 = vld [vmem:[#allocation144_spill] sm:$0xff] }
 0x349   :  { %v675_v62 = vadd.f32 %v667_v34, %v530_v36  ;;  %v1225_v37 = vadd.f32 %v1217_v19, %v1088_v47  ;;  %v3844_v41 = vmul.f32 %v3720_v4, %v1523_v49  ;;  %v952_v3 = vadd.f32 %v944_v28, %v815_v24  ;;  %v4321_v5 = vld [vmem:[#allocation125_spill] sm:$0xff]  ;;  %v4322_v36 = vld [vmem:[#allocation168_spill] sm:$0xff]  ;;  %v4323_v34 = vld [vmem:[#allocation143_spill] sm:$0xff] }
 0x34a   :  { %v813_v6 = vadd.f32 %v805_v0, %v676_v31  ;;  %v1520_v48 = vsub.f32 2.0, %v1512_v52  ;;  %v1521_v11 = vsub.f32 2.0, %v1513_v9  ;;  %v1091_v7 = vadd.f32 %v1083_v1, %v954_v30  ;;  %v4324_v49 = vld [vmem:[#allocation135_spill] sm:$0xff]  ;;  %v4326_v19 = vld [vmem:[#allocation84_spill] sm:$0xff] }
 0x34b   :  { %v804_v54 = vmul.f32 %v4319_v56, %v3532_v53  ;;  %v1354_v60 = vmul.f32 %v4320_v16, %v3452_v32  ;;  %v1081_v23 = vmul.f32 %v4321_v5, %v3673_v50  ;;  %v1532_v8 = vmul.f32 %v2009_v17, %v1524_v27  ;;  %v3858_v53 = vpop.permute.xlu2 %1597  ;;  %v4335_v16 = vld [vmem:[#allocation145_spill] sm:$0xff] }
 0x34c   :  { %v2015_v15 = vpop.eup %2014  ;;  %v942_v4 = vmul.f32 %v4323_v34, %v4322_v36  ;;  %v1220_v47 = vmul.f32 %v4324_v49, %v3686_v33  ;;  %v1542_v24 = vmul.f32 %v1534_v35, %v3737_v55  ;;  %v1539_v32 = vmul.f32 %v3844_v41, %v3504_v22  ;;  %v4325_v33 = vld [vmem:[#allocation150_spill] sm:$0xff]  ;;  %v4338_v34 = vld [vmem:[#allocation139_spill] sm:$0xff] }
 0x34d   :  { %v812_v31 = vadd.f32 %v804_v54, %v675_v62  ;;  %v1519_v2 = vmul.f32 %v2015_v15, %v3816_v39  ;;  %v3860_v52 = vadd.f32 %v1354_v60, %v1225_v37  ;;  %v1089_v50 = vadd.f32 %v1081_v23, %v952_v3  ;;  %v4334_v54 = vld [vmem:[#allocation52_spill] sm:$0xff]  ;;  %v4337_v23 = vld [vmem:[#allocation151_spill] sm:$0xff] }
 0x34e   :  { %v950_v17 = vadd.f32 %v942_v4, %v813_v6  ;;  %v3865_v9 = vmul.f32 %v3788_v12, %v1520_v48  ;;  %v1228_v30 = vadd.f32 %v1220_v47, %v1091_v7  ;;  %v941_v59 = vmul.f32 %v4325_v33, %v3655_v42  ;;  %v4331_v12 = vld [vmem:[#allocation137_spill] sm:$0xff]  ;;  %v3879_v42 = vpop.permute.xlu1 %1589  ;;  %v4333_v7 = vld [vmem:[#allocation128_spill] sm:$0xff] }
 0x34f   :  { %v1527_v55 = vsub.f32 2.0, %v1519_v2  ;;  %v1218_v28 = vmul.f32 %v4327_v43, %v4326_v19  ;;  %v1540_v27 = vmul.f32 %v1532_v8, %v3748_v26  ;;  %v1079_v0 = vmul.f32 %v4329_v25, %v4328_v10  ;;  %v4332_v48 = vld [vmem:[#allocation85_spill] sm:$0xff]  ;;  %v4340_v33 = vld [vmem:[#allocation60_spill] sm:$0xff]  ;;  %v4343_v10 = vld [vmem:[#allocation55_spill] sm:$0xff] }
 0x350   :  { %v4330_v22 = vsub.f32 2.0, %v3769_v51  ;;  %v1357_v1 = vmul.f32 %v4331_v12, %v3710_v38  ;;  %v1550_v62 = vsub.f32 2.0, %v1542_v24  ;;  %v949_v37 = vadd.f32 %v941_v59, %v812_v31  ;;  %v4336_v51 = vld [vmem:[#allocation42_spill] sm:$0xff]  ;;  %v4339_v31 = vld [vmem:[#allocation165_spill] sm:$0xff]  ;;  %v3913_v12 = vld [vmem:[#allocation5 + $0x8] sm:$0xff] }
 0x351   :  { %v1535_v3 = vmul.f32 %v2015_v15, %v1527_v55  ;;  %v1226_v6 = vadd.f32 %v1218_v28, %v1089_v50  ;;  %v1355_v56 = vmul.f32 %v4333_v7, %v4332_v48  ;;  %v1087_v26 = vadd.f32 %v1079_v0, %v950_v17  ;;  %v3898_v55 = vld [vmem:[#allocation5 + $0x18] sm:$0xff]  ;;  %v4342_v43 = vld [vmem:[#allocation129_spill] sm:$0xff]  ;;  %v1594_v7 = vpop.permute.xlu0 %1593 }
 0x352   :  { %v1530_v44 = vmul.f32 %v4290_v58, %v4330_v22  ;;  %v1216_v60 = vmul.f32 %v4335_v16, %v4334_v54  ;;  %v1365_v5 = vadd.f32 %v1357_v1, %v1228_v30  ;;  %v1078_v58 = vmul.f32 %v4337_v23, %v4336_v51  ;;  %v4344_v25 = vld [vmem:[#allocation146_spill] sm:$0xff] }
 0x353   :  { %v3888_v36 = vmul.f32 %v3806_v21, %v1521_v11  ;;  %v1543_v38 = vmul.f32 %v1535_v3, %v3816_v39  ;;  %v1548_v15 = vsub.f32 2.0, %v1540_v27  ;;  %v1494_v4 = vmul.f32 %v4338_v34, %v3732_v57  ;;  %v4341_v39 = vld [vmem:[#allocation152_spill] sm:$0xff]  ;;  %v3901_v57 = vld [vmem:[#allocation5 + $0x10] sm:$0xff]  ;;  %v1586_v19 = vpop.permute.xlu2 %1585 }
 0x354   :  { %v1538_v49 = vmul.f32 %v1530_v44, %v4289_v63  ;;  %v1558_v47 = vmul.f32 %v1550_v62, %v1534_v35  ;;  %v1086_v24 = vadd.f32 %v1078_v58, %v949_v37  ;;  %v1495_v2 = vmul.f32 %v4339_v31, %v3804_v29  ;;  %v2039_v31 = vld [vmem:[#allocation5 + $0x28] sm:$0xff] }
 0x355   :  { %v1551_v50 = vsub.f32 2.0, %v1543_v38  ;;  %v2136_v17 = vmov 69   ;;  %v1547_v30 = vsub.f32 2.0, %v1539_v32  ;;  %v1363_v21 = vadd.f32 %v1355_v56, %v1226_v6 }
 0x356   :  { %1867 = vset.pattern.permute.xlu1 %v2136_v17  ;;  %1866 = vset.pattern.permute.xlu0 %v2136_v17  ;;  %v1224_v11 = vadd.f32 %v1216_v60, %v1087_v26  ;;  %v1215_v59 = vmul.f32 %v4341_v39, %v4340_v33  ;;  %v1502_v63 = vadd.f32 %v1494_v4, %v1365_v5  ;;  %v1546_v22 = vsub.f32 2.0, %v1538_v49  ;;  %v4347_v26 = vld [vmem:[#allocation153_spill] sm:$0xff]  ;;  %v4348_v60 = vld [vmem:[#allocation54_spill] sm:$0xff]  ;;  %v4349_v5 = vld [vmem:[#allocation67_spill] sm:$0xff]  ;;  %v1582_v23 = vpop.permute.xlu1 %1581 }
 0x357   :  { %1617 = vperm.xlu1 %1867, %v3898_v55   ;;  %1613 = vperm.xlu0 %1866, %v3901_v57   ;;  %v1537_v29 = vmul.f32 %v3888_v36, %v3760_v40  ;;  %v1503_v35 = vadd.f32 %v1495_v2, %v3808_v18  ;;  %v1559_v32 = vmul.f32 %v1551_v50, %v1535_v3  ;;  %v4345_v3 = vld [vmem:[#allocation48_spill] sm:$0xff]  ;;  %v4350_v4 = vld [vmem:[#allocation31_spill] sm:$0xff]  ;;  %v4353_v2 = vld [vmem:[#allocation57_spill] sm:$0xff]  ;;  %vm1628_vm12 = vcmask 523264  }
 0x358   :  { %1865 = vset.pattern.permute.xlu2 %v2136_v17  ;;  %v1492_v28 = vmul.f32 %v4342_v43, %v3723_v45  ;;  %v1536_v27 = vmul.f32 %v3865_v9, %v3744_v13  ;;  %v1353_v0 = vmul.f32 %v4344_v25, %v4343_v10  ;;  %v1556_v40 = vmul.f32 %v1548_v15, %v1532_v8  ;;  %v4346_v45 = vld [vmem:[#allocation74_spill] sm:$0xff]  ;;  %v4351_v49 = vld [vmem:[#allocation43_spill] sm:$0xff]  ;;  %v4354_v50 = vld [vmem:[#allocation68_spill] sm:$0xff] }
 0x359   :  { %1609 = vperm.xlu2 %1865, %v3913_v12   ;;  %v1566_v1 = vmul.f32 %v1558_v47, %v1502_v63  ;;  %v1223_v18 = vadd.f32 %v1215_v59, %v1086_v24  ;;  %v1567_v62 = vmul.f32 %v1559_v32, %v1503_v35  ;;  %v1222_v37 = vadd.f32 %v3827_v46, %v3839_v14  ;;  %v4352_v47 = vld [vmem:[#allocation83_spill] sm:$0xff] }
 0x35a   :  { %v1491_v6 = vmul.f32 %v4346_v45, %v4345_v3  ;;  %v1555_v13 = vmul.f32 %v1547_v30, %v3844_v41  ;;  %v1500_v48 = vadd.f32 %v1492_v28, %v1363_v21  ;;  %v1361_v56 = vadd.f32 %v1353_v0, %v1224_v11  ;;  %v4355_v30 = vld [vmem:[#allocation58_spill] sm:$0xff]  ;;  %v2040_v33 = vld [vmem:[#allocation5 + $0x20] sm:$0xff] }
 0x35b   :  { %v1352_v54 = vmul.f32 %v4347_v26, %v3702_v20  ;;  %v1545_v16 = vsub.f32 2.0, %v1537_v29  ;;  %v1607_v8 = vadd.f32 %v3858_v53, %v1567_v62  ;;  %v1351_v51 = vmul.f32 %v4349_v5, %v4348_v60  ;;  %v1578_v63 = vpop.permute.xlu2 %1577 }
 0x35c   :  { %v1499_v46 = vadd.f32 %v1491_v6, %v3860_v52  ;;  %v1544_v14 = vsub.f32 2.0, %v1536_v27  ;;  %v1554_v58 = vmul.f32 %v1546_v22, %v1530_v44  ;;  %v1564_v38 = vmul.f32 %v1556_v40, %v1500_v48 }
 0x35d   :  { %v1606_v15 = vadd.f32 %v1594_v7, %v1566_v1  ;;  %v1360_v41 = vadd.f32 %v1352_v54, %v1223_v18  ;;  %1647 = vmatpush.msrb.mxu0 %v1607_v8  ;;  %1794 = vmatpush.msra.mxu2 %v1607_v8  ;;  %v1359_v34 = vadd.f32 %v1351_v51, %v1222_v37 }
 0x35e   :  { %v1480_v20 = vmul.f32 %v4351_v49, %v4350_v4  ;;  %v1489_v53 = vmul.f32 %v4352_v47, %v3753_v61  ;;  %v1563_v24 = vmul.f32 %v1555_v13, %v1499_v46  ;;  %v1605_v52 = vadd.f32 %v3879_v42, %v4353_v2  ;;  %v1570_v28 = vpop.permute.xlu1 %1569 }
 0x35f   :  { %1625 = vperm.xlu1 %1867, %v2039_v31   ;;  %v1498_v44 = vadd.f32 %v4354_v50, %v1361_v56  ;;  %v1553_v17 = vmul.f32 %v1545_v16, %v3888_v36  ;;  %1648 = vmatpush.msrb.mxu0 %v1606_v15  ;;  %v1552_v11 = vmul.f32 %v1544_v14, %v3865_v9  ;;  %v1574_v36 = vpop.permute.xlu0 %1573 }
 0x360   :  { %1795 = vmatpush.msra.mxu2 %v1606_v15  ;;  %v1488_v21 = vmul.f32 %v1480_v20, %v4355_v30  ;;  %v1604_v39 = vadd.f32 %v1586_v19, %v1564_v38  ;;  %v1497_v59 = vadd.f32 %v1489_v53, %v1360_v41  ;;  %v1603_v29 = vadd.f32 %v1582_v23, %v1563_v24 }
 0x361   :  { %1621 = vperm.xlu2 %1865, %v2040_v33   ;;  %v1562_v61 = vmul.f32 %v1554_v58, %v1498_v44  ;;  %1649 = vmatpush.msrb.mxu0 %v1605_v52 }
 0x362   :  { %1796 = vmatpush.msra.mxu2 %v1605_v52  ;;  %v1496_v42 = vadd.f32 %v1488_v21, %v1359_v34  ;;  %v1561_v35 = vmul.f32 %v1553_v17, %v1497_v59 }
 0x363   :  { %1650 = vmatpush.msrb.mxu0 %v1604_v39  ;;  %v1602_v43 = vadd.f32 %v1578_v63, %v1562_v61 }
 0x364   :  { %1797 = vmatpush.msra.mxu2 %v1604_v39  ;;  %v1560_v32 = vmul.f32 %v1552_v11, %v1496_v42  ;;  %v1601_v9 = vadd.f32 %v1574_v36, %v1561_v35 }
 0x365   :  { %1651 = vmatpush.msrb.mxu0 %v1603_v29 }
 0x366   :  { %1798 = vmatpush.msra.mxu2 %v1603_v29  ;;  %v1600_v19 = vadd.f32 %v1570_v28, %v1560_v32 }
 0x367   :  { %1652 = vmatpush.msrb.mxu0 %v1602_v43 }
 0x368   :  { %1799 = vmatpush.msra.mxu2 %v1602_v43 }
 0x369   :  { %1653 = vmatpush.msrb.mxu0 %v1601_v9 }
 0x36a   :  { %1800 = vmatpush.msra.mxu2 %v1601_v9 }
 0x36b   :  { %1654 = vmatpush.msrb.mxu0 %v1600_v19 }
 0x36c   :  { %1801 = vmatpush.msra.mxu2 %v1600_v19  ;;  %1787 = vmatmul.msk.f32.vlgmr.msrb.gmra.mxu0 %vm1628_vm12, %v3913_v12 }
 0x36d   :  { %1790 = vmatmul.msk.f32.vlgmr.msra.gmra.mxu2 %vm1628_vm12, %v2040_v33 }
 0x374   :  { %1788 = vmatmul.msk.f32.gmra.mxu0 %vm1628_vm12, %v3901_v57 }
 0x375   :  { %1791 = vmatmul.msk.f32.gmra.mxu2 %vm1628_vm12, %v2039_v31 }
 0x37c   :  { %1789 = vmatmul.msk.f32.gmra.mxu0 %vm1628_vm12, %v3898_v55 }
 0x3b3   :  { %v1610_v27 = vpop.permute.xlu2 %1609 }
 0x3bb   :  { %v1622_v40 = vpop.permute.xlu2 %1621 }
 0x3c9   :  { %v1618_v22 = vpop.permute.xlu1 %1617  ;;  %v1614_v62 = vpop.permute.xlu0 %1613 }
 0x3d1   :  { %v1626_v7 = vpop.permute.xlu1 %1625 }
 0x3e9   :  { %v1656_v10 = vpop.f32.mrf.mxu0 }
 0x3ea   :  { %v3940_v25 = vadd.f32 %v1656_v10, %v1610_v27 }
 0x3ec   :  { %v1671_v0 = vand.u32 2147483647, %v3940_v25  ;;  %vm1731_vm13 = vcmp.ge.f32.partialorder %v3940_v25, 0.0 }
 0x3ee   :  { %v1676_v1 = vsub.f32 0.0, %v1671_v0 }
 0x3f0   :  { %v1665_v18 = vpop.f32.mrf.mxu2  ;;  %v1681_v37 = vmul.f32 1.442695, %v1676_v1 }
 0x3f1   :  { %v3943_v3 = vadd.f32 %v1665_v18, %v1622_v40  ;;  %v1659_v12 = vpop.f32.mrf.mxu0 }
 0x3f2   :  { %2016 = vpow2.f32 %v1681_v37  ;;  %v3946_v45 = vadd.f32 %v1659_v12, %v1614_v62 }
 0x3f3   :  { %v1674_v57 = vand.u32 2147483647, %v3943_v3  ;;  %vm1734_vm14 = vcmp.ge.f32.partialorder %v3943_v3, 0.0 }
 0x3f4   :  { %v1672_v6 = vand.u32 2147483647, %v3946_v45  ;;  %vm1732_vm15 = vcmp.ge.f32.partialorder %v3946_v45, 0.0 }
 0x3f5   :  { %v1679_v55 = vsub.f32 0.0, %v1674_v57 }
 0x3f6   :  { %v1677_v48 = vsub.f32 0.0, %v1672_v6 }
 0x3f7   :  { %v1687_v13 = vmul.f32 1.442695, %v1679_v55 }
 0x3f8   :  { %v1668_v56 = vpop.f32.mrf.mxu2  ;;  %v2017_v26 = vpop.eup %2016  ;;  %v1683_v54 = vmul.f32 1.442695, %v1677_v48 }
 0x3f9   :  { %2018 = vpow2.f32 %v1687_v13  ;;  %v3949_v16 = vadd.f32 %v1668_v56, %v1626_v7  ;;  %v1691_v8 = vadd.f32 1.0, %v2017_v26  ;;  %v1662_v60 = vpop.f32.mrf.mxu0 }
 0x3fa   :  { %2020 = vpow2.f32 %v1683_v54  ;;  %v3952_v51 = vadd.f32 %v1662_v60, %v1618_v22 }
 0x3fb   :  { %v1675_v5 = vand.u32 2147483647, %v3949_v16  ;;  %2022 = vrcp.f32 %v1691_v8  ;;  %vm1735_vm0 = vcmp.ge.f32.partialorder %v3949_v16, 0.0 }
 0x3fc   :  { %v1673_v46 = vand.u32 2147483647, %v3952_v51  ;;  %vm1733_vm1 = vcmp.ge.f32.partialorder %v3952_v51, 0.0 }
 0x3fd   :  { %v1680_v23 = vsub.f32 0.0, %v1675_v5 }
 0x3fe   :  { %v1678_v38 = vsub.f32 0.0, %v1673_v46 }
 0x3ff   :  { %v2019_v14 = vpop.eup %2018  ;;  %v1689_v58 = vmul.f32 1.442695, %v1680_v23 }
 0x400   :  { %v1694_v15 = vadd.f32 1.0, %v2019_v14  ;;  %v2021_v41 = vpop.eup %2020  ;;  %v1685_v34 = vmul.f32 1.442695, %v1678_v38 }
 0x401   :  { %2024 = vpow2.f32 %v1689_v58  ;;  %v2023_v4 = vpop.eup %2022  ;;  %v1692_v49 = vadd.f32 1.0, %v2021_v41 }
 0x402   :  { %2026 = vrcp.f32 %v1694_v15  ;;  %v1701_v20 = vmul.f32 %v2023_v4, %v1691_v8 }
 0x403   :  { %2028 = vpow2.f32 %v1685_v34 }
 0x404   :  { %2030 = vrcp.f32 %v1692_v49  ;;  %v1706_v47 = vsub.f32 2.0, %v1701_v20 }
 0x406   :  { %v1711_v24 = vmul.f32 %v2023_v4, %v1706_v47 }
 0x407   :  { %v2025_v53 = vpop.eup %2024 }
 0x408   :  { %v2027_v31 = vpop.eup %2026  ;;  %v1695_v2 = vadd.f32 1.0, %v2025_v53  ;;  %v1716_v50 = vmul.f32 %v1711_v24, %v1691_v8 }
 0x409   :  { %v2029_v52 = vpop.eup %2028  ;;  %v1704_v44 = vmul.f32 %v2027_v31, %v1694_v15 }
 0x40a   :  { %v2031_v17 = vpop.eup %2030  ;;  %2032 = vrcp.f32 %v1695_v2  ;;  %v1693_v30 = vadd.f32 1.0, %v2029_v52  ;;  %v1721_v21 = vsub.f32 2.0, %v1716_v50 }
 0x40b   :  { %v1709_v11 = vsub.f32 2.0, %v1704_v44  ;;  %v1702_v33 = vmul.f32 %v2031_v17, %v1692_v49 }
 0x40c   :  { %2034 = vrcp.f32 %v1693_v30  ;;  %v1726_v39 = vmul.f32 %v1721_v21, %v1711_v24 }
 0x40d   :  { %v1714_v61 = vmul.f32 %v2027_v31, %v1709_v11  ;;  %v1707_v59 = vsub.f32 2.0, %v1702_v33 }
 0x40e   :  { %v1736_v63 = vmul.f32 %v2017_v26, %v1726_v39 }
 0x40f   :  { %v1719_v29 = vmul.f32 %v1714_v61, %v1694_v15  ;;  %v1712_v42 = vmul.f32 %v2031_v17, %v1707_v59 }
 0x410   :  { %v2033_v35 = vpop.eup %2032  ;;  %v1741_v36 = vsel %vm1731_vm13, %v1726_v39, %v1736_v63 }
 0x411   :  { %v1724_v32 = vsub.f32 2.0, %v1719_v29  ;;  %v1717_v43 = vmul.f32 %v1712_v42, %v1692_v49  ;;  %v1705_v28 = vmul.f32 %v2033_v35, %v1695_v2  ;;  %1746 = vst [vmem:[#allocation7] sm:$0xff] %v1741_v36 }
 0x412   :  { %v2035_v9 = vpop.eup %2034 }
 0x413   :  { %v1729_v19 = vmul.f32 %v1724_v32, %v1714_v61  ;;  %v1722_v27 = vsub.f32 2.0, %v1717_v43  ;;  %v1710_v10 = vsub.f32 2.0, %v1705_v28  ;;  %v1703_v0 = vmul.f32 %v2035_v9, %v1693_v30 }
 0x415   :  { %v1739_v22 = vmul.f32 %v2019_v14, %v1729_v19  ;;  %v1727_v40 = vmul.f32 %v1722_v27, %v1712_v42  ;;  %v1715_v1 = vmul.f32 %v2033_v35, %v1710_v10  ;;  %v1708_v18 = vsub.f32 2.0, %v1703_v0 }
 0x417   :  { %v1744_v62 = vsel %vm1734_vm14, %v1729_v19, %v1739_v22  ;;  %v1737_v37 = vmul.f32 %v2021_v41, %v1727_v40  ;;  %v1720_v12 = vmul.f32 %v1715_v1, %v1695_v2  ;;  %v1713_v25 = vmul.f32 %v2035_v9, %v1708_v18 }
 0x418   :  { %1749 = vst [vmem:[#allocation7 + $0x18] sm:$0xff] %v1744_v62 }
 0x419   :  { %v1742_v57 = vsel %vm1732_vm15, %v1727_v40, %v1737_v37  ;;  %v1725_v55 = vsub.f32 2.0, %v1720_v12  ;;  %v1718_v6 = vmul.f32 %v1713_v25, %v1693_v30 }
 0x41a   :  { %1747 = vst [vmem:[#allocation7 + $0x8] sm:$0xff] %v1742_v57 }
 0x41b   :  { %v1730_v13 = vmul.f32 %v1725_v55, %v1715_v1  ;;  %v1723_v48 = vsub.f32 2.0, %v1718_v6 }
 0x41d   :  { %v1740_v7 = vmul.f32 %v2025_v53, %v1730_v13  ;;  %v1728_v56 = vmul.f32 %v1723_v48, %v1713_v25 }
 0x41f   :  { %v1745_v3 = vsel %vm1735_vm0, %v1730_v13, %v1740_v7  ;;  %v1738_v26 = vmul.f32 %v2029_v52, %v1728_v56 }
 0x420   :  { %1750 = vst [vmem:[#allocation7 + $0x20] sm:$0xff] %v1745_v3 }
 0x421   :  { %v1743_v45 = vsel %vm1733_vm1, %v1728_v56, %v1738_v26 }
 0x422   :  { %1748 = vst [vmem:[#allocation7 + $0x10] sm:$0xff] %v1743_v45 }
 0x423   :  { %1763 = dma.vmem_to_hbm [thread:$0]  %s1756_s21, 640, %s1758_s24, [#allocation4], %s2120_s17, %s2120_s17, %s2121_s18  }
 0x424   :  { %2117 = dma.done.wait [#allocation4], 640  }
 0x425   :  { %2118 = vsyncadd [#allocation4], 4294966656 }
 0x426   :  { %1768 = vsyncpa [#allocation3], 1 }
 0x427   :  { %1769 = vsyncpa [#allocation6], 1 }
 0x428   :  { %1770 = vsyncpa [#allocation4], 1 }

</bundles_post_ra>
